<compile_context>
chip_gen: v7x
topology: tpu7x:2x2x1
jax: 0.10.0
libtpu: 0.0.40
codegen_flags: <defaults>
</compile_context>

<pallas_src>
import jax
import jax.numpy as jnp
from jax.experimental import pallas as pl
from jax.experimental.pallas import tpu as pltpu


def _window_departition_kernel(x_ref, o_ref):
    # x_ref block: (1, hp_blk, wp, p, p, C)  window row(s) of x6 = (B, hp, wp, p, p, C)
    # o_ref block: (1, C, hp_blk*p, W)       out[b, :, i*hp_blk*p : ..., :]   (NCHW)
    #
    # For every spatial row r inside a window row we gather the (W, C) slab that
    # holds that row across all wp windows (C stays the dense lane dim of the
    # load), transpose it on the XLU to (C, W) and store it as a full-width
    # (W-lane) row of the NCHW output block.  The window -> spatial interleave
    # is expressed by the BlockSpecs plus the static row index below.
    _, hp_blk, wp, p, _, C = x_ref.shape
    W = wp * p
    for i in range(hp_blk):          # static unroll (hp_blk == 1 on the fast path)
        for r in range(p):           # static unroll over rows within a window
            slab = x_ref[0, i, :, r, :, :]        # (wp, p, C), C lanes dense
            slab = slab.reshape(W, C)             # contiguous merge of leading dims
            o_ref[0, :, i * p + r, :] = slab.T    # (C, W): 2-D transpose, W lanes dense


def window_departition(x, p, hp, wp):
    """Pallas equivalent of WindowDepartition.forward(x, p, hp, wp) -> (B, C, H, W)."""
    B, HpWp, pp, C = x.shape
    assert HpWp == hp * wp and pp == p * p
    H, W = hp * p, wp * p

    itemsize = jnp.dtype(x.dtype).itemsize
    sublane = {4: 8, 2: 16, 1: 32}.get(itemsize, 8)

    # Fast path: one window-row per grid step (output H-block = p), which needs
    # p to be sublane-aligned.  Otherwise fall back to one full image per step
    # (H-block = H = full dim, always a legal block shape).
    hp_blk = 1 if (p % sublane == 0) else hp

    # glue: free contiguous reshape (decompose window / pixel indices).
    x6 = x.reshape(B, hp, wp, p, p, C)

    block_bytes = hp_blk * wp * p * p * C * itemsize
    # in + out, double-buffered (4x block), plus headroom for in-kernel temporaries.
    vmem_limit = int(min(max(6 * block_bytes, 16 * 1024 * 1024), 64 * 1024 * 1024))

    return pl.pallas_call(
        _window_departition_kernel,
        out_shape=jax.ShapeDtypeStruct((B, C, H, W), x.dtype),
        grid=(B, hp // hp_blk),
        in_specs=[
            pl.BlockSpec(
                (1, hp_blk, wp, p, p, C),
                lambda b, i: (b, i, 0, 0, 0, 0),
            )
        ],
        out_specs=pl.BlockSpec(
            (1, C, hp_blk * p, W),
            lambda b, i: (b, 0, i, 0),
        ),
        compiler_params=pltpu.CompilerParams(
            dimension_semantics=("parallel", "parallel"),
            vmem_limit_bytes=vmem_limit,
        ),
    )(x6)


def window_departition_ref(x, p, hp, wp):
    """Direct JAX transcription of the PyTorch forward, for verification."""
    B, HpWp, pp, C = x.shape
    x = x.reshape(B, hp, wp, p, p, C)
    x = jnp.transpose(x, (0, 5, 1, 3, 2, 4))
    return x.reshape(B, C, hp * p, wp * p)


if __name__ == "__main__":
    # WindowDepartition has no parameters; only deterministic inputs needed.
    # Shapes chosen so the NCHW lane dim W = wp*p = 128 is dense and p is
    # sublane-aligned (the regime the kernel is optimized for).
    B, hp, wp, p, C = 2, 2, 16, 8, 128
    key = jax.random.PRNGKey(0)
    x = jax.random.normal(key, (B, hp * wp, p * p, C), dtype=jnp.float32)

    out = window_departition(x, p, hp, wp)
    out = jax.block_until_ready(out)

    ref = window_departition_ref(x, p, hp, wp)
    assert out.shape == (B, C, hp * p, wp * p), out.shape
    assert out.dtype == x.dtype
    assert jnp.array_equal(out, ref), "mismatch vs reference"
    print("KERNEL_OK")
</pallas_src>

<mosaic_0001>
module attributes {stable_mosaic.version = 11 : i64} {
  func.func @_window_departition_kernel(%arg0: i32, %arg1: i32, %arg2: memref<1x1x16x8x8x128xf32, #tpu.memory_space<vmem>>, %arg3: memref<1x128x8x128xf32, #tpu.memory_space<vmem>>) attributes {dimension_semantics = [#tpu.dimension_semantics<parallel>, #tpu.dimension_semantics<parallel>], iteration_bounds = array<i64: 2, 2>, scalar_prefetch = 0 : i64, scratch_operands = 0 : i64, tpu.core_type = #tpu.core_type<tc>, window_params = [{transform_indices = @transform_0, window_bounds = array<i64: 1, 1, 16, 8, 8, 128>}, {transform_indices = @transform_1, window_bounds = array<i64: 1, 128, 8, 128>}]} {
    %c0 = arith.constant 0 : index
    %c0_0 = arith.constant 0 : index
    %c0_1 = arith.constant 0 : index
    %c0_2 = arith.constant 0 : index
    %c0_3 = arith.constant 0 : index
    %c0_4 = arith.constant 0 : index
    %0 = vector.load %arg2[%c0, %c0_0, %c0_1, %c0_2, %c0_3, %c0_4] : memref<1x1x16x8x8x128xf32, #tpu.memory_space<vmem>>, vector<1x1x16x1x8x128xf32>
    %1 = vector.shape_cast %0 : vector<1x1x16x1x8x128xf32> to vector<16x8x128xf32>
    %2 = vector.shape_cast %1 : vector<16x8x128xf32> to vector<128x128xf32>
    %3 = tpu.transpose %2, [1, 0] : vector<128x128xf32> -> vector<128x128xf32>
    %c0_5 = arith.constant 0 : index
    %c0_6 = arith.constant 0 : index
    %c0_7 = arith.constant 0 : index
    %c0_8 = arith.constant 0 : index
    %4 = vector.load %arg3[%c0_5, %c0_6, %c0_7, %c0_8] : memref<1x128x8x128xf32, #tpu.memory_space<vmem>>, vector<1x128x1x128xf32>
    %5 = vector.shape_cast %4 : vector<1x128x1x128xf32> to vector<128x128xf32>
    %6 = vector.shape_cast %3 : vector<128x128xf32> to vector<1x128x1x128xf32>
    tpu.vector_store %arg3[%c0_5, %c0_6, %c0_7, %c0_8], %6 {strides = array<i32>} : memref<1x128x8x128xf32, #tpu.memory_space<vmem>>, vector<1x128x1x128xf32>,
    %c0_9 = arith.constant 0 : index
    %c0_10 = arith.constant 0 : index
    %c0_11 = arith.constant 0 : index
    %c1 = arith.constant 1 : index
    %c0_12 = arith.constant 0 : index
    %c0_13 = arith.constant 0 : index
    %7 = vector.load %arg2[%c0_9, %c0_10, %c0_11, %c1, %c0_12, %c0_13] : memref<1x1x16x8x8x128xf32, #tpu.memory_space<vmem>>, vector<1x1x16x1x8x128xf32>
    %8 = vector.shape_cast %7 : vector<1x1x16x1x8x128xf32> to vector<16x8x128xf32>
    %9 = vector.shape_cast %8 : vector<16x8x128xf32> to vector<128x128xf32>
    %10 = tpu.transpose %9, [1, 0] : vector<128x128xf32> -> vector<128x128xf32>
    %c0_14 = arith.constant 0 : index
    %c0_15 = arith.constant 0 : index
    %c1_16 = arith.constant 1 : index
    %c0_17 = arith.constant 0 : index
    %11 = vector.load %arg3[%c0_14, %c0_15, %c1_16, %c0_17] : memref<1x128x8x128xf32, #tpu.memory_space<vmem>>, vector<1x128x1x128xf32>
    %12 = vector.shape_cast %11 : vector<1x128x1x128xf32> to vector<128x128xf32>
    %13 = vector.shape_cast %10 : vector<128x128xf32> to vector<1x128x1x128xf32>
    tpu.vector_store %arg3[%c0_14, %c0_15, %c1_16, %c0_17], %13 {strides = array<i32>} : memref<1x128x8x128xf32, #tpu.memory_space<vmem>>, vector<1x128x1x128xf32>,
    %c0_18 = arith.constant 0 : index
    %c0_19 = arith.constant 0 : index
    %c0_20 = arith.constant 0 : index
    %c2 = arith.constant 2 : index
    %c0_21 = arith.constant 0 : index
    %c0_22 = arith.constant 0 : index
    %14 = vector.load %arg2[%c0_18, %c0_19, %c0_20, %c2, %c0_21, %c0_22] : memref<1x1x16x8x8x128xf32, #tpu.memory_space<vmem>>, vector<1x1x16x1x8x128xf32>
    %15 = vector.shape_cast %14 : vector<1x1x16x1x8x128xf32> to vector<16x8x128xf32>
    %16 = vector.shape_cast %15 : vector<16x8x128xf32> to vector<128x128xf32>
    %17 = tpu.transpose %16, [1, 0] : vector<128x128xf32> -> vector<128x128xf32>
    %c0_23 = arith.constant 0 : index
    %c0_24 = arith.constant 0 : index
    %c2_25 = arith.constant 2 : index
    %c0_26 = arith.constant 0 : index
    %18 = vector.load %arg3[%c0_23, %c0_24, %c2_25, %c0_26] : memref<1x128x8x128xf32, #tpu.memory_space<vmem>>, vector<1x128x1x128xf32>
    %19 = vector.shape_cast %18 : vector<1x128x1x128xf32> to vector<128x128xf32>
    %20 = vector.shape_cast %17 : vector<128x128xf32> to vector<1x128x1x128xf32>
    tpu.vector_store %arg3[%c0_23, %c0_24, %c2_25, %c0_26], %20 {strides = array<i32>} : memref<1x128x8x128xf32, #tpu.memory_space<vmem>>, vector<1x128x1x128xf32>,
    %c0_27 = arith.constant 0 : index
    %c0_28 = arith.constant 0 : index
    %c0_29 = arith.constant 0 : index
    %c3 = arith.constant 3 : index
    %c0_30 = arith.constant 0 : index
    %c0_31 = arith.constant 0 : index
    %21 = vector.load %arg2[%c0_27, %c0_28, %c0_29, %c3, %c0_30, %c0_31] : memref<1x1x16x8x8x128xf32, #tpu.memory_space<vmem>>, vector<1x1x16x1x8x128xf32>
    %22 = vector.shape_cast %21 : vector<1x1x16x1x8x128xf32> to vector<16x8x128xf32>
    %23 = vector.shape_cast %22 : vector<16x8x128xf32> to vector<128x128xf32>
    %24 = tpu.transpose %23, [1, 0] : vector<128x128xf32> -> vector<128x128xf32>
    %c0_32 = arith.constant 0 : index
    %c0_33 = arith.constant 0 : index
    %c3_34 = arith.constant 3 : index
    %c0_35 = arith.constant 0 : index
    %25 = vector.load %arg3[%c0_32, %c0_33, %c3_34, %c0_35] : memref<1x128x8x128xf32, #tpu.memory_space<vmem>>, vector<1x128x1x128xf32>
    %26 = vector.shape_cast %25 : vector<1x128x1x128xf32> to vector<128x128xf32>
    %27 = vector.shape_cast %24 : vector<128x128xf32> to vector<1x128x1x128xf32>
    tpu.vector_store %arg3[%c0_32, %c0_33, %c3_34, %c0_35], %27 {strides = array<i32>} : memref<1x128x8x128xf32, #tpu.memory_space<vmem>>, vector<1x128x1x128xf32>,
    %c0_36 = arith.constant 0 : index
    %c0_37 = arith.constant 0 : index
    %c0_38 = arith.constant 0 : index
    %c4 = arith.constant 4 : index
    %c0_39 = arith.constant 0 : index
    %c0_40 = arith.constant 0 : index
    %28 = vector.load %arg2[%c0_36, %c0_37, %c0_38, %c4, %c0_39, %c0_40] : memref<1x1x16x8x8x128xf32, #tpu.memory_space<vmem>>, vector<1x1x16x1x8x128xf32>
    %29 = vector.shape_cast %28 : vector<1x1x16x1x8x128xf32> to vector<16x8x128xf32>
    %30 = vector.shape_cast %29 : vector<16x8x128xf32> to vector<128x128xf32>
    %31 = tpu.transpose %30, [1, 0] : vector<128x128xf32> -> vector<128x128xf32>
    %c0_41 = arith.constant 0 : index
    %c0_42 = arith.constant 0 : index
    %c4_43 = arith.constant 4 : index
    %c0_44 = arith.constant 0 : index
    %32 = vector.load %arg3[%c0_41, %c0_42, %c4_43, %c0_44] : memref<1x128x8x128xf32, #tpu.memory_space<vmem>>, vector<1x128x1x128xf32>
    %33 = vector.shape_cast %32 : vector<1x128x1x128xf32> to vector<128x128xf32>
    %34 = vector.shape_cast %31 : vector<128x128xf32> to vector<1x128x1x128xf32>
    tpu.vector_store %arg3[%c0_41, %c0_42, %c4_43, %c0_44], %34 {strides = array<i32>} : memref<1x128x8x128xf32, #tpu.memory_space<vmem>>, vector<1x128x1x128xf32>,
    %c0_45 = arith.constant 0 : index
    %c0_46 = arith.constant 0 : index
    %c0_47 = arith.constant 0 : index
    %c5 = arith.constant 5 : index
    %c0_48 = arith.constant 0 : index
    %c0_49 = arith.constant 0 : index
    %35 = vector.load %arg2[%c0_45, %c0_46, %c0_47, %c5, %c0_48, %c0_49] : memref<1x1x16x8x8x128xf32, #tpu.memory_space<vmem>>, vector<1x1x16x1x8x128xf32>
    %36 = vector.shape_cast %35 : vector<1x1x16x1x8x128xf32> to vector<16x8x128xf32>
    %37 = vector.shape_cast %36 : vector<16x8x128xf32> to vector<128x128xf32>
    %38 = tpu.transpose %37, [1, 0] : vector<128x128xf32> -> vector<128x128xf32>
    %c0_50 = arith.constant 0 : index
    %c0_51 = arith.constant 0 : index
    %c5_52 = arith.constant 5 : index
    %c0_53 = arith.constant 0 : index
    %39 = vector.load %arg3[%c0_50, %c0_51, %c5_52, %c0_53] : memref<1x128x8x128xf32, #tpu.memory_space<vmem>>, vector<1x128x1x128xf32>
    %40 = vector.shape_cast %39 : vector<1x128x1x128xf32> to vector<128x128xf32>
    %41 = vector.shape_cast %38 : vector<128x128xf32> to vector<1x128x1x128xf32>
    tpu.vector_store %arg3[%c0_50, %c0_51, %c5_52, %c0_53], %41 {strides = array<i32>} : memref<1x128x8x128xf32, #tpu.memory_space<vmem>>, vector<1x128x1x128xf32>,
    %c0_54 = arith.constant 0 : index
    %c0_55 = arith.constant 0 : index
    %c0_56 = arith.constant 0 : index
    %c6 = arith.constant 6 : index
    %c0_57 = arith.constant 0 : index
    %c0_58 = arith.constant 0 : index
    %42 = vector.load %arg2[%c0_54, %c0_55, %c0_56, %c6, %c0_57, %c0_58] : memref<1x1x16x8x8x128xf32, #tpu.memory_space<vmem>>, vector<1x1x16x1x8x128xf32>
    %43 = vector.shape_cast %42 : vector<1x1x16x1x8x128xf32> to vector<16x8x128xf32>
    %44 = vector.shape_cast %43 : vector<16x8x128xf32> to vector<128x128xf32>
    %45 = tpu.transpose %44, [1, 0] : vector<128x128xf32> -> vector<128x128xf32>
    %c0_59 = arith.constant 0 : index
    %c0_60 = arith.constant 0 : index
    %c6_61 = arith.constant 6 : index
    %c0_62 = arith.constant 0 : index
    %46 = vector.load %arg3[%c0_59, %c0_60, %c6_61, %c0_62] : memref<1x128x8x128xf32, #tpu.memory_space<vmem>>, vector<1x128x1x128xf32>
    %47 = vector.shape_cast %46 : vector<1x128x1x128xf32> to vector<128x128xf32>
    %48 = vector.shape_cast %45 : vector<128x128xf32> to vector<1x128x1x128xf32>
    tpu.vector_store %arg3[%c0_59, %c0_60, %c6_61, %c0_62], %48 {strides = array<i32>} : memref<1x128x8x128xf32, #tpu.memory_space<vmem>>, vector<1x128x1x128xf32>,
    %c0_63 = arith.constant 0 : index
    %c0_64 = arith.constant 0 : index
    %c0_65 = arith.constant 0 : index
    %c7 = arith.constant 7 : index
    %c0_66 = arith.constant 0 : index
    %c0_67 = arith.constant 0 : index
    %49 = vector.load %arg2[%c0_63, %c0_64, %c0_65, %c7, %c0_66, %c0_67] : memref<1x1x16x8x8x128xf32, #tpu.memory_space<vmem>>, vector<1x1x16x1x8x128xf32>
    %50 = vector.shape_cast %49 : vector<1x1x16x1x8x128xf32> to vector<16x8x128xf32>
    %51 = vector.shape_cast %50 : vector<16x8x128xf32> to vector<128x128xf32>
    %52 = tpu.transpose %51, [1, 0] : vector<128x128xf32> -> vector<128x128xf32>
    %c0_68 = arith.constant 0 : index
    %c0_69 = arith.constant 0 : index
    %c7_70 = arith.constant 7 : index
    %c0_71 = arith.constant 0 : index
    %53 = vector.load %arg3[%c0_68, %c0_69, %c7_70, %c0_71] : memref<1x128x8x128xf32, #tpu.memory_space<vmem>>, vector<1x128x1x128xf32>
    %54 = vector.shape_cast %53 : vector<1x128x1x128xf32> to vector<128x128xf32>
    %55 = vector.shape_cast %52 : vector<128x128xf32> to vector<1x128x1x128xf32>
    tpu.vector_store %arg3[%c0_68, %c0_69, %c7_70, %c0_71], %55 {strides = array<i32>} : memref<1x128x8x128xf32, #tpu.memory_space<vmem>>, vector<1x128x1x128xf32>,
    return
  }
  func.func @transform_0(%arg0: i32, %arg1: i32) -> (i32, i32, i32, i32, i32, i32) {
    %c0_i32 = arith.constant 0 : i32
    %c0_i32_0 = arith.constant 0 : i32
    %c0_i32_1 = arith.constant 0 : i32
    %c0_i32_2 = arith.constant 0 : i32
    %c0_i32_3 = arith.constant 0 : i32
    return %arg0, %arg1, %c0_i32, %c0_i32_0, %c0_i32_1, %c0_i32_2 : i32, i32, i32, i32, i32, i32
  }
  func.func @transform_1(%arg0: i32, %arg1: i32) -> (i32, i32, i32, i32) {
    %c0_i32 = arith.constant 0 : i32
    %c0_i32_0 = arith.constant 0 : i32
    %c0_i32_1 = arith.constant 0 : i32
    return %arg0, %c0_i32, %arg1, %c0_i32_0 : i32, i32, i32, i32
  }
}

</mosaic_0001>

<bundles_post_ra>
// kernel: tpu_custom_call.1
= control target key start
LH: loop header
LB: loop body
LE: loop exit
PB: predicated region body
PF: predicated region fallthrough
CT: control target
= control target key end

     0   :  { %6 = vsyncpa [#allocation3], 0  ;;  %s12217_s0 = inlined_call_operand.hbm [shape: f32[2,2,16,8,8,128], index: 0, kind: input, shape index: {}]   ;;  %s12218_s1 = inlined_call_operand.hbm [shape: f32[2,128,16,128], index: 1, kind: output, shape index: {}]  }
   0x1   :  { %8 = vsyncpa [#allocation3 + $0x1], 0 }
   0x2   :  { %9 = vsyncpa [#allocation4], 0 }
   0x3   :  { %11 = vsyncpa [#allocation4 + $0x1], 0  ;;  %s9968_s6 = smov 0   ;;  %s9970_s7 = smov 0  }
   0x4   :  { %s9972_s8 = smov 0   ;;  %s9974_s9 = smov 0  }
   0x5   :  { %s9976_s10 = smov 0   ;;  %s9978_s11 = smov 0  }
   0x6   :  { %s9980_s12 = smov 0   ;;  %s9982_s13 = smov 0  }
   0x7 LB: > { %s9096_s14 = sadd.s32 4294967295, %s9948_s13   ;;  %s9097_s15 = sadd.s32 4294967294, %s9948_s13   ;;  %s9948_s13 = sphi %s9982_s13, %s17_s13   ;;  %s9944_s12 = sphi %s9980_s12, %s12233_s12   ;;  %s9940_s11 = sphi %s9978_s11, %s12232_s11   ;;  %s9936_s10 = sphi %s9976_s10, %s12231_s10   ;;  %s9932_s9 = sphi %s9974_s9, %s12230_s9   ;;  %s9928_s8 = sphi %s9972_s8, %s12229_s8   ;;  %s9924_s7 = sphi %s9970_s7, %s12228_s7   ;;  %s9920_s6 = sphi %s9968_s6, %s12227_s6  }
   0x8   : > { %s26_s16 = sadd.s32 1, %s9940_s11  ;;  %s29_s17 = sadd.s32 1, %s9944_s12 }
   0x9   : > { %p27_p0 = scmp.ge.s32.totalorder %s26_s16, 2  ;;  %s38_s18 = sadd.s32 1, %s9928_s8 }
   0xa   : > { %p45_p1 = scmp.ne.s32.totalorder %s9928_s8, %s9924_s7  ;;  %p46_p2 = scmp.eq.s32.totalorder %s9948_s13, 0 }
   0xb   : > { %s12235_s16 = smov (%p27_p0, %s26_s16), 0  ;;  %s12237_s17 = smov (!%p27_p0, %s29_s17), %s9944_s12 }
   0xc   : > { %s34_s19 = ssub.s32 %s9940_s11, %s12235_s16  ;;  %p10021_p3 = por %p46_p2, %p45_p1 }
   0xd   : > { %p31_p4 = scmp.ge.s32.totalorder %s12237_s17, 2  ;;  %p51_p5 = scmp.ne.s32.totalorder %s9924_s7, %s9920_s6 }
   0xe   : > { %p52_p6 = scmp.eq.s32.totalorder %s9096_s14, 0  ;;  %p77_p7 = scmp.eq.s32.totalorder %s9096_s14, 3 }
   0xf   : > { %s12239_s17 = smov (%p31_p4, %s12237_s17), 0  ;;  %p83_p10 = scmp.eq.s32.totalorder %s9097_s15, 3 }
  0x10   : > { %p10029_p8 = por %p52_p6, %p51_p5  ;;  %p10033_p9 = por %p77_p7, %p45_p1 }
  0x11   : > { %s33_s23 = ssub.s32 %s9944_s12, %s12239_s17  ;;  %p10039_p12 = por %p83_p10, %p51_p5 }
  0x12   : > { %s12222_s22 = scalar_select %p10033_p9, 1, 0 }
  0x13   : > { %s35_s24 = sor.u32 %s34_s19, %s33_s23  ;;  %p9748_p13 = scmp.lt.s32.totalorder %s9948_s13, 4 }
  0x14   : > { %p36_p11 = scmp.eq.s32.totalorder %s35_s24, 0  ;;  %s103_s26 = sand.u32 1, %s9928_s8  }
  0x15   : > { %s12223_s25 = scalar_select %p10039_p12, 1, 0 }
  0x16   : > { %s10046_s27 = scalar_select %p36_p11, %s9928_s8, %s38_s18  }
  0x17   : > { %s9100_s28 = sshll.u32 %s103_s26, 10  ;;  %s9101_s29 = sshll.u32 %s9940_s11, 7 }
  0x18   : > { %s9102_s30 = sshll.u32 %s9944_s12, 8  ;;  %s107_s2 = scalar_lea.vmem [#allocation2], %s9100_s28 }
  0x19   : > { %s116_s3 = sshll.u32 %s107_s2, 4  ;;  %s113_s4 = sadd.s32 %s9102_s30, %s9101_s29  ;;  %s10050_s3 = int_to_ptr.vmem [resolvable:$true] %s116_s3 }
  0x1a   : > { %s9103_s5 = sshll.u32 %s113_s4, 7  ;;  %p10054_p0 = pnand %p9748_p13, %p10021_p3 }
  0x1b   : > { %s10061_s18 = scalar_lea.hbm %s12217_s0, %s9103_s5  ;;  %s10063_s23 = scalar_lea.sflag [#allocation3], %s103_s26 }
  0x1c   : > { %s9820_s24 = scalar_lea.hbm %s10061_s18, 16384  ;;  %p9822_p2 = pneg %p10054_p0 }
  0x1d   : > { %p9821_p1 = scmp.ne.s32.totalorder %s10061_s18, %s9820_s24  ;;  %s9825_s29 = scalar_lea.hbm %s12217_s0, 65536 }
  0x1e   : > { %p9826_p5 = scmp.lt.u32.totalorder %s10061_s18, %s12217_s0  ;;  %p9827_p6 = scmp.lt.u32.totalorder %s9825_s29, %s9820_s24 }
  0x1f   : > { %p9823_p3 = pnand %p9822_p2, %p9821_p1  ;;  %p9829_p10 = scmp.lt.u32.totalorder %s9820_s24, %s10061_s18 }
  0x20   : > { %p9828_p7 = por %p9827_p6, %p9826_p5 }
  0x21   : > { %p9824_p4 = pneg %p9823_p3 }
  0x22   : > { %p9830_p11 = por %p9829_p10, %p9828_p7 }
  0x24   : > { %p9831_p13 = pnand %p9830_p11, %p9824_p4 }
  0x26   : > { %9834 = shalt.err (!%p9831_p13)
}
  0x27   : > { %s9835_s26 = scalar_lea.vmem %s10050_s3, 16384  ;;  %s9950_s4 = smov [#allocation2]  }
  0x28   : > { %p9836_p1 = scmp.ne.s32.totalorder %s10050_s3, %s9835_s26  ;;  %s9840_s5 = sshll.u32 %s9950_s4, 4  ;;  %s9841_s5 = int_to_ptr.vmem [resolvable:$false] %s9840_s5 }
  0x29   : > { %s9842_s15 = scalar_lea.vmem %s9841_s5, 32768  ;;  %p9843_p9 = scmp.lt.s32.totalorder %s10050_s3, %s9841_s5 }
  0x2a   : > { %p9838_p3 = pnand %p9836_p1, %p9822_p2  ;;  %p9844_p5 = scmp.lt.s32.totalorder %s9842_s15, %s9835_s26 }
  0x2c   : > { %p9839_p12 = pneg %p9838_p3  ;;  %p9845_p6 = por %p9844_p5, %p9843_p9 }
  0x2e   : > { %p9846_p7 = pnand %p9845_p6, %p9839_p12 }
  0x30   : > { %9849 = shalt.err (!%p9846_p7)
}
  0x31   : > { %s9951_s19 = smov 128   ;;  %s9952_s24 = smov 8  }
  0x32   : > { %9743 = dma.hbm_to_vmem [thread:$0]  (!%p10054_p0), %s10061_s18, 16384, %s10050_s3, %s10063_s23, %s9951_s19, %s9951_s19, %s9952_s24  }
  0x33   : > { %p9104_p2 = scmp.ge.s32.totalorder %s9948_s13, 1  ;;  %p124_p4 = scmp.lt.s32.totalorder %s9948_s13, 5 }
  0x35   : > { %p125_p10 = pnand %p9104_p2, %p124_p4 }
  0x36   : > { %s10094_s20 = sand.u32 (!%p125_p10), 1, %s9924_s7  }
  0x37   : > { %128 = sbr.rel (%p125_p10) target bundleno = 750 (0x2ee), region = 24  ;;  %s9105_s28 = sshll.u32 (!%p125_p10), %s10094_s20, 10 }
  0x38   : > { %s131_s29 = scalar_lea.sflag (!%p125_p10), [#allocation3], %s10094_s20  ;;  %s10100_s30 = scalar_lea.vmem (!%p125_p10), [#allocation2], %s9105_s28 }
  0x3e   : > { %9911 = dma.done.wait (%p10029_p8), %s131_s29, 16384  }
  0x3f   : > { %9913 = vsyncadd (%p10029_p8), %s131_s29, 4294950912  ;;  %v9171_v0 = vld [vmem:[%s10100_s30 + $0x8] sm:$0xff]  ;;  %v153_v1 = vld [vmem:[%s10100_s30] sm:$0xff]  ;;  %v9953_v62 = vmov 1966171168   ;;  %s10182_s21 = scalar_lea.vmem [#allocation5], %s9105_s28 }
  0x40   : > { %1274 = vxpose.xlu1.b32.start [1/16] %v9171_v0, 128  ;;  %169 = vxpose.xlu0.b32.start [1/16] %v153_v1, 128  ;;  %v9172_v2 = vld [vmem:[%s10100_s30 + $0x48] sm:$0xff]  ;;  %v154_v3 = vld [vmem:[%s10100_s30 + $0x40] sm:$0xff]  ;;  %v9331_v32 = vld [vmem:[%s10100_s30 + $0x18] sm:$0xff]  ;;  %v219_v63 = vunpack.c.l.s4 %v9953_v62  ;;  %v221_v0 = vlaneseq  ;;  %s9732_s3 = sshll.u32 %s9936_s10, 8  ;;  %s9007_s14 = sshll.u32 %s10182_s21, 4  ;;  %s12160_s14 = int_to_ptr.vmem [resolvable:$true] %s9007_s14 }
  0x41   : > { %v9173_v4 = vld [vmem:[%s10100_s30 + $0x88] sm:$0xff]  ;;  %v155_v5 = vld [vmem:[%s10100_s30 + $0x80] sm:$0xff]  ;;  %v9251_v33 = vld [vmem:[%s10100_s30 + $0x10] sm:$0xff]  ;;  %s12130_s10 = sadd.s32 %s9932_s9, %s9732_s3  ;;  %s8993_s26 = scalar_lea.sflag [#allocation4], %s10094_s20 }
  0x42   : > { %v9174_v6 = vld [vmem:[%s10100_s30 + $0xc8] sm:$0xff]  ;;  %v156_v7 = vld [vmem:[%s10100_s30 + $0xc0] sm:$0xff]  ;;  %v9332_v34 = vld [vmem:[%s10100_s30 + $0x58] sm:$0xff]  ;;  %s9733_s9 = sshll.u32 %s12130_s10, 7  ;;  %s9850_s4 = scalar_lea.vmem %s12160_s14, 16384 }
  0x43   : > { %v9175_v8 = vld [vmem:[%s10100_s30 + $0x108] sm:$0xff]  ;;  %v157_v9 = vld [vmem:[%s10100_s30 + $0x100] sm:$0xff]  ;;  %v9252_v35 = vld [vmem:[%s10100_s30 + $0x50] sm:$0xff]  ;;  %s12158_s2 = scalar_lea.hbm %s12218_s1, %s9733_s9  ;;  %p9851_p8 = scmp.ne.s32.totalorder %s12160_s14, %s9850_s4 }
  0x44   : > { %1275 = vxpose.xlu1.b32.cont [2/16] %v9172_v2, 128  ;;  %170 = vxpose.xlu0.b32.cont [2/16] %v154_v3, 128  ;;  %v9176_v10 = vld [vmem:[%s10100_s30 + $0x148] sm:$0xff]  ;;  %v158_v11 = vld [vmem:[%s10100_s30 + $0x140] sm:$0xff]  ;;  %v9333_v36 = vld [vmem:[%s10100_s30 + $0x98] sm:$0xff]  ;;  %v220_v3 = vunpack.c.0.s8 %v219_v63  ;;  %p12225_p9 = scmp.ne.s32.totalorder %s12222_s22, 0  ;;  %s9954_s5 = smov [#allocation5]  }
  0x45   : > { %v9177_v12 = vld [vmem:[%s10100_s30 + $0x188] sm:$0xff]  ;;  %v159_v13 = vld [vmem:[%s10100_s30 + $0x180] sm:$0xff]  ;;  %v9253_v37 = vld [vmem:[%s10100_s30 + $0x90] sm:$0xff]  ;;  %s9854_s15 = sshll.u32 %s9954_s5, 4  ;;  %s9855_s15 = int_to_ptr.vmem [resolvable:$false] %s9854_s15 }
  0x46   : > { %v9178_v14 = vld [vmem:[%s10100_s30 + $0x1c8] sm:$0xff]  ;;  %v160_v15 = vld [vmem:[%s10100_s30 + $0x1c0] sm:$0xff]  ;;  %v9334_v38 = vld [vmem:[%s10100_s30 + $0xd8] sm:$0xff]  ;;  %p9852_p12 = pnand %p9851_p8, %p12225_p9  ;;  %s9856_s19 = scalar_lea.vmem %s9855_s15, 32768 }
  0x47   : > { %v9179_v16 = vld [vmem:[%s10100_s30 + $0x208] sm:$0xff]  ;;  %v161_v17 = vld [vmem:[%s10100_s30 + $0x200] sm:$0xff]  ;;  %v9254_v39 = vld [vmem:[%s10100_s30 + $0xd0] sm:$0xff]  ;;  %p9857_p11 = scmp.lt.s32.totalorder %s12160_s14, %s9855_s15  ;;  %p9858_p13 = scmp.lt.s32.totalorder %s9856_s19, %s9850_s4 }
  0x48   : > { %1276 = vxpose.xlu1.b32.cont [3/16] %v9173_v4, 128  ;;  %171 = vxpose.xlu0.b32.cont [3/16] %v155_v5, 128  ;;  %v9180_v18 = vld [vmem:[%s10100_s30 + $0x248] sm:$0xff]  ;;  %v162_v19 = vld [vmem:[%s10100_s30 + $0x240] sm:$0xff]  ;;  %v9335_v40 = vld [vmem:[%s10100_s30 + $0x118] sm:$0xff]  ;;  %v222_v4 = vshrl.u32 %v221_v0, 7  ;;  %p9853_p0 = pneg %p9852_p12 }
  0x49   : > { %v9181_v20 = vld [vmem:[%s10100_s30 + $0x288] sm:$0xff]  ;;  %v163_v21 = vld [vmem:[%s10100_s30 + $0x280] sm:$0xff]  ;;  %v9255_v41 = vld [vmem:[%s10100_s30 + $0x110] sm:$0xff]  ;;  %p9859_p1 = por %p9858_p13, %p9857_p11 }
  0x4a   : > { %v9182_v22 = vld [vmem:[%s10100_s30 + $0x2c8] sm:$0xff]  ;;  %v164_v23 = vld [vmem:[%s10100_s30 + $0x2c0] sm:$0xff]  ;;  %v9336_v42 = vld [vmem:[%s10100_s30 + $0x158] sm:$0xff] }
  0x4b   : > { %v9183_v24 = vld [vmem:[%s10100_s30 + $0x308] sm:$0xff]  ;;  %v165_v25 = vld [vmem:[%s10100_s30 + $0x300] sm:$0xff]  ;;  %v9256_v43 = vld [vmem:[%s10100_s30 + $0x150] sm:$0xff]  ;;  %p9860_p3 = pnand %p9859_p1, %p9853_p0 }
  0x4c   : > { %1277 = vxpose.xlu1.b32.cont [4/16] %v9174_v6, 128  ;;  %172 = vxpose.xlu0.b32.cont [4/16] %v156_v7, 128  ;;  %v9184_v26 = vld [vmem:[%s10100_s30 + $0x348] sm:$0xff]  ;;  %v166_v27 = vld [vmem:[%s10100_s30 + $0x340] sm:$0xff]  ;;  %v9337_v44 = vld [vmem:[%s10100_s30 + $0x198] sm:$0xff]  ;;  %v10171_v6 = vsub.s32 %v220_v3, %v222_v4 }
  0x4d   : > { %v9185_v28 = vld [vmem:[%s10100_s30 + $0x388] sm:$0xff]  ;;  %v167_v29 = vld [vmem:[%s10100_s30 + $0x380] sm:$0xff]  ;;  %v9257_v45 = vld [vmem:[%s10100_s30 + $0x190] sm:$0xff] }
  0x4e   : > { %v9186_v30 = vld [vmem:[%s10100_s30 + $0x3c8] sm:$0xff]  ;;  %v168_v31 = vld [vmem:[%s10100_s30 + $0x3c0] sm:$0xff]  ;;  %v9338_v46 = vld [vmem:[%s10100_s30 + $0x1d8] sm:$0xff] }
  0x4f   : > { %v9258_v47 = vld [vmem:[%s10100_s30 + $0x1d0] sm:$0xff]  ;;  %v9339_v48 = vld [vmem:[%s10100_s30 + $0x218] sm:$0xff]  ;;  %v9491_v5 = vld [vmem:[%s10100_s30 + $0x28] sm:$0xff] }
  0x50   : > { %1278 = vxpose.xlu1.b32.cont [5/16] %v9175_v8, 128  ;;  %173 = vxpose.xlu0.b32.cont [5/16] %v157_v9, 128  ;;  %v9259_v49 = vld [vmem:[%s10100_s30 + $0x210] sm:$0xff]  ;;  %v9340_v50 = vld [vmem:[%s10100_s30 + $0x258] sm:$0xff]  ;;  %v9411_v7 = vld [vmem:[%s10100_s30 + $0x20] sm:$0xff] }
  0x51   : > { %v9260_v51 = vld [vmem:[%s10100_s30 + $0x250] sm:$0xff]  ;;  %v9341_v52 = vld [vmem:[%s10100_s30 + $0x298] sm:$0xff]  ;;  %v9495_v4 = vld [vmem:[%s10100_s30 + $0x128] sm:$0xff] }
  0x52   : > { %v9261_v53 = vld [vmem:[%s10100_s30 + $0x290] sm:$0xff]  ;;  %v9342_v54 = vld [vmem:[%s10100_s30 + $0x2d8] sm:$0xff] }
  0x53   : > { %v9262_v55 = vld [vmem:[%s10100_s30 + $0x2d0] sm:$0xff]  ;;  %v9343_v56 = vld [vmem:[%s10100_s30 + $0x318] sm:$0xff] }
  0x54   : > { %1279 = vxpose.xlu1.b32.cont [6/16] %v9176_v10, 128  ;;  %174 = vxpose.xlu0.b32.cont [6/16] %v158_v11, 128  ;;  %v9263_v57 = vld [vmem:[%s10100_s30 + $0x310] sm:$0xff]  ;;  %v9344_v58 = vld [vmem:[%s10100_s30 + $0x358] sm:$0xff] }
  0x55   : > { %v9264_v59 = vld [vmem:[%s10100_s30 + $0x350] sm:$0xff]  ;;  %v9345_v60 = vld [vmem:[%s10100_s30 + $0x398] sm:$0xff] }
  0x56   : > { %v9265_v61 = vld [vmem:[%s10100_s30 + $0x390] sm:$0xff]  ;;  %v9346_v1 = vld [vmem:[%s10100_s30 + $0x3d8] sm:$0xff] }
  0x57   : > { %v9266_v2 = vld [vmem:[%s10100_s30 + $0x3d0] sm:$0xff] }
  0x58   : > { %1280 = vxpose.xlu1.b32.cont [7/16] %v9177_v12, 128  ;;  %175 = vxpose.xlu0.b32.cont [7/16] %v159_v13, 128 }
  0x5c   : > { %1281 = vxpose.xlu1.b32.cont [8/16] %v9178_v14, 128  ;;  %176 = vxpose.xlu0.b32.cont [8/16] %v160_v15, 128  ;;  %v9492_v14 = vld [vmem:[%s10100_s30 + $0x68] sm:$0xff]  ;;  %v9412_v15 = vld [vmem:[%s10100_s30 + $0x60] sm:$0xff] }
  0x60   : > { %1282 = vxpose.xlu1.b32.cont [9/16] %v9179_v16, 128  ;;  %177 = vxpose.xlu0.b32.cont [9/16] %v161_v17, 128 }
  0x64   : > { %1283 = vxpose.xlu1.b32.cont [10/16] %v9180_v18, 128  ;;  %178 = vxpose.xlu0.b32.cont [10/16] %v162_v19, 128 }
  0x68   : > { %1284 = vxpose.xlu1.b32.cont [11/16] %v9181_v20, 128  ;;  %179 = vxpose.xlu0.b32.cont [11/16] %v163_v21, 128 }
  0x6c   : > { %1285 = vxpose.xlu1.b32.cont [12/16] %v9182_v22, 128  ;;  %180 = vxpose.xlu0.b32.cont [12/16] %v164_v23, 128 }
  0x70   : > { %1286 = vxpose.xlu1.b32.cont [13/16] %v9183_v24, 128  ;;  %181 = vxpose.xlu0.b32.cont [13/16] %v165_v25, 128 }
  0x74   : > { %1287 = vxpose.xlu1.b32.cont [14/16] %v9184_v26, 128  ;;  %182 = vxpose.xlu0.b32.cont [14/16] %v166_v27, 128 }
  0x78   : > { %1288 = vxpose.xlu1.b32.cont [15/16] %v9185_v28, 128  ;;  %183 = vxpose.xlu0.b32.cont [15/16] %v167_v29, 128  ;;  %v9493_v28 = vld [vmem:[%s10100_s30 + $0xa8] sm:$0xff] }
  0x7c   : > { %1289 = vxpose.xlu1.b32.end [16/16] %v9186_v30, 128  ;;  %184 = vxpose.xlu0.b32.end [16/16] %v168_v31, 128 }
  0x80   : > { %3484 = vxpose.xlu1.b32.start [1/16] %v9331_v32, 128  ;;  %2379 = vxpose.xlu0.b32.start [1/16] %v9251_v33, 128  ;;  %v9413_v33 = vld [vmem:[%s10100_s30 + $0xa0] sm:$0xff] }
  0x84   : > { %3485 = vxpose.xlu1.b32.cont [2/16] %v9332_v34, 128  ;;  %2380 = vxpose.xlu0.b32.cont [2/16] %v9252_v35, 128 }
  0x88   : > { %3486 = vxpose.xlu1.b32.cont [3/16] %v9333_v36, 128  ;;  %2381 = vxpose.xlu0.b32.cont [3/16] %v9253_v37, 128 }
  0x8c   : > { %3487 = vxpose.xlu1.b32.cont [4/16] %v9334_v38, 128  ;;  %2382 = vxpose.xlu0.b32.cont [4/16] %v9254_v39, 128 }
  0x90   : > { %3488 = vxpose.xlu1.b32.cont [5/16] %v9335_v40, 128  ;;  %2383 = vxpose.xlu0.b32.cont [5/16] %v9255_v41, 128 }
  0x94   : > { %3489 = vxpose.xlu1.b32.cont [6/16] %v9336_v42, 128  ;;  %2384 = vxpose.xlu0.b32.cont [6/16] %v9256_v43, 128 }
  0x98   : > { %3490 = vxpose.xlu1.b32.cont [7/16] %v9337_v44, 128  ;;  %2385 = vxpose.xlu0.b32.cont [7/16] %v9257_v45, 128 }
  0x9c   : > { %3491 = vxpose.xlu1.b32.cont [8/16] %v9338_v46, 128  ;;  %2386 = vxpose.xlu0.b32.cont [8/16] %v9258_v47, 128 }
  0xa0   : > { %3492 = vxpose.xlu1.b32.cont [9/16] %v9339_v48, 128  ;;  %2387 = vxpose.xlu0.b32.cont [9/16] %v9259_v49, 128  ;;  %v9494_v48 = vld [vmem:[%s10100_s30 + $0xe8] sm:$0xff] }
  0xa4   : > { %3493 = vxpose.xlu1.b32.cont [10/16] %v9340_v50, 128  ;;  %2388 = vxpose.xlu0.b32.cont [10/16] %v9260_v51, 128 }
  0xa8   : > { %3494 = vxpose.xlu1.b32.cont [11/16] %v9341_v52, 128  ;;  %2389 = vxpose.xlu0.b32.cont [11/16] %v9261_v53, 128  ;;  %v9414_v53 = vld [vmem:[%s10100_s30 + $0xe0] sm:$0xff] }
  0xac   : > { %3495 = vxpose.xlu1.b32.cont [12/16] %v9342_v54, 128  ;;  %2390 = vxpose.xlu0.b32.cont [12/16] %v9262_v55, 128 }
  0xb0   : > { %3496 = vxpose.xlu1.b32.cont [13/16] %v9343_v56, 128  ;;  %2391 = vxpose.xlu0.b32.cont [13/16] %v9263_v57, 128 }
  0xb4   : > { %3497 = vxpose.xlu1.b32.cont [14/16] %v9344_v58, 128  ;;  %2392 = vxpose.xlu0.b32.cont [14/16] %v9264_v59, 128 }
  0xb8   : > { %3498 = vxpose.xlu1.b32.cont [15/16] %v9345_v60, 128  ;;  %2393 = vxpose.xlu0.b32.cont [15/16] %v9265_v61, 128 }
  0xbc   : > { %3499 = vxpose.xlu1.b32.end [16/16] %v9346_v1, 128  ;;  %2394 = vxpose.xlu0.b32.end [16/16] %v9266_v2, 128 }
  0xc0   : > { %5694 = vxpose.xlu1.b32.start [1/16] %v9491_v5, 128  ;;  %v1290_v8 = vpop.trf.xlu1  ;;  %4589 = vxpose.xlu0.b32.start [1/16] %v9411_v7, 128  ;;  %v185_v9 = vpop.trf.xlu0 }
  0xc1   : > { %v1322_v10 = vcombine.high %v1290_v8, %v1290_v8  ;;  %v1329_v11 = vrot.slane %v1290_v8, %v10171_v6  ;;  %v217_v12 = vcombine.high %v185_v9, %v185_v9  ;;  %v224_v13 = vrot.slane %v185_v9, %v10171_v6 }
  0xc3   : > { %v1336_v16 = vrot.slane %v1322_v10, %v10171_v6  ;;  %v1337_v17 = vcombine.high %v1329_v11, %v1329_v11  ;;  %v1345_v18 = vrot.slane %v1329_v11, %v10171_v6  ;;  %9187 = vst.sshfl [vmem:[%s10182_s21 + $0x1] sm:$0x1 pattern:$0x73625140] %v1329_v11  ;;  %v231_v19 = vrot.slane %v217_v12, %v10171_v6  ;;  %v9415_v10 = vld [vmem:[%s10100_s30 + $0x120] sm:$0xff] }
  0xc4   : > { %9107 = vst.sshfl [vmem:[%s10182_s21] sm:$0x1 pattern:$0x73625140] %v224_v13  ;;  %v232_v20 = vcombine.high %v224_v13, %v224_v13  ;;  %v240_v21 = vrot.slane %v224_v13, %v10171_v6  ;;  %5695 = vxpose.xlu1.b32.cont [2/16] %v9492_v14, 128  ;;  %v1291_v22 = vpop.trf.xlu1  ;;  %4590 = vxpose.xlu0.b32.cont [2/16] %v9412_v15, 128  ;;  %v186_v23 = vpop.trf.xlu0 }
  0xc5   : > { %v1338_v24 = vcombine.high %v1336_v16, %v1336_v16  ;;  %v1352_v25 = vrot.slane %v1336_v16, %v10171_v6  ;;  %v1359_v26 = vrot.slane %v1337_v17, %v10171_v6  ;;  %v1367_v27 = vcombine.high %v1345_v18, %v1345_v18  ;;  %9188 = vst.sshfl [vmem:[%s10182_s21 + $0x9] sm:$0x1 pattern:$0x73625140] %v1337_v17 }
  0xc6   : > { %9189 = vst.sshfl [vmem:[%s10182_s21 + $0x21] sm:$0x1 pattern:$0x73625140] %v1336_v16  ;;  %v233_v29 = vcombine.high %v231_v19, %v231_v19  ;;  %v247_v30 = vrot.slane %v231_v19, %v10171_v6  ;;  %v254_v31 = vrot.slane %v232_v20, %v10171_v6  ;;  %v262_v32 = vcombine.high %v240_v21, %v240_v21 }
  0xc7   : > { %9109 = vst.sshfl [vmem:[%s10182_s21 + $0x20] sm:$0x1 pattern:$0x73625140] %v231_v19  ;;  %v1366_v34 = vrot.slane %v1338_v24, %v10171_v6  ;;  %v1368_v35 = vcombine.high %v1352_v25, %v1352_v25  ;;  %v1369_v36 = vcombine.high %v1359_v26, %v1359_v26  ;;  %2236 = vst [vmem:[%s10182_s21 + $0x11] sm:$0x1] %v1367_v27 }
  0xc8   : > { %9108 = vst.sshfl [vmem:[%s10182_s21 + $0x8] sm:$0x1 pattern:$0x73625140] %v232_v20  ;;  %v1371_v37 = vcombine.high %v1291_v22, %v1291_v22  ;;  %v261_v38 = vrot.slane %v233_v29, %v10171_v6  ;;  %v263_v39 = vcombine.high %v247_v30, %v247_v30  ;;  %v264_v40 = vcombine.high %v254_v31, %v254_v31  ;;  %v1292_v42 = vpop.trf.xlu1  ;;  %v10205_v43 = vpop.trf.xlu0  ;;  %v9496_v25 = vld [vmem:[%s10100_s30 + $0x168] sm:$0xff]  ;;  %v9416_v30 = vld [vmem:[%s10100_s30 + $0x160] sm:$0xff] }
  0xc9   : > { %9190 = vst.sshfl [vmem:[%s10182_s21 + $0x29] sm:$0x1 pattern:$0x73625140] %v1338_v24  ;;  %1131 = vst [vmem:[%s10182_s21 + $0x10] sm:$0x1] %v262_v32  ;;  %v1378_v41 = vrot.slane %v1291_v22, %v10171_v6  ;;  %5696 = vxpose.xlu1.b32.cont [3/16] %v9493_v28, 128  ;;  %v1370_v44 = vcombine.high %v1366_v34, %v1366_v34  ;;  %v266_v46 = vcombine.high %v186_v23, %v186_v23 }
  0xca   : > { %9110 = vst.sshfl [vmem:[%s10182_s21 + $0x28] sm:$0x1 pattern:$0x73625140] %v233_v29  ;;  %2237 = vst [vmem:[%s10182_s21 + $0x19] sm:$0x1] %v1369_v36  ;;  %v1385_v45 = vrot.slane %v1371_v37, %v10171_v6  ;;  %v273_v47 = vrot.slane %v186_v23, %v10171_v6  ;;  %4591 = vxpose.xlu0.b32.cont [3/16] %v9413_v33, 128  ;;  %v265_v49 = vcombine.high %v261_v38, %v261_v38 }
  0xcb   : > { %2240 = vst [vmem:[%s10182_s21 + $0x31] sm:$0x1] %v1368_v35  ;;  %1132 = vst [vmem:[%s10182_s21 + $0x18] sm:$0x1] %v264_v40  ;;  %v1386_v50 = vcombine.high %v1378_v41, %v1378_v41  ;;  %v1394_v51 = vrot.slane %v1378_v41, %v10171_v6  ;;  %v1420_v52 = vcombine.high %v1292_v42, %v1292_v42 }
  0xcc   : > { %1135 = vst [vmem:[%s10182_s21 + $0x30] sm:$0x1] %v263_v39  ;;  %9191 = vst.sshfl [vmem:[%s10182_s21 + $0x41] sm:$0x1 pattern:$0x73625140] %v1378_v41  ;;  %v1387_v54 = vcombine.high %v1385_v45, %v1385_v45  ;;  %v1401_v55 = vrot.slane %v1385_v45, %v10171_v6  ;;  %v280_v56 = vrot.slane %v266_v46, %v10171_v6  ;;  %v1293_v62 = vpop.trf.xlu1  ;;  %v10227_v63 = vpop.trf.xlu0 }
  0xcd   : > { %2241 = vst [vmem:[%s10182_s21 + $0x39] sm:$0x1] %v1370_v44  ;;  %9193 = vst.sshfl [vmem:[%s10182_s21 + $0x61] sm:$0x1 pattern:$0x73625140] %v1385_v45  ;;  %v281_v57 = vcombine.high %v273_v47, %v273_v47  ;;  %v1408_v58 = vrot.slane %v1386_v50, %v10171_v6  ;;  %v1416_v59 = vcombine.high %v1394_v51, %v1394_v51  ;;  %5697 = vxpose.xlu1.b32.cont [4/16] %v9494_v48, 128 }
  0xce   : > { %9111 = vst.sshfl [vmem:[%s10182_s21 + $0x40] sm:$0x1 pattern:$0x73625140] %v273_v47  ;;  %1136 = vst [vmem:[%s10182_s21 + $0x38] sm:$0x1] %v265_v49  ;;  %v289_v60 = vrot.slane %v273_v47, %v10171_v6  ;;  %v1427_v61 = vrot.slane %v1292_v42, %v10171_v6  ;;  %v1415_v0 = vrot.slane %v1387_v54, %v10171_v6  ;;  %4592 = vxpose.xlu0.b32.cont [4/16] %v9414_v53, 128 }
  0xcf   : > { %9192 = vst.sshfl [vmem:[%s10182_s21 + $0x49] sm:$0x1 pattern:$0x73625140] %v1386_v50  ;;  %v1417_v1 = vcombine.high %v1401_v55, %v1401_v55  ;;  %v282_v2 = vcombine.high %v280_v56, %v280_v56  ;;  %v296_v3 = vrot.slane %v280_v56, %v10171_v6  ;;  %v1418_v5 = vcombine.high %v1408_v58, %v1408_v58  ;;  %v9497_v45 = vld [vmem:[%s10100_s30 + $0x1a8] sm:$0xff]  ;;  %v9417_v50 = vld [vmem:[%s10100_s30 + $0x1a0] sm:$0xff] }
  0xd0   : > { %9194 = vst.sshfl [vmem:[%s10182_s21 + $0x69] sm:$0x1 pattern:$0x73625140] %v1387_v54  ;;  %2244 = vst [vmem:[%s10182_s21 + $0x51] sm:$0x1] %v1416_v59  ;;  %v303_v7 = vrot.slane %v281_v57, %v10171_v6  ;;  %v311_v8 = vcombine.high %v289_v60, %v289_v60  ;;  %v1434_v9 = vrot.slane %v1420_v52, %v10171_v6  ;;  %v10248_v19 = vpop.trf.xlu1  ;;  %v10250_v20 = vpop.trf.xlu0 }
  0xd1   : > { %9112 = vst.sshfl [vmem:[%s10182_s21 + $0x48] sm:$0x1 pattern:$0x73625140] %v281_v57  ;;  %v1419_v11 = vcombine.high %v1415_v0, %v1415_v0  ;;  %2248 = vst [vmem:[%s10182_s21 + $0x71] sm:$0x1] %v1417_v1  ;;  %v310_v12 = vrot.slane %v282_v2, %v10171_v6  ;;  %v312_v13 = vcombine.high %v296_v3, %v296_v3  ;;  %5698 = vxpose.xlu1.b32.cont [5/16] %v9495_v4, 128 }
  0xd2   : > { %9113 = vst.sshfl [vmem:[%s10182_s21 + $0x60] sm:$0x1 pattern:$0x73625140] %v280_v56  ;;  %v1435_v14 = vcombine.high %v1427_v61, %v1427_v61  ;;  %2245 = vst [vmem:[%s10182_s21 + $0x59] sm:$0x1] %v1418_v5  ;;  %v313_v15 = vcombine.high %v303_v7, %v303_v7  ;;  %v1436_v16 = vcombine.high %v1434_v9, %v1434_v9  ;;  %4593 = vxpose.xlu0.b32.cont [5/16] %v9415_v10, 128 }
  0xd3   : > { %9195 = vst.sshfl [vmem:[%s10182_s21 + $0x81] sm:$0x1 pattern:$0x73625140] %v1427_v61  ;;  %1139 = vst [vmem:[%s10182_s21 + $0x50] sm:$0x1] %v311_v8  ;;  %v1443_v17 = vrot.slane %v1427_v61, %v10171_v6  ;;  %v1450_v18 = vrot.slane %v1434_v9, %v10171_v6  ;;  %v314_v21 = vcombine.high %v310_v12, %v310_v12 }
  0xd4   : > { %9114 = vst.sshfl [vmem:[%s10182_s21 + $0x68] sm:$0x1 pattern:$0x73625140] %v282_v2  ;;  %2249 = vst [vmem:[%s10182_s21 + $0x79] sm:$0x1] %v1419_v11  ;;  %v1457_v22 = vrot.slane %v1435_v14, %v10171_v6  ;;  %v315_v23 = vcombine.high %v10205_v43, %v10205_v43  ;;  %v322_v24 = vrot.slane %v10205_v43, %v10171_v6  ;;  %v10275_v39 = vpop.trf.xlu1  ;;  %v10277_v40 = vpop.trf.xlu0 }
  0xd5   : > { %9197 = vst.sshfl [vmem:[%s10182_s21 + $0xa1] sm:$0x1 pattern:$0x73625140] %v1434_v9  ;;  %1143 = vst [vmem:[%s10182_s21 + $0x70] sm:$0x1] %v312_v13  ;;  %v1464_v26 = vrot.slane %v1436_v16, %v10171_v6  ;;  %v1465_v27 = vcombine.high %v1443_v17, %v1443_v17  ;;  %v1466_v28 = vcombine.high %v1450_v18, %v1450_v18  ;;  %5699 = vxpose.xlu1.b32.cont [6/16] %v9496_v25, 128 }
  0xd6   : > { %9196 = vst.sshfl [vmem:[%s10182_s21 + $0x89] sm:$0x1 pattern:$0x73625140] %v1435_v14  ;;  %1140 = vst [vmem:[%s10182_s21 + $0x58] sm:$0x1] %v313_v15  ;;  %v1469_v29 = vcombine.high %v1293_v62, %v1293_v62  ;;  %v1467_v31 = vcombine.high %v1457_v22, %v1457_v22  ;;  %v329_v32 = vrot.slane %v315_v23, %v10171_v6  ;;  %4594 = vxpose.xlu0.b32.cont [6/16] %v9416_v30, 128 }
  0xd7   : > { %9198 = vst.sshfl [vmem:[%s10182_s21 + $0xa9] sm:$0x1 pattern:$0x73625140] %v1436_v16  ;;  %1144 = vst [vmem:[%s10182_s21 + $0x78] sm:$0x1] %v314_v21  ;;  %v330_v33 = vcombine.high %v322_v24, %v322_v24  ;;  %v338_v34 = vrot.slane %v322_v24, %v10171_v6  ;;  %v1468_v35 = vcombine.high %v1464_v26, %v1464_v26 }
  0xd8   : > { %9115 = vst.sshfl [vmem:[%s10182_s21 + $0x80] sm:$0x1 pattern:$0x73625140] %v322_v24  ;;  %2252 = vst [vmem:[%s10182_s21 + $0x91] sm:$0x1] %v1465_v27  ;;  %v1476_v36 = vrot.slane %v1293_v62, %v10171_v6  ;;  %v1483_v37 = vrot.slane %v1469_v29, %v10171_v6  ;;  %v364_v38 = vcombine.high %v10227_v63, %v10227_v63  ;;  %v10300_v59 = vpop.trf.xlu1  ;;  %v10302_v60 = vpop.trf.xlu0 }
  0xd9   : > { %2256 = vst [vmem:[%s10182_s21 + $0xb1] sm:$0x1] %v1466_v28  ;;  %2253 = vst [vmem:[%s10182_s21 + $0x99] sm:$0x1] %v1467_v31  ;;  %v331_v41 = vcombine.high %v329_v32, %v329_v32  ;;  %v345_v42 = vrot.slane %v329_v32, %v10171_v6  ;;  %v352_v43 = vrot.slane %v330_v33, %v10171_v6  ;;  %5700 = vxpose.xlu1.b32.cont [7/16] %v9497_v45, 128  ;;  %v9498_v1 = vld [vmem:[%s10100_s30 + $0x1e8] sm:$0xff]  ;;  %v9418_v7 = vld [vmem:[%s10100_s30 + $0x1e0] sm:$0xff] }
  0xda   : > { %v360_v44 = vcombine.high %v338_v34, %v338_v34  ;;  %9116 = vst.sshfl [vmem:[%s10182_s21 + $0x88] sm:$0x1 pattern:$0x73625140] %v330_v33  ;;  %2257 = vst [vmem:[%s10182_s21 + $0xb9] sm:$0x1] %v1468_v35  ;;  %v1484_v46 = vcombine.high %v1476_v36, %v1476_v36  ;;  %v1485_v47 = vcombine.high %v1483_v37, %v1483_v37  ;;  %4595 = vxpose.xlu0.b32.cont [7/16] %v9417_v50, 128 }
  0xdb   : > { %9117 = vst.sshfl [vmem:[%s10182_s21 + $0xa0] sm:$0x1 pattern:$0x73625140] %v329_v32  ;;  %v1492_v48 = vrot.slane %v1476_v36, %v10171_v6  ;;  %v1499_v49 = vrot.slane %v1483_v37, %v10171_v6  ;;  %v359_v51 = vrot.slane %v331_v41, %v10171_v6  ;;  %v361_v52 = vcombine.high %v345_v42, %v345_v42  ;;  %v9499_v23 = vld [vmem:[%s10100_s30 + $0x228] sm:$0xff]  ;;  %v9419_v28 = vld [vmem:[%s10100_s30 + $0x220] sm:$0xff] }
  0xdc   : > { %9199 = vst.sshfl [vmem:[%s10182_s21 + $0xc1] sm:$0x1 pattern:$0x73625140] %v1476_v36  ;;  %v362_v53 = vcombine.high %v352_v43, %v352_v43  ;;  %1147 = vst [vmem:[%s10182_s21 + $0x90] sm:$0x1] %v360_v44  ;;  %v371_v54 = vrot.slane %v10227_v63, %v10171_v6  ;;  %v1506_v55 = vrot.slane %v1484_v46, %v10171_v6  ;;  %v10329_v16 = vpop.trf.xlu1  ;;  %v10331_v17 = vpop.trf.xlu0 }
  0xdd   : > { %9201 = vst.sshfl [vmem:[%s10182_s21 + $0xe1] sm:$0x1 pattern:$0x73625140] %v1483_v37  ;;  %v1513_v56 = vrot.slane %v1485_v47, %v10171_v6  ;;  %v1514_v57 = vcombine.high %v1492_v48, %v1492_v48  ;;  %v1515_v58 = vcombine.high %v1499_v49, %v1499_v49  ;;  %v363_v61 = vcombine.high %v359_v51, %v359_v51  ;;  %v9500_v44 = vld [vmem:[%s10100_s30 + $0x268] sm:$0xff]  ;;  %v9420_v49 = vld [vmem:[%s10100_s30 + $0x260] sm:$0xff] }
  0xde   : > { %9118 = vst.sshfl [vmem:[%s10182_s21 + $0xa8] sm:$0x1 pattern:$0x73625140] %v331_v41  ;;  %1148 = vst [vmem:[%s10182_s21 + $0x98] sm:$0x1] %v362_v53  ;;  %v378_v62 = vrot.slane %v364_v38, %v10171_v6  ;;  %v379_v63 = vcombine.high %v371_v54, %v371_v54  ;;  %v387_v0 = vrot.slane %v371_v54, %v10171_v6  ;;  %5701 = vxpose.xlu1.b32.cont [8/16] %v9498_v1, 128 }
  0xdf   : > { %9200 = vst.sshfl [vmem:[%s10182_s21 + $0xc9] sm:$0x1 pattern:$0x73625140] %v1484_v46  ;;  %1151 = vst [vmem:[%s10182_s21 + $0xb0] sm:$0x1] %v361_v52  ;;  %v1516_v2 = vcombine.high %v1506_v55, %v1506_v55  ;;  %v1517_v3 = vcombine.high %v1513_v56, %v1513_v56  ;;  %v1518_v4 = vcombine.high %v10248_v19, %v10248_v19  ;;  %4596 = vxpose.xlu0.b32.cont [8/16] %v9418_v7, 128 }
  0xe0   : > { %9202 = vst.sshfl [vmem:[%s10182_s21 + $0xe9] sm:$0x1 pattern:$0x73625140] %v1485_v47  ;;  %2260 = vst [vmem:[%s10182_s21 + $0xd1] sm:$0x1] %v1514_v57  ;;  %v1525_v5 = vrot.slane %v10248_v19, %v10171_v6  ;;  %v380_v8 = vcombine.high %v378_v62, %v378_v62  ;;  %v394_v9 = vrot.slane %v378_v62, %v10171_v6  ;;  %v10354_v36 = vpop.trf.xlu1  ;;  %v10356_v37 = vpop.trf.xlu0 }
  0xe1   : > { %9119 = vst.sshfl [vmem:[%s10182_s21 + $0xc0] sm:$0x1 pattern:$0x73625140] %v371_v54  ;;  %2264 = vst [vmem:[%s10182_s21 + $0xf1] sm:$0x1] %v1515_v58  ;;  %v401_v10 = vrot.slane %v379_v63, %v10171_v6  ;;  %v409_v11 = vcombine.high %v387_v0, %v387_v0  ;;  %v1532_v12 = vrot.slane %v1518_v4, %v10171_v6 }
  0xe2   : > { %1152 = vst [vmem:[%s10182_s21 + $0xb8] sm:$0x1] %v363_v61  ;;  %9120 = vst.sshfl [vmem:[%s10182_s21 + $0xc8] sm:$0x1 pattern:$0x73625140] %v379_v63  ;;  %v1533_v13 = vcombine.high %v1525_v5, %v1525_v5  ;;  %v1541_v14 = vrot.slane %v1525_v5, %v10171_v6  ;;  %v413_v15 = vcombine.high %v10250_v20, %v10250_v20  ;;  %5702 = vxpose.xlu1.b32.cont [9/16] %v9499_v23, 128 }
  0xe3   : > { %9121 = vst.sshfl [vmem:[%s10182_s21 + $0xe0] sm:$0x1 pattern:$0x73625140] %v378_v62  ;;  %2261 = vst [vmem:[%s10182_s21 + $0xd9] sm:$0x1] %v1516_v2  ;;  %v408_v18 = vrot.slane %v380_v8, %v10171_v6  ;;  %v410_v19 = vcombine.high %v394_v9, %v394_v9  ;;  %v411_v21 = vcombine.high %v401_v10, %v401_v10  ;;  %4597 = vxpose.xlu0.b32.cont [9/16] %v9419_v28, 128 }
  0xe4   : > { %2265 = vst [vmem:[%s10182_s21 + $0xf9] sm:$0x1] %v1517_v3  ;;  %9203 = vst.sshfl [vmem:[%s10182_s21 + $0x101] sm:$0x1 pattern:$0x73625140] %v1525_v5  ;;  %v420_v22 = vrot.slane %v10250_v20, %v10171_v6  ;;  %v1534_v24 = vcombine.high %v1532_v12, %v1532_v12  ;;  %v1548_v25 = vrot.slane %v1532_v12, %v10171_v6  ;;  %v10382_v57 = vpop.trf.xlu1  ;;  %v10384_v58 = vpop.trf.xlu0 }
  0xe5   : > { %1155 = vst [vmem:[%s10182_s21 + $0xd0] sm:$0x1] %v409_v11  ;;  %9122 = vst.sshfl [vmem:[%s10182_s21 + $0xe8] sm:$0x1 pattern:$0x73625140] %v380_v8  ;;  %v1555_v26 = vrot.slane %v1533_v13, %v10171_v6  ;;  %v1563_v27 = vcombine.high %v1541_v14, %v1541_v14  ;;  %v412_v29 = vcombine.high %v408_v18, %v408_v18 }
  0xe6   : > { %9204 = vst.sshfl [vmem:[%s10182_s21 + $0x109] sm:$0x1 pattern:$0x73625140] %v1533_v13  ;;  %1156 = vst [vmem:[%s10182_s21 + $0xd8] sm:$0x1] %v411_v21  ;;  %v427_v20 = vrot.slane %v413_v15, %v10171_v6  ;;  %v428_v30 = vcombine.high %v420_v22, %v420_v22  ;;  %v436_v31 = vrot.slane %v420_v22, %v10171_v6  ;;  %5703 = vxpose.xlu1.b32.cont [10/16] %v9500_v44, 128 }
  0xe7   : > { %9205 = vst.sshfl [vmem:[%s10182_s21 + $0x121] sm:$0x1 pattern:$0x73625140] %v1532_v12  ;;  %1159 = vst [vmem:[%s10182_s21 + $0xf0] sm:$0x1] %v410_v19  ;;  %v1562_v32 = vrot.slane %v1534_v24, %v10171_v6  ;;  %v1564_v33 = vcombine.high %v1548_v25, %v1548_v25  ;;  %v1565_v34 = vcombine.high %v1555_v26, %v1555_v26  ;;  %4598 = vxpose.xlu0.b32.cont [10/16] %v9420_v49, 128 }
  0xe8   : > { %9123 = vst.sshfl [vmem:[%s10182_s21 + $0x100] sm:$0x1 pattern:$0x73625140] %v420_v22  ;;  %2268 = vst [vmem:[%s10182_s21 + $0x111] sm:$0x1] %v1563_v27  ;;  %v1567_v35 = vcombine.high %v10275_v39, %v10275_v39  ;;  %v429_v38 = vcombine.high %v427_v20, %v427_v20  ;;  %v443_v41 = vrot.slane %v427_v20, %v10171_v6  ;;  %v10408_v15 = vpop.trf.xlu1  ;;  %v10415_v23 = vpop.trf.xlu0 }
  0xe9   : > { %9206 = vst.sshfl [vmem:[%s10182_s21 + $0x129] sm:$0x1 pattern:$0x73625140] %v1534_v24  ;;  %1160 = vst [vmem:[%s10182_s21 + $0xf8] sm:$0x1] %v412_v29  ;;  %v450_v42 = vrot.slane %v428_v30, %v10171_v6  ;;  %v458_v43 = vcombine.high %v436_v31, %v436_v31  ;;  %v1566_v45 = vcombine.high %v1562_v32, %v1562_v32 }
  0xea   : > { %9124 = vst.sshfl [vmem:[%s10182_s21 + $0x108] sm:$0x1 pattern:$0x73625140] %v428_v30  ;;  %2269 = vst [vmem:[%s10182_s21 + $0x119] sm:$0x1] %v1565_v34  ;;  %v1574_v46 = vrot.slane %v10275_v39, %v10171_v6  ;;  %v1581_v47 = vrot.slane %v1567_v35, %v10171_v6  ;;  %v462_v48 = vcombine.high %v10277_v40, %v10277_v40 }
  0xeb   : > { %9125 = vst.sshfl [vmem:[%s10182_s21 + $0x120] sm:$0x1 pattern:$0x73625140] %v427_v20  ;;  %2272 = vst [vmem:[%s10182_s21 + $0x131] sm:$0x1] %v1564_v33  ;;  %v457_v50 = vrot.slane %v429_v38, %v10171_v6  ;;  %v459_v51 = vcombine.high %v443_v41, %v443_v41  ;;  %v460_v52 = vcombine.high %v450_v42, %v450_v42 }
  0xec   : > { %1163 = vst [vmem:[%s10182_s21 + $0x110] sm:$0x1] %v458_v43  ;;  %9126 = vst.sshfl [vmem:[%s10182_s21 + $0x128] sm:$0x1 pattern:$0x73625140] %v429_v38  ;;  %v469_v53 = vrot.slane %v10277_v40, %v10171_v6  ;;  %v1582_v39 = vcombine.high %v1574_v46, %v1574_v46  ;;  %v1583_v54 = vcombine.high %v1581_v47, %v1581_v47 }
  0xed   : > { %2273 = vst [vmem:[%s10182_s21 + $0x139] sm:$0x1] %v1566_v45  ;;  %v1590_v55 = vrot.slane %v1574_v46, %v10171_v6  ;;  %v1597_v56 = vrot.slane %v1581_v47, %v10171_v6  ;;  %9207 = vst.sshfl [vmem:[%s10182_s21 + $0x141] sm:$0x1 pattern:$0x73625140] %v1574_v46  ;;  %v461_v40 = vcombine.high %v457_v50, %v457_v50 }
  0xee   : > { %9209 = vst.sshfl [vmem:[%s10182_s21 + $0x161] sm:$0x1 pattern:$0x73625140] %v1581_v47  ;;  %1164 = vst [vmem:[%s10182_s21 + $0x118] sm:$0x1] %v460_v52  ;;  %v476_v61 = vrot.slane %v462_v48, %v10171_v6  ;;  %v477_v62 = vcombine.high %v469_v53, %v469_v53  ;;  %v485_v63 = vrot.slane %v469_v53, %v10171_v6  ;;  %v10448_v47 = vpop.trf.xlu1 }
  0xef   : > { %1167 = vst [vmem:[%s10182_s21 + $0x130] sm:$0x1] %v459_v51  ;;  %9127 = vst.sshfl [vmem:[%s10182_s21 + $0x140] sm:$0x1 pattern:$0x73625140] %v469_v53  ;;  %v1604_v1 = vrot.slane %v1582_v39, %v10171_v6  ;;  %v1611_v2 = vrot.slane %v1583_v54, %v10171_v6  ;;  %v1612_v3 = vcombine.high %v1590_v55, %v1590_v55  ;;  %v10455_v53 = vpop.trf.xlu0 }
  0xf0   : > { %v9501_v0 = vld [vmem:[%s10100_s30 + $0x2a8] sm:$0xff]  ;;  %v1613_v4 = vcombine.high %v1597_v56, %v1597_v56  ;;  %9208 = vst.sshfl [vmem:[%s10182_s21 + $0x149] sm:$0x1 pattern:$0x73625140] %v1582_v39  ;;  %v9421_v5 = vld [vmem:[%s10100_s30 + $0x2a0] sm:$0xff]  ;;  %v478_v7 = vcombine.high %v476_v61, %v476_v61  ;;  %v492_v8 = vrot.slane %v476_v61, %v10171_v6  ;;  %v499_v9 = vrot.slane %v477_v62, %v10171_v6 }
  0xf1   : > { %9210 = vst.sshfl [vmem:[%s10182_s21 + $0x169] sm:$0x1 pattern:$0x73625140] %v1583_v54  ;;  %1168 = vst [vmem:[%s10182_s21 + $0x138] sm:$0x1] %v461_v40  ;;  %v507_v10 = vcombine.high %v485_v63, %v485_v63  ;;  %v1614_v11 = vcombine.high %v1604_v1, %v1604_v1  ;;  %v1615_v12 = vcombine.high %v1611_v2, %v1611_v2  ;;  %5704 = vxpose.xlu1.b32.cont [11/16] %v9501_v0, 128 }
  0xf2   : > { %9128 = vst.sshfl [vmem:[%s10182_s21 + $0x148] sm:$0x1 pattern:$0x73625140] %v477_v62  ;;  %2276 = vst [vmem:[%s10182_s21 + $0x151] sm:$0x1] %v1612_v3  ;;  %v1616_v13 = vcombine.high %v10300_v59, %v10300_v59  ;;  %v1623_v14 = vrot.slane %v10300_v59, %v10171_v6  ;;  %v506_v18 = vrot.slane %v478_v7, %v10171_v6  ;;  %4599 = vxpose.xlu0.b32.cont [11/16] %v9421_v5, 128 }
  0xf3   : > { %9129 = vst.sshfl [vmem:[%s10182_s21 + $0x160] sm:$0x1 pattern:$0x73625140] %v476_v61  ;;  %2280 = vst [vmem:[%s10182_s21 + $0x171] sm:$0x1] %v1613_v4  ;;  %v508_v19 = vcombine.high %v492_v8, %v492_v8  ;;  %v509_v21 = vcombine.high %v499_v9, %v499_v9  ;;  %v511_v22 = vcombine.high %v10302_v60, %v10302_v60 }
  0xf4   : > { %1171 = vst [vmem:[%s10182_s21 + $0x150] sm:$0x1] %v507_v10  ;;  %9130 = vst.sshfl [vmem:[%s10182_s21 + $0x168] sm:$0x1 pattern:$0x73625140] %v478_v7  ;;  %v1630_v24 = vrot.slane %v1616_v13, %v10171_v6  ;;  %v1631_v25 = vcombine.high %v1623_v14, %v1623_v14  ;;  %v1639_v26 = vrot.slane %v1623_v14, %v10171_v6 }
  0xf5   : > { %v9502_v59 = vld [vmem:[%s10100_s30 + $0x2e8] sm:$0xff]  ;;  %2277 = vst [vmem:[%s10182_s21 + $0x159] sm:$0x1] %v1614_v11  ;;  %2281 = vst [vmem:[%s10182_s21 + $0x179] sm:$0x1] %v1615_v12  ;;  %v518_v27 = vrot.slane %v10302_v60, %v10171_v6  ;;  %v9422_v28 = vld [vmem:[%s10100_s30 + $0x2e0] sm:$0xff]  ;;  %v510_v29 = vcombine.high %v506_v18, %v506_v18  ;;  %v525_v20 = vrot.slane %v511_v22, %v10171_v6  ;;  %v10492_v22 = vpop.trf.xlu0 }
  0xf6   : > { %9211 = vst.sshfl [vmem:[%s10182_s21 + $0x181] sm:$0x1 pattern:$0x73625140] %v1623_v14  ;;  %1172 = vst [vmem:[%s10182_s21 + $0x158] sm:$0x1] %v509_v21  ;;  %v1665_v30 = vcombine.high %v10329_v16, %v10329_v16  ;;  %v1672_v31 = vrot.slane %v10329_v16, %v10171_v6  ;;  %v1632_v32 = vcombine.high %v1630_v24, %v1630_v24  ;;  %5705 = vxpose.xlu1.b32.cont [12/16] %v9502_v59, 128  ;;  %v10485_v14 = vpop.trf.xlu1 }
  0xf7   : > { %1175 = vst [vmem:[%s10182_s21 + $0x170] sm:$0x1] %v508_v19  ;;  %v1646_v33 = vrot.slane %v1630_v24, %v10171_v6  ;;  %v1653_v60 = vrot.slane %v1631_v25, %v10171_v6  ;;  %v1661_v34 = vcombine.high %v1639_v26, %v1639_v26  ;;  %9212 = vst.sshfl [vmem:[%s10182_s21 + $0x189] sm:$0x1 pattern:$0x73625140] %v1631_v25  ;;  %4600 = vxpose.xlu0.b32.cont [12/16] %v9422_v28, 128 }
  0xf8   : > { %9213 = vst.sshfl [vmem:[%s10182_s21 + $0x1a1] sm:$0x1 pattern:$0x73625140] %v1630_v24  ;;  %1176 = vst [vmem:[%s10182_s21 + $0x178] sm:$0x1] %v510_v29  ;;  %v526_v35 = vcombine.high %v518_v27, %v518_v27  ;;  %v527_v38 = vcombine.high %v525_v20, %v525_v20  ;;  %v534_v41 = vrot.slane %v518_v27, %v10171_v6 }
  0xf9   : > { %9131 = vst.sshfl [vmem:[%s10182_s21 + $0x180] sm:$0x1 pattern:$0x73625140] %v518_v27  ;;  %v541_v16 = vrot.slane %v525_v20, %v10171_v6  ;;  %v9503_v42 = vld [vmem:[%s10100_s30 + $0x328] sm:$0xff]  ;;  %v1660_v43 = vrot.slane %v1632_v32, %v10171_v6  ;;  %v1662_v44 = vcombine.high %v1646_v33, %v1646_v33  ;;  %v1663_v45 = vcombine.high %v1653_v60, %v1653_v60  ;;  %v9423_v48 = vld [vmem:[%s10100_s30 + $0x320] sm:$0xff] }
  0xfa   : > { %9133 = vst.sshfl [vmem:[%s10182_s21 + $0x1a0] sm:$0x1 pattern:$0x73625140] %v525_v20  ;;  %2284 = vst [vmem:[%s10182_s21 + $0x191] sm:$0x1] %v1661_v34  ;;  %v1679_v46 = vrot.slane %v1665_v30, %v10171_v6  ;;  %v548_v49 = vrot.slane %v526_v35, %v10171_v6  ;;  %v555_v50 = vrot.slane %v527_v38, %v10171_v6  ;;  %5706 = vxpose.xlu1.b32.cont [13/16] %v9503_v42, 128 }
  0xfb   : > { %9215 = vst.sshfl [vmem:[%s10182_s21 + $0x1c1] sm:$0x1 pattern:$0x73625140] %v1672_v31  ;;  %v556_v51 = vcombine.high %v534_v41, %v534_v41  ;;  %v557_v52 = vcombine.high %v541_v16, %v541_v16  ;;  %v1664_v39 = vcombine.high %v1660_v43, %v1660_v43  ;;  %2285 = vst [vmem:[%s10182_s21 + $0x199] sm:$0x1] %v1663_v45  ;;  %4601 = vxpose.xlu0.b32.cont [13/16] %v9423_v48, 128 }
  0xfc   : > { %9214 = vst.sshfl [vmem:[%s10182_s21 + $0x1a9] sm:$0x1 pattern:$0x73625140] %v1632_v32  ;;  %2288 = vst [vmem:[%s10182_s21 + $0x1b1] sm:$0x1] %v1662_v44  ;;  %v1680_v54 = vcombine.high %v1672_v31, %v1672_v31  ;;  %v1681_v55 = vcombine.high %v1679_v46, %v1679_v46  ;;  %v1688_v56 = vrot.slane %v1672_v31, %v10171_v6 }
  0xfd   : > { %9132 = vst.sshfl [vmem:[%s10182_s21 + $0x188] sm:$0x1 pattern:$0x73625140] %v526_v35  ;;  %v558_v40 = vcombine.high %v548_v49, %v548_v49  ;;  %v559_v61 = vcombine.high %v555_v50, %v555_v50  ;;  %1179 = vst [vmem:[%s10182_s21 + $0x190] sm:$0x1] %v556_v51  ;;  %v1695_v62 = vrot.slane %v1679_v46, %v10171_v6 }
  0xfe   : > { %9134 = vst.sshfl [vmem:[%s10182_s21 + $0x1a8] sm:$0x1 pattern:$0x73625140] %v527_v38  ;;  %1183 = vst [vmem:[%s10182_s21 + $0x1b0] sm:$0x1] %v557_v52  ;;  %v560_v63 = vcombine.high %v10331_v17, %v10331_v17  ;;  %v1702_v1 = vrot.slane %v1680_v54, %v10171_v6  ;;  %v1709_v2 = vrot.slane %v1681_v55, %v10171_v6 }
  0xff   : > { %9217 = vst.sshfl [vmem:[%s10182_s21 + $0x1e1] sm:$0x1 pattern:$0x73625140] %v1679_v46  ;;  %v9504_v0 = vld [vmem:[%s10100_s30 + $0x368] sm:$0xff]  ;;  %v1710_v3 = vcombine.high %v1688_v56, %v1688_v56  ;;  %v567_v4 = vrot.slane %v10331_v17, %v10171_v6  ;;  %v9424_v5 = vld [vmem:[%s10100_s30 + $0x360] sm:$0xff]  ;;  %v1711_v7 = vcombine.high %v1695_v62, %v1695_v62  ;;  %v1714_v9 = vcombine.high %v10354_v36, %v10354_v36  ;;  %v10523_v46 = vpop.trf.xlu1 }
 0x100   : > { %2289 = vst [vmem:[%s10182_s21 + $0x1b9] sm:$0x1] %v1664_v39  ;;  %9216 = vst.sshfl [vmem:[%s10182_s21 + $0x1c9] sm:$0x1 pattern:$0x73625140] %v1680_v54  ;;  %v574_v8 = vrot.slane %v560_v63, %v10171_v6  ;;  %v1721_v10 = vrot.slane %v10354_v36, %v10171_v6  ;;  %v1712_v11 = vcombine.high %v1702_v1, %v1702_v1  ;;  %5707 = vxpose.xlu1.b32.cont [14/16] %v9504_v0, 128  ;;  %v10532_v39 = vpop.trf.xlu0 }
 0x101   : > { %9218 = vst.sshfl [vmem:[%s10182_s21 + $0x1e9] sm:$0x1 pattern:$0x73625140] %v1681_v55  ;;  %1180 = vst [vmem:[%s10182_s21 + $0x198] sm:$0x1] %v558_v40  ;;  %v1713_v12 = vcombine.high %v1709_v2, %v1709_v2  ;;  %v575_v17 = vcombine.high %v567_v4, %v567_v4  ;;  %v583_v13 = vrot.slane %v567_v4, %v10171_v6  ;;  %4602 = vxpose.xlu0.b32.cont [14/16] %v9424_v5, 128 }
 0x102   : > { %1184 = vst [vmem:[%s10182_s21 + $0x1b8] sm:$0x1] %v559_v61  ;;  %2292 = vst [vmem:[%s10182_s21 + $0x1d1] sm:$0x1] %v1710_v3  ;;  %v576_v18 = vcombine.high %v574_v8, %v574_v8  ;;  %v590_v19 = vrot.slane %v574_v8, %v10171_v6  ;;  %v1728_v36 = vrot.slane %v1714_v9, %v10171_v6  ;;  %v9505_v59 = vld [vmem:[%s10100_s30 + $0x3a8] sm:$0xff]  ;;  %v9425_v28 = vld [vmem:[%s10100_s30 + $0x3a0] sm:$0xff] }
 0x103   : > { %9135 = vst.sshfl [vmem:[%s10182_s21 + $0x1c0] sm:$0x1 pattern:$0x73625140] %v567_v4  ;;  %2296 = vst [vmem:[%s10182_s21 + $0x1f1] sm:$0x1] %v1711_v7  ;;  %v1729_v21 = vcombine.high %v1721_v10, %v1721_v10  ;;  %v597_v24 = vrot.slane %v575_v17, %v10171_v6  ;;  %v605_v25 = vcombine.high %v583_v13, %v583_v13  ;;  %v10561_v13 = vpop.trf.xlu1 }
 0x104   : > { %9137 = vst.sshfl [vmem:[%s10182_s21 + $0x1e0] sm:$0x1 pattern:$0x73625140] %v574_v8  ;;  %2293 = vst [vmem:[%s10182_s21 + $0x1d9] sm:$0x1] %v1712_v11  ;;  %v1737_v26 = vrot.slane %v1721_v10, %v10171_v6  ;;  %v609_v27 = vcombine.high %v10356_v37, %v10356_v37  ;;  %v604_v29 = vrot.slane %v576_v18, %v10171_v6  ;;  %5708 = vxpose.xlu1.b32.cont [15/16] %v9505_v59, 128  ;;  %v10569_v59 = vpop.trf.xlu0 }
 0x105   : > { %9219 = vst.sshfl [vmem:[%s10182_s21 + $0x201] sm:$0x1 pattern:$0x73625140] %v1721_v10  ;;  %2297 = vst [vmem:[%s10182_s21 + $0x1f9] sm:$0x1] %v1713_v12  ;;  %v606_v20 = vcombine.high %v590_v19, %v590_v19  ;;  %v1730_v30 = vcombine.high %v1728_v36, %v1728_v36  ;;  %v1744_v31 = vrot.slane %v1728_v36, %v10171_v6  ;;  %4603 = vxpose.xlu0.b32.cont [15/16] %v9425_v28, 128 }
 0x106   : > { %9136 = vst.sshfl [vmem:[%s10182_s21 + $0x1c8] sm:$0x1 pattern:$0x73625140] %v575_v17  ;;  %v607_v32 = vcombine.high %v597_v24, %v597_v24  ;;  %1187 = vst [vmem:[%s10182_s21 + $0x1d0] sm:$0x1] %v605_v25  ;;  %v1751_v33 = vrot.slane %v1729_v21, %v10171_v6  ;;  %v1759_v60 = vcombine.high %v1737_v26, %v1737_v26 }
 0x107   : > { %9138 = vst.sshfl [vmem:[%s10182_s21 + $0x1e8] sm:$0x1 pattern:$0x73625140] %v576_v18  ;;  %v616_v34 = vrot.slane %v10356_v37, %v10171_v6  ;;  %v608_v35 = vcombine.high %v604_v29, %v604_v29  ;;  %1191 = vst [vmem:[%s10182_s21 + $0x1f0] sm:$0x1] %v606_v20  ;;  %v1758_v38 = vrot.slane %v1730_v30, %v10171_v6 }
 0x108   : > { %9220 = vst.sshfl [vmem:[%s10182_s21 + $0x209] sm:$0x1 pattern:$0x73625140] %v1729_v21  ;;  %v1760_v41 = vcombine.high %v1744_v31, %v1744_v31  ;;  %v623_v16 = vrot.slane %v609_v27, %v10171_v6  ;;  %v9506_v42 = vld [vmem:[%s10100_s30 + $0x3e8] sm:$0xff]  ;;  %v1761_v43 = vcombine.high %v1751_v33, %v1751_v33  ;;  %v1763_v45 = vcombine.high %v10382_v57, %v10382_v57  ;;  %v9426_v48 = vld [vmem:[%s10100_s30 + $0x3e0] sm:$0xff] }
 0x109   : > { %9221 = vst.sshfl [vmem:[%s10182_s21 + $0x221] sm:$0x1 pattern:$0x73625140] %v1728_v36  ;;  %1188 = vst [vmem:[%s10182_s21 + $0x1d8] sm:$0x1] %v607_v32  ;;  %v624_v37 = vcombine.high %v616_v34, %v616_v34  ;;  %v632_v44 = vrot.slane %v616_v34, %v10171_v6  ;;  %v1762_v49 = vcombine.high %v1758_v38, %v1758_v38  ;;  %5709 = vxpose.xlu1.b32.end [16/16] %v9506_v42, 128 }
 0x10a   : > { %9222 = vst.sshfl [vmem:[%s10182_s21 + $0x229] sm:$0x1 pattern:$0x73625140] %v1730_v30  ;;  %2300 = vst [vmem:[%s10182_s21 + $0x211] sm:$0x1] %v1759_v60  ;;  %v625_v50 = vcombine.high %v623_v16, %v623_v16  ;;  %v639_v51 = vrot.slane %v623_v16, %v10171_v6  ;;  %v1770_v52 = vrot.slane %v10382_v57, %v10171_v6  ;;  %4604 = vxpose.xlu0.b32.end [16/16] %v9426_v48, 128 }
 0x10b   : > { %9139 = vst.sshfl [vmem:[%s10182_s21 + $0x200] sm:$0x1 pattern:$0x73625140] %v616_v34  ;;  %1192 = vst [vmem:[%s10182_s21 + $0x1f8] sm:$0x1] %v608_v35  ;;  %v646_v54 = vrot.slane %v624_v37, %v10171_v6  ;;  %v654_v55 = vcombine.high %v632_v44, %v632_v44  ;;  %v1777_v56 = vrot.slane %v1763_v45, %v10171_v6 }
 0x10c   : > { %2304 = vst [vmem:[%s10182_s21 + $0x231] sm:$0x1] %v1760_v41  ;;  %9141 = vst.sshfl [vmem:[%s10182_s21 + $0x220] sm:$0x1 pattern:$0x73625140] %v623_v16  ;;  %v658_v40 = vcombine.high %v10384_v58, %v10384_v58  ;;  %v653_v57 = vrot.slane %v625_v50, %v10171_v6  ;;  %v655_v61 = vcombine.high %v639_v51, %v639_v51 }
 0x10d   : > { %2301 = vst [vmem:[%s10182_s21 + $0x219] sm:$0x1] %v1761_v43  ;;  %9140 = vst.sshfl [vmem:[%s10182_s21 + $0x208] sm:$0x1 pattern:$0x73625140] %v624_v37  ;;  %v1778_v62 = vcombine.high %v1770_v52, %v1770_v52  ;;  %v1786_v63 = vrot.slane %v1770_v52, %v10171_v6  ;;  %v656_v1 = vcombine.high %v646_v54, %v646_v54 }
 0x10e   : > { %2305 = vst [vmem:[%s10182_s21 + $0x239] sm:$0x1] %v1762_v49  ;;  %9142 = vst.sshfl [vmem:[%s10182_s21 + $0x228] sm:$0x1 pattern:$0x73625140] %v625_v50  ;;  %v1779_v2 = vcombine.high %v1777_v56, %v1777_v56  ;;  %v1793_v3 = vrot.slane %v1777_v56, %v10171_v6  ;;  %v665_v4 = vrot.slane %v10384_v58, %v10171_v6 }
 0x10f   : > { %9223 = vst.sshfl [vmem:[%s10182_s21 + $0x241] sm:$0x1 pattern:$0x73625140] %v1770_v52  ;;  %v9651_v0 = vld [vmem:[%s10100_s30 + $0x38] sm:$0xff]  ;;  %v9571_v5 = vld [vmem:[%s10100_s30 + $0x30] sm:$0xff]  ;;  %v657_v7 = vcombine.high %v653_v57, %v653_v57  ;;  %v1800_v8 = vrot.slane %v1778_v62, %v10171_v6  ;;  %v1808_v9 = vcombine.high %v1786_v63, %v1786_v63  ;;  %v672_v10 = vrot.slane %v658_v40, %v10171_v6 }
 0x110   : > { %1195 = vst [vmem:[%s10182_s21 + $0x210] sm:$0x1] %v654_v55  ;;  %9225 = vst.sshfl [vmem:[%s10182_s21 + $0x261] sm:$0x1 pattern:$0x73625140] %v1777_v56  ;;  %v1807_v11 = vrot.slane %v1779_v2, %v10171_v6  ;;  %v1809_v12 = vcombine.high %v1793_v3, %v1793_v3  ;;  %v673_v17 = vcombine.high %v665_v4, %v665_v4  ;;  %7904 = vxpose.xlu1.b32.start [1/16] %v9651_v0, 128 }
 0x111   : > { %1199 = vst [vmem:[%s10182_s21 + $0x230] sm:$0x1] %v655_v61  ;;  %9224 = vst.sshfl [vmem:[%s10182_s21 + $0x249] sm:$0x1 pattern:$0x73625140] %v1778_v62  ;;  %v681_v58 = vrot.slane %v665_v4, %v10171_v6  ;;  %v1810_v18 = vcombine.high %v1800_v8, %v1800_v8  ;;  %v674_v19 = vcombine.high %v672_v10, %v672_v10  ;;  %6799 = vxpose.xlu0.b32.start [1/16] %v9571_v5, 128 }
 0x112   : > { %1196 = vst [vmem:[%s10182_s21 + $0x218] sm:$0x1] %v656_v1  ;;  %9226 = vst.sshfl [vmem:[%s10182_s21 + $0x269] sm:$0x1 pattern:$0x73625140] %v1779_v2  ;;  %v688_v36 = vrot.slane %v672_v10, %v10171_v6  ;;  %v1812_v21 = vcombine.high %v10408_v15, %v10408_v15  ;;  %v1811_v25 = vcombine.high %v1807_v11, %v1807_v11 }
 0x113   : > { %9143 = vst.sshfl [vmem:[%s10182_s21 + $0x240] sm:$0x1 pattern:$0x73625140] %v665_v4  ;;  %1200 = vst [vmem:[%s10182_s21 + $0x238] sm:$0x1] %v657_v7  ;;  %v695_v26 = vrot.slane %v673_v17, %v10171_v6  ;;  %v703_v27 = vcombine.high %v681_v58, %v681_v58  ;;  %v1819_v28 = vrot.slane %v10408_v15, %v10171_v6 }
 0x114   : > { %2308 = vst [vmem:[%s10182_s21 + $0x251] sm:$0x1] %v1808_v9  ;;  %9145 = vst.sshfl [vmem:[%s10182_s21 + $0x260] sm:$0x1 pattern:$0x73625140] %v672_v10  ;;  %v702_v20 = vrot.slane %v674_v19, %v10171_v6  ;;  %v704_v30 = vcombine.high %v688_v36, %v688_v36  ;;  %v1826_v31 = vrot.slane %v1812_v21, %v10171_v6 }
 0x115   : > { %v9652_v24 = vld [vmem:[%s10100_s30 + $0x78] sm:$0xff]  ;;  %2312 = vst [vmem:[%s10182_s21 + $0x271] sm:$0x1] %v1809_v12  ;;  %v9572_v29 = vld [vmem:[%s10100_s30 + $0x70] sm:$0xff]  ;;  %2309 = vst [vmem:[%s10182_s21 + $0x259] sm:$0x1] %v1810_v18  ;;  %v707_v32 = vcombine.high %v10415_v23, %v10415_v23  ;;  %v705_v33 = vcombine.high %v695_v26, %v695_v26  ;;  %v1827_v60 = vcombine.high %v1819_v28, %v1819_v28 }
 0x116   : > { %9144 = vst.sshfl [vmem:[%s10182_s21 + $0x248] sm:$0x1 pattern:$0x73625140] %v673_v17  ;;  %2313 = vst [vmem:[%s10182_s21 + $0x279] sm:$0x1] %v1811_v25  ;;  %v1835_v15 = vrot.slane %v1819_v28, %v10171_v6  ;;  %v714_v34 = vrot.slane %v10415_v23, %v10171_v6  ;;  %7905 = vxpose.xlu1.b32.cont [2/16] %v9652_v24, 128  ;;  %v706_v35 = vcombine.high %v702_v20, %v702_v20 }
 0x117   : > { %9146 = vst.sshfl [vmem:[%s10182_s21 + $0x268] sm:$0x1 pattern:$0x73625140] %v674_v19  ;;  %1203 = vst [vmem:[%s10182_s21 + $0x250] sm:$0x1] %v703_v27  ;;  %v1828_v38 = vcombine.high %v1826_v31, %v1826_v31  ;;  %v1842_v41 = vrot.slane %v1826_v31, %v10171_v6  ;;  %v721_v16 = vrot.slane %v707_v32, %v10171_v6  ;;  %6800 = vxpose.xlu0.b32.cont [2/16] %v9572_v29, 128 }
 0x118   : > { %9227 = vst.sshfl [vmem:[%s10182_s21 + $0x281] sm:$0x1 pattern:$0x73625140] %v1819_v28  ;;  %1207 = vst [vmem:[%s10182_s21 + $0x270] sm:$0x1] %v704_v30  ;;  %v1849_v23 = vrot.slane %v1827_v60, %v10171_v6  ;;  %v1857_v43 = vcombine.high %v1835_v15, %v1835_v15  ;;  %v722_v37 = vcombine.high %v714_v34, %v714_v34 }
 0x119   : > { %9229 = vst.sshfl [vmem:[%s10182_s21 + $0x2a1] sm:$0x1 pattern:$0x73625140] %v1826_v31  ;;  %v9653_v42 = vld [vmem:[%s10100_s30 + $0xb8] sm:$0xff]  ;;  %v730_v44 = vrot.slane %v714_v34, %v10171_v6  ;;  %v9573_v45 = vld [vmem:[%s10100_s30 + $0xb0] sm:$0xff]  ;;  %v1856_v48 = vrot.slane %v1828_v38, %v10171_v6  ;;  %v1858_v49 = vcombine.high %v1842_v41, %v1842_v41  ;;  %v723_v50 = vcombine.high %v721_v16, %v721_v16 }
 0x11a   : > { %1204 = vst [vmem:[%s10182_s21 + $0x258] sm:$0x1] %v705_v33  ;;  %9228 = vst.sshfl [vmem:[%s10182_s21 + $0x289] sm:$0x1 pattern:$0x73625140] %v1827_v60  ;;  %v737_v51 = vrot.slane %v721_v16, %v10171_v6  ;;  %v1859_v52 = vcombine.high %v1849_v23, %v1849_v23  ;;  %v744_v54 = vrot.slane %v722_v37, %v10171_v6  ;;  %7906 = vxpose.xlu1.b32.cont [3/16] %v9653_v42, 128 }
 0x11b   : > { %9147 = vst.sshfl [vmem:[%s10182_s21 + $0x280] sm:$0x1 pattern:$0x73625140] %v714_v34  ;;  %1208 = vst [vmem:[%s10182_s21 + $0x278] sm:$0x1] %v706_v35  ;;  %v752_v55 = vcombine.high %v730_v44, %v730_v44  ;;  %v1861_v56 = vcombine.high %v10448_v47, %v10448_v47  ;;  %v1860_v40 = vcombine.high %v1856_v48, %v1856_v48  ;;  %6801 = vxpose.xlu0.b32.cont [3/16] %v9573_v45, 128 }
 0x11c   : > { %9230 = vst.sshfl [vmem:[%s10182_s21 + $0x2a9] sm:$0x1 pattern:$0x73625140] %v1828_v38  ;;  %2316 = vst [vmem:[%s10182_s21 + $0x291] sm:$0x1] %v1857_v43  ;;  %v751_v57 = vrot.slane %v723_v50, %v10171_v6  ;;  %v753_v61 = vcombine.high %v737_v51, %v737_v51  ;;  %v1868_v62 = vrot.slane %v10448_v47, %v10171_v6 }
 0x11d   : > { %9149 = vst.sshfl [vmem:[%s10182_s21 + $0x2a0] sm:$0x1 pattern:$0x73625140] %v721_v16  ;;  %2320 = vst [vmem:[%s10182_s21 + $0x2b1] sm:$0x1] %v1858_v49  ;;  %v754_v0 = vcombine.high %v744_v54, %v744_v54  ;;  %v1875_v1 = vrot.slane %v1861_v56, %v10171_v6  ;;  %v756_v2 = vcombine.high %v10455_v53, %v10455_v53 }
 0x11e   : > { %9148 = vst.sshfl [vmem:[%s10182_s21 + $0x288] sm:$0x1 pattern:$0x73625140] %v722_v37  ;;  %v9654_v63 = vld [vmem:[%s10100_s30 + $0xf8] sm:$0xff]  ;;  %v763_v3 = vrot.slane %v10455_v53, %v10171_v6  ;;  %v9574_v4 = vld [vmem:[%s10100_s30 + $0xf0] sm:$0xff]  ;;  %v755_v47 = vcombine.high %v751_v57, %v751_v57  ;;  %v1876_v5 = vcombine.high %v1868_v62, %v1868_v62  ;;  %v1884_v7 = vrot.slane %v1868_v62, %v10171_v6 }
 0x11f   : > { %9150 = vst.sshfl [vmem:[%s10182_s21 + $0x2a8] sm:$0x1 pattern:$0x73625140] %v723_v50  ;;  %2317 = vst [vmem:[%s10182_s21 + $0x299] sm:$0x1] %v1859_v52  ;;  %v1910_v8 = vcombine.high %v10485_v14, %v10485_v14  ;;  %v1877_v9 = vcombine.high %v1875_v1, %v1875_v1  ;;  %v1891_v10 = vrot.slane %v1875_v1, %v10171_v6  ;;  %7907 = vxpose.xlu1.b32.cont [4/16] %v9654_v63, 128 }
 0x120   : > { %1211 = vst [vmem:[%s10182_s21 + $0x290] sm:$0x1] %v752_v55  ;;  %2321 = vst [vmem:[%s10182_s21 + $0x2b9] sm:$0x1] %v1860_v40  ;;  %v770_v53 = vrot.slane %v756_v2, %v10171_v6  ;;  %v771_v11 = vcombine.high %v763_v3, %v763_v3  ;;  %v1898_v12 = vrot.slane %v1876_v5, %v10171_v6  ;;  %6802 = vxpose.xlu0.b32.cont [4/16] %v9574_v4, 128  ;;  %v9655_v19 = vld [vmem:[%s10100_s30 + $0x138] sm:$0xff]  ;;  %v9575_v26 = vld [vmem:[%s10100_s30 + $0x130] sm:$0xff] }
 0x121   : > { %1215 = vst [vmem:[%s10182_s21 + $0x2b0] sm:$0x1] %v753_v61  ;;  %9231 = vst.sshfl [vmem:[%s10182_s21 + $0x2c1] sm:$0x1 pattern:$0x73625140] %v1868_v62  ;;  %v1906_v17 = vcombine.high %v1884_v7, %v1884_v7  ;;  %v779_v58 = vrot.slane %v763_v3, %v10171_v6  ;;  %v1917_v18 = vrot.slane %v10485_v14, %v10171_v6 }
 0x122   : > { %1212 = vst [vmem:[%s10182_s21 + $0x298] sm:$0x1] %v754_v0  ;;  %9233 = vst.sshfl [vmem:[%s10182_s21 + $0x2e1] sm:$0x1 pattern:$0x73625140] %v1875_v1  ;;  %v1905_v36 = vrot.slane %v1877_v9, %v10171_v6  ;;  %v1907_v21 = vcombine.high %v1891_v10, %v1891_v10  ;;  %v772_v24 = vcombine.high %v770_v53, %v770_v53 }
 0x123   : > { %9151 = vst.sshfl [vmem:[%s10182_s21 + $0x2c0] sm:$0x1 pattern:$0x73625140] %v763_v3  ;;  %1216 = vst [vmem:[%s10182_s21 + $0x2b8] sm:$0x1] %v755_v47  ;;  %v786_v25 = vrot.slane %v770_v53, %v10171_v6  ;;  %v1908_v27 = vcombine.high %v1898_v12, %v1898_v12  ;;  %v793_v14 = vrot.slane %v771_v11, %v10171_v6  ;;  %7908 = vxpose.xlu1.b32.cont [5/16] %v9655_v19, 128 }
 0x124   : > { %9232 = vst.sshfl [vmem:[%s10182_s21 + $0x2c9] sm:$0x1 pattern:$0x73625140] %v1876_v5  ;;  %2324 = vst [vmem:[%s10182_s21 + $0x2d1] sm:$0x1] %v1906_v17  ;;  %v801_v28 = vcombine.high %v779_v58, %v779_v58  ;;  %v1924_v29 = vrot.slane %v1910_v8, %v10171_v6  ;;  %v1909_v20 = vcombine.high %v1905_v36, %v1905_v36  ;;  %6803 = vxpose.xlu0.b32.cont [5/16] %v9575_v26, 128 }
 0x125   : > { %9234 = vst.sshfl [vmem:[%s10182_s21 + $0x2e9] sm:$0x1 pattern:$0x73625140] %v1877_v9  ;;  %2328 = vst [vmem:[%s10182_s21 + $0x2f1] sm:$0x1] %v1907_v21  ;;  %v800_v30 = vrot.slane %v772_v24, %v10171_v6  ;;  %v802_v31 = vcombine.high %v786_v25, %v786_v25  ;;  %v1925_v32 = vcombine.high %v1917_v18, %v1917_v18 }
 0x126   : > { %9152 = vst.sshfl [vmem:[%s10182_s21 + $0x2c8] sm:$0x1 pattern:$0x73625140] %v771_v11  ;;  %2325 = vst [vmem:[%s10182_s21 + $0x2d9] sm:$0x1] %v1908_v27  ;;  %v803_v33 = vcombine.high %v793_v14, %v793_v14  ;;  %v1926_v60 = vcombine.high %v1924_v29, %v1924_v29  ;;  %v1933_v15 = vrot.slane %v1917_v18, %v10171_v6 }
 0x127   : > { %9153 = vst.sshfl [vmem:[%s10182_s21 + $0x2e0] sm:$0x1 pattern:$0x73625140] %v770_v53  ;;  %1219 = vst [vmem:[%s10182_s21 + $0x2d0] sm:$0x1] %v801_v28  ;;  %v1940_v34 = vrot.slane %v1924_v29, %v10171_v6  ;;  %v804_v38 = vcombine.high %v800_v30, %v800_v30  ;;  %v1947_v41 = vrot.slane %v1925_v32, %v10171_v6 }
 0x128   : > { %9235 = vst.sshfl [vmem:[%s10182_s21 + $0x301] sm:$0x1 pattern:$0x73625140] %v1917_v18  ;;  %v9656_v35 = vld [vmem:[%s10100_s30 + $0x178] sm:$0xff]  ;;  %v805_v16 = vcombine.high %v10492_v22, %v10492_v22  ;;  %v812_v42 = vrot.slane %v10492_v22, %v10171_v6  ;;  %v9576_v23 = vld [vmem:[%s10100_s30 + $0x170] sm:$0xff]  ;;  %v1954_v43 = vrot.slane %v1926_v60, %v10171_v6  ;;  %v1955_v37 = vcombine.high %v1933_v15, %v1933_v15 }
 0x129   : > { %9154 = vst.sshfl [vmem:[%s10182_s21 + $0x2e8] sm:$0x1 pattern:$0x73625140] %v772_v24  ;;  %2329 = vst [vmem:[%s10182_s21 + $0x2f9] sm:$0x1] %v1909_v20  ;;  %v1956_v44 = vcombine.high %v1940_v34, %v1940_v34  ;;  %v1959_v45 = vcombine.high %v10523_v46, %v10523_v46  ;;  %v1957_v48 = vcombine.high %v1947_v41, %v1947_v41  ;;  %7909 = vxpose.xlu1.b32.cont [6/16] %v9656_v35, 128  ;;  %v1305_v20 = vpop.trf.xlu1 }
 0x12a   : > { %9237 = vst.sshfl [vmem:[%s10182_s21 + $0x321] sm:$0x1 pattern:$0x73625140] %v1924_v29  ;;  %1223 = vst [vmem:[%s10182_s21 + $0x2f0] sm:$0x1] %v802_v31  ;;  %v819_v49 = vrot.slane %v805_v16, %v10171_v6  ;;  %v820_v50 = vcombine.high %v812_v42, %v812_v42  ;;  %v828_v22 = vrot.slane %v812_v42, %v10171_v6  ;;  %6804 = vxpose.xlu0.b32.cont [6/16] %v9576_v23, 128 }
 0x12b   : > { %9236 = vst.sshfl [vmem:[%s10182_s21 + $0x309] sm:$0x1 pattern:$0x73625140] %v1925_v32  ;;  %1220 = vst [vmem:[%s10182_s21 + $0x2d8] sm:$0x1] %v803_v33  ;;  %v1958_v51 = vcombine.high %v1954_v43, %v1954_v43  ;;  %v1966_v52 = vrot.slane %v10523_v46, %v10171_v6  ;;  %v1973_v54 = vrot.slane %v1959_v45, %v10171_v6  ;;  %v200_v43 = vpop.trf.xlu0 }
 0x12c   : > { %9238 = vst.sshfl [vmem:[%s10182_s21 + $0x329] sm:$0x1 pattern:$0x73625140] %v1926_v60  ;;  %1224 = vst [vmem:[%s10182_s21 + $0x2f8] sm:$0x1] %v804_v38  ;;  %v854_v55 = vcombine.high %v10532_v39, %v10532_v39  ;;  %v821_v40 = vcombine.high %v819_v49, %v819_v49  ;;  %v835_v57 = vrot.slane %v819_v49, %v10171_v6 }
 0x12d   : > { %9155 = vst.sshfl [vmem:[%s10182_s21 + $0x300] sm:$0x1 pattern:$0x73625140] %v812_v42  ;;  %2332 = vst [vmem:[%s10182_s21 + $0x311] sm:$0x1] %v1955_v37  ;;  %v842_v61 = vrot.slane %v820_v50, %v10171_v6  ;;  %v850_v62 = vcombine.high %v828_v22, %v828_v22  ;;  %v1974_v63 = vcombine.high %v1966_v52, %v1966_v52 }
 0x12e   : > { %2336 = vst [vmem:[%s10182_s21 + $0x331] sm:$0x1] %v1956_v44  ;;  %v9657_v56 = vld [vmem:[%s10100_s30 + $0x1b8] sm:$0xff]  ;;  %2333 = vst [vmem:[%s10182_s21 + $0x319] sm:$0x1] %v1957_v48  ;;  %v9577_v46 = vld [vmem:[%s10100_s30 + $0x1b0] sm:$0xff]  ;;  %v1975_v0 = vcombine.high %v1973_v54, %v1973_v54  ;;  %v1982_v1 = vrot.slane %v1966_v52, %v10171_v6  ;;  %v1989_v2 = vrot.slane %v1973_v54, %v10171_v6 }
 0x12f   : > { %9156 = vst.sshfl [vmem:[%s10182_s21 + $0x308] sm:$0x1 pattern:$0x73625140] %v820_v50  ;;  %2337 = vst [vmem:[%s10182_s21 + $0x339] sm:$0x1] %v1958_v51  ;;  %v849_v3 = vrot.slane %v821_v40, %v10171_v6  ;;  %v851_v4 = vcombine.high %v835_v57, %v835_v57  ;;  %v852_v47 = vcombine.high %v842_v61, %v842_v61  ;;  %7910 = vxpose.xlu1.b32.cont [7/16] %v9657_v56, 128  ;;  %v3500_v61 = vpop.trf.xlu1 }
 0x130   : > { %9157 = vst.sshfl [vmem:[%s10182_s21 + $0x320] sm:$0x1 pattern:$0x73625140] %v819_v49  ;;  %1227 = vst [vmem:[%s10182_s21 + $0x310] sm:$0x1] %v850_v62  ;;  %v861_v5 = vrot.slane %v10532_v39, %v10171_v6  ;;  %v1996_v7 = vrot.slane %v1974_v63, %v10171_v6  ;;  %v2003_v8 = vrot.slane %v1975_v0, %v10171_v6  ;;  %6805 = vxpose.xlu0.b32.cont [7/16] %v9577_v46, 128 }
 0x131   : > { %9239 = vst.sshfl [vmem:[%s10182_s21 + $0x341] sm:$0x1 pattern:$0x73625140] %v1966_v52  ;;  %v2004_v9 = vcombine.high %v1982_v1, %v1982_v1  ;;  %v2005_v10 = vcombine.high %v1989_v2, %v1989_v2  ;;  %v9658_v53 = vld [vmem:[%s10100_s30 + $0x1f8] sm:$0xff]  ;;  %v853_v11 = vcombine.high %v849_v3, %v849_v3  ;;  %v868_v39 = vrot.slane %v854_v55, %v10171_v6  ;;  %v9578_v58 = vld [vmem:[%s10100_s30 + $0x1f0] sm:$0xff] }
 0x132   : > { %9241 = vst.sshfl [vmem:[%s10182_s21 + $0x361] sm:$0x1 pattern:$0x73625140] %v1973_v54  ;;  %1228 = vst [vmem:[%s10182_s21 + $0x318] sm:$0x1] %v852_v47  ;;  %v869_v12 = vcombine.high %v861_v5, %v861_v5  ;;  %v877_v17 = vrot.slane %v861_v5, %v10171_v6  ;;  %v2006_v18 = vcombine.high %v1996_v7, %v1996_v7 }
 0x133   : > { %9158 = vst.sshfl [vmem:[%s10182_s21 + $0x328] sm:$0x1 pattern:$0x73625140] %v821_v40  ;;  %1231 = vst [vmem:[%s10182_s21 + $0x330] sm:$0x1] %v851_v4  ;;  %v2007_v19 = vcombine.high %v2003_v8, %v2003_v8  ;;  %v2008_v36 = vcombine.high %v10561_v13, %v10561_v13  ;;  %v2015_v21 = vrot.slane %v10561_v13, %v10171_v6  ;;  %7911 = vxpose.xlu1.b32.cont [8/16] %v9658_v53, 128 }
 0x134   : > { %9240 = vst.sshfl [vmem:[%s10182_s21 + $0x349] sm:$0x1 pattern:$0x73625140] %v1974_v63  ;;  %2340 = vst [vmem:[%s10182_s21 + $0x351] sm:$0x1] %v2004_v9  ;;  %v870_v24 = vcombine.high %v868_v39, %v868_v39  ;;  %v884_v25 = vrot.slane %v868_v39, %v10171_v6  ;;  %v891_v26 = vrot.slane %v869_v12, %v10171_v6  ;;  %6806 = vxpose.xlu0.b32.cont [8/16] %v9578_v58, 128 }
 0x135   : > { %9242 = vst.sshfl [vmem:[%s10182_s21 + $0x369] sm:$0x1 pattern:$0x73625140] %v1975_v0  ;;  %2344 = vst [vmem:[%s10182_s21 + $0x371] sm:$0x1] %v2005_v10  ;;  %v899_v27 = vcombine.high %v877_v17, %v877_v17  ;;  %v2022_v14 = vrot.slane %v2008_v36, %v10171_v6  ;;  %v2023_v28 = vcombine.high %v2015_v21, %v2015_v21  ;;  %v2395_v17 = vpop.trf.xlu0 }
 0x136   : > { %9159 = vst.sshfl [vmem:[%s10182_s21 + $0x340] sm:$0x1 pattern:$0x73625140] %v861_v5  ;;  %1232 = vst [vmem:[%s10182_s21 + $0x338] sm:$0x1] %v853_v11  ;;  %v2031_v13 = vrot.slane %v2015_v21, %v10171_v6  ;;  %v903_v29 = vcombine.high %v10569_v59, %v10569_v59  ;;  %v898_v31 = vrot.slane %v870_v24, %v10171_v6 }
 0x137   : > { %9160 = vst.sshfl [vmem:[%s10182_s21 + $0x348] sm:$0x1 pattern:$0x73625140] %v869_v12  ;;  %2341 = vst [vmem:[%s10182_s21 + $0x359] sm:$0x1] %v2006_v18  ;;  %v900_v32 = vcombine.high %v884_v25, %v884_v25  ;;  %v901_v33 = vcombine.high %v891_v26, %v891_v26  ;;  %v910_v60 = vrot.slane %v10569_v59, %v10171_v6 }
 0x138   : > { %9161 = vst.sshfl [vmem:[%s10182_s21 + $0x360] sm:$0x1 pattern:$0x73625140] %v868_v39  ;;  %2345 = vst [vmem:[%s10182_s21 + $0x379] sm:$0x1] %v2007_v19  ;;  %v2024_v34 = vcombine.high %v2022_v14, %v2022_v14  ;;  %v2038_v35 = vrot.slane %v2022_v14, %v10171_v6  ;;  %v2045_v38 = vrot.slane %v2023_v28, %v10171_v6 }
 0x139   : > { %9243 = vst.sshfl [vmem:[%s10182_s21 + $0x381] sm:$0x1 pattern:$0x73625140] %v2015_v21  ;;  %v9659_v30 = vld [vmem:[%s10100_s30 + $0x238] sm:$0xff]  ;;  %v9579_v15 = vld [vmem:[%s10100_s30 + $0x230] sm:$0xff]  ;;  %v2053_v41 = vcombine.high %v2031_v13, %v2031_v13  ;;  %v902_v16 = vcombine.high %v898_v31, %v898_v31  ;;  %v917_v42 = vrot.slane %v903_v29, %v10171_v6  ;;  %v918_v23 = vcombine.high %v910_v60, %v910_v60 }
 0x13a   : > { %1235 = vst [vmem:[%s10182_s21 + $0x350] sm:$0x1] %v899_v27  ;;  %9162 = vst.sshfl [vmem:[%s10182_s21 + $0x368] sm:$0x1 pattern:$0x73625140] %v870_v24  ;;  %v926_v59 = vrot.slane %v910_v60, %v10171_v6  ;;  %7912 = vxpose.xlu1.b32.cont [9/16] %v9659_v30, 128  ;;  %v2052_v37 = vrot.slane %v2024_v34, %v10171_v6  ;;  %v2054_v44 = vcombine.high %v2038_v35, %v2038_v35  ;;  %v3501_v27 = vpop.trf.xlu1 }
 0x13b   : > { %9244 = vst.sshfl [vmem:[%s10182_s21 + $0x389] sm:$0x1 pattern:$0x73625140] %v2023_v28  ;;  %1236 = vst [vmem:[%s10182_s21 + $0x358] sm:$0x1] %v901_v33  ;;  %v2055_v45 = vcombine.high %v2045_v38, %v2045_v38  ;;  %v2057_v48 = vcombine.high %v1305_v20, %v1305_v20  ;;  %6807 = vxpose.xlu0.b32.cont [9/16] %v9579_v15, 128  ;;  %v919_v50 = vcombine.high %v917_v42, %v917_v42 }
 0x13c   : > { %9245 = vst.sshfl [vmem:[%s10182_s21 + $0x3a1] sm:$0x1 pattern:$0x73625140] %v2022_v14  ;;  %1239 = vst [vmem:[%s10182_s21 + $0x370] sm:$0x1] %v900_v32  ;;  %v933_v22 = vrot.slane %v917_v42, %v10171_v6  ;;  %v940_v51 = vrot.slane %v918_v23, %v10171_v6  ;;  %v948_v52 = vcombine.high %v926_v59, %v926_v59 }
 0x13d   : > { %9163 = vst.sshfl [vmem:[%s10182_s21 + $0x380] sm:$0x1 pattern:$0x73625140] %v910_v60  ;;  %2348 = vst [vmem:[%s10182_s21 + $0x391] sm:$0x1] %v2053_v41  ;;  %v2056_v55 = vcombine.high %v2052_v37, %v2052_v37  ;;  %v2064_v56 = vrot.slane %v1305_v20, %v10171_v6  ;;  %v2071_v40 = vrot.slane %v2057_v48, %v10171_v6  ;;  %v2396_v48 = vpop.trf.xlu0 }
 0x13e   : > { %9246 = vst.sshfl [vmem:[%s10182_s21 + $0x3a9] sm:$0x1 pattern:$0x73625140] %v2024_v34  ;;  %v9660_v49 = vld [vmem:[%s10100_s30 + $0x278] sm:$0xff]  ;;  %v9580_v54 = vld [vmem:[%s10100_s30 + $0x270] sm:$0xff]  ;;  %v952_v57 = vcombine.high %v200_v43, %v200_v43  ;;  %v947_v62 = vrot.slane %v919_v50, %v10171_v6  ;;  %v949_v46 = vcombine.high %v933_v22, %v933_v22  ;;  %v950_v63 = vcombine.high %v940_v51, %v940_v51 }
 0x13f   : > { %1240 = vst [vmem:[%s10182_s21 + $0x378] sm:$0x1] %v902_v16  ;;  %9164 = vst.sshfl [vmem:[%s10182_s21 + $0x388] sm:$0x1 pattern:$0x73625140] %v918_v23  ;;  %v959_v0 = vrot.slane %v200_v43, %v10171_v6  ;;  %7913 = vxpose.xlu1.b32.cont [10/16] %v9660_v49, 128  ;;  %v2072_v1 = vcombine.high %v2064_v56, %v2064_v56  ;;  %v2073_v2 = vcombine.high %v2071_v40, %v2071_v40 }
 0x140   : > { %9165 = vst.sshfl [vmem:[%s10182_s21 + $0x3a0] sm:$0x1 pattern:$0x73625140] %v917_v42  ;;  %2349 = vst [vmem:[%s10182_s21 + $0x399] sm:$0x1] %v2055_v45  ;;  %v2080_v3 = vrot.slane %v2064_v56, %v10171_v6  ;;  %v2087_v4 = vrot.slane %v2071_v40, %v10171_v6  ;;  %6808 = vxpose.xlu0.b32.cont [10/16] %v9580_v54, 128  ;;  %v951_v5 = vcombine.high %v947_v62, %v947_v62 }
 0x141   : > { %2352 = vst [vmem:[%s10182_s21 + $0x3b1] sm:$0x1] %v2054_v44  ;;  %1243 = vst [vmem:[%s10182_s21 + $0x390] sm:$0x1] %v948_v52  ;;  %v9661_v47 = vld [vmem:[%s10100_s30 + $0x2b8] sm:$0xff]  ;;  %v966_v7 = vrot.slane %v952_v57, %v10171_v6  ;;  %v967_v8 = vcombine.high %v959_v0, %v959_v0  ;;  %v975_v9 = vrot.slane %v959_v0, %v10171_v6  ;;  %v9581_v10 = vld [vmem:[%s10100_s30 + $0x2b0] sm:$0xff] }
 0x142   : > { %9166 = vst.sshfl [vmem:[%s10182_s21 + $0x3a8] sm:$0x1 pattern:$0x73625140] %v919_v50  ;;  %2353 = vst [vmem:[%s10182_s21 + $0x3b9] sm:$0x1] %v2056_v55  ;;  %v2094_v53 = vrot.slane %v2072_v1, %v10171_v6  ;;  %v2101_v11 = vrot.slane %v2073_v2, %v10171_v6  ;;  %v2102_v39 = vcombine.high %v2080_v3, %v2080_v3 }
 0x143   : > { %9247 = vst.sshfl [vmem:[%s10182_s21 + $0x3c1] sm:$0x1 pattern:$0x73625140] %v2064_v56  ;;  %1244 = vst [vmem:[%s10182_s21 + $0x398] sm:$0x1] %v950_v63  ;;  %v2103_v12 = vcombine.high %v2087_v4, %v2087_v4  ;;  %v968_v58 = vcombine.high %v966_v7, %v966_v7  ;;  %v982_v18 = vrot.slane %v966_v7, %v10171_v6  ;;  %7914 = vxpose.xlu1.b32.cont [11/16] %v9661_v47, 128  ;;  %v3502_v63 = vpop.trf.xlu1 }
 0x144   : > { %9249 = vst.sshfl [vmem:[%s10182_s21 + $0x3e1] sm:$0x1 pattern:$0x73625140] %v2071_v40  ;;  %1247 = vst [vmem:[%s10182_s21 + $0x3b0] sm:$0x1] %v949_v46  ;;  %v989_v19 = vrot.slane %v967_v8, %v10171_v6  ;;  %v997_v36 = vcombine.high %v975_v9, %v975_v9  ;;  %v2104_v21 = vcombine.high %v2094_v53, %v2094_v53  ;;  %6809 = vxpose.xlu0.b32.cont [11/16] %v9581_v10, 128 }
 0x145   : > { %9167 = vst.sshfl [vmem:[%s10182_s21 + $0x3c0] sm:$0x1 pattern:$0x73625140] %v959_v0  ;;  %1248 = vst [vmem:[%s10182_s21 + $0x3b8] sm:$0x1] %v951_v5  ;;  %v2105_v24 = vcombine.high %v2101_v11, %v2101_v11  ;;  %v3532_v25 = vcombine.high %v3500_v61, %v3500_v61  ;;  %v3539_v26 = vrot.slane %v3500_v61, %v10171_v6 }
 0x146   : > { %9248 = vst.sshfl [vmem:[%s10182_s21 + $0x3c9] sm:$0x1 pattern:$0x73625140] %v2072_v1  ;;  %2356 = vst [vmem:[%s10182_s21 + $0x3d1] sm:$0x1] %v2102_v39  ;;  %v996_v28 = vrot.slane %v968_v58, %v10171_v6  ;;  %v998_v13 = vcombine.high %v982_v18, %v982_v18  ;;  %v999_v29 = vcombine.high %v989_v19, %v989_v19 }
 0x147   : > { %9250 = vst.sshfl [vmem:[%s10182_s21 + $0x3e9] sm:$0x1 pattern:$0x73625140] %v2073_v2  ;;  %2360 = vst [vmem:[%s10182_s21 + $0x3f1] sm:$0x1] %v2103_v12  ;;  %v2427_v20 = vcombine.high %v2395_v17, %v2395_v17  ;;  %v3546_v31 = vrot.slane %v3532_v25, %v10171_v6  ;;  %v3547_v32 = vcombine.high %v3539_v26, %v3539_v26  ;;  %v2397_v12 = vpop.trf.xlu0 }
 0x148   : > { %9168 = vst.sshfl [vmem:[%s10182_s21 + $0x3c8] sm:$0x1 pattern:$0x73625140] %v967_v8  ;;  %v9662_v14 = vld [vmem:[%s10100_s30 + $0x2f8] sm:$0xff]  ;;  %v9582_v30 = vld [vmem:[%s10100_s30 + $0x2f0] sm:$0xff]  ;;  %v3555_v33 = vrot.slane %v3539_v26, %v10171_v6  ;;  %v2434_v60 = vrot.slane %v2395_v17, %v10171_v6  ;;  %v1000_v15 = vcombine.high %v996_v28, %v996_v28  ;;  %v3581_v35 = vcombine.high %v3501_v27, %v3501_v27 }
 0x149   : > { %9169 = vst.sshfl [vmem:[%s10182_s21 + $0x3e0] sm:$0x1 pattern:$0x73625140] %v966_v7  ;;  %1251 = vst [vmem:[%s10182_s21 + $0x3d0] sm:$0x1] %v997_v36  ;;  %v2441_v34 = vrot.slane %v2427_v20, %v10171_v6  ;;  %v3588_v38 = vrot.slane %v3501_v27, %v10171_v6  ;;  %7915 = vxpose.xlu1.b32.cont [12/16] %v9662_v14, 128  ;;  %v3548_v41 = vcombine.high %v3546_v31, %v3546_v31  ;;  %v3503_v20 = vpop.trf.xlu1 }
 0x14a   : > { %9170 = vst.sshfl [vmem:[%s10182_s21 + $0x3e8] sm:$0x1 pattern:$0x73625140] %v968_v58  ;;  %2357 = vst [vmem:[%s10182_s21 + $0x3d9] sm:$0x1] %v2104_v21  ;;  %v3562_v16 = vrot.slane %v3546_v31, %v10171_v6  ;;  %v3569_v42 = vrot.slane %v3547_v32, %v10171_v6  ;;  %v3577_v23 = vcombine.high %v3555_v33, %v3555_v33  ;;  %6810 = vxpose.xlu0.b32.cont [12/16] %v9582_v30, 128 }
 0x14b   : > { %2361 = vst [vmem:[%s10182_s21 + $0x3f9] sm:$0x1] %v2105_v24  ;;  %9347 = vst.sshfl [vmem:[%s10182_s21 + $0x3] sm:$0x1 pattern:$0x73625140] %v3539_v26  ;;  %v2442_v43 = vcombine.high %v2434_v60, %v2434_v60  ;;  %v2443_v37 = vcombine.high %v2441_v34, %v2441_v34  ;;  %v2450_v44 = vrot.slane %v2434_v60, %v10171_v6 }
 0x14c   : > { %1252 = vst [vmem:[%s10182_s21 + $0x3d8] sm:$0x1] %v999_v29  ;;  %1255 = vst [vmem:[%s10182_s21 + $0x3f0] sm:$0x1] %v998_v13  ;;  %v9663_v59 = vld [vmem:[%s10100_s30 + $0x338] sm:$0xff]  ;;  %v2457_v45 = vrot.slane %v2441_v34, %v10171_v6  ;;  %v9583_v49 = vld [vmem:[%s10100_s30 + $0x330] sm:$0xff]  ;;  %v3576_v50 = vrot.slane %v3548_v41, %v10171_v6  ;;  %v3578_v22 = vcombine.high %v3562_v16, %v3562_v16 }
 0x14d   : > { %9348 = vst.sshfl [vmem:[%s10182_s21 + $0xb] sm:$0x1 pattern:$0x73625140] %v3547_v32  ;;  %1256 = vst [vmem:[%s10182_s21 + $0x3f8] sm:$0x1] %v1000_v15  ;;  %v3579_v51 = vcombine.high %v3569_v42, %v3569_v42  ;;  %v3595_v52 = vrot.slane %v3581_v35, %v10171_v6  ;;  %v2464_v54 = vrot.slane %v2442_v43, %v10171_v6  ;;  %7916 = vxpose.xlu1.b32.cont [13/16] %v9663_v59, 128  ;;  %v2398_v59 = vpop.trf.xlu0 }
 0x14e   : > { %9349 = vst.sshfl [vmem:[%s10182_s21 + $0x23] sm:$0x1 pattern:$0x73625140] %v3546_v31  ;;  %4446 = vst [vmem:[%s10182_s21 + $0x13] sm:$0x1] %v3577_v23  ;;  %v2471_v55 = vrot.slane %v2443_v37, %v10171_v6  ;;  %v2472_v56 = vcombine.high %v2450_v44, %v2450_v44  ;;  %v2473_v40 = vcombine.high %v2457_v45, %v2457_v45  ;;  %6811 = vxpose.xlu0.b32.cont [13/16] %v9583_v49, 128 }
 0x14f   : > { %9267 = vst.sshfl [vmem:[%s10182_s21 + $0x2] sm:$0x1 pattern:$0x73625140] %v2434_v60  ;;  %v3580_v57 = vcombine.high %v3576_v50, %v3576_v50  ;;  %4447 = vst [vmem:[%s10182_s21 + $0x1b] sm:$0x1] %v3579_v51  ;;  %v3596_v61 = vcombine.high %v3588_v38, %v3588_v38  ;;  %v3597_v62 = vcombine.high %v3595_v52, %v3595_v52 }
 0x150   : > { %9269 = vst.sshfl [vmem:[%s10182_s21 + $0x22] sm:$0x1 pattern:$0x73625140] %v2441_v34  ;;  %4450 = vst [vmem:[%s10182_s21 + $0x33] sm:$0x1] %v3578_v22  ;;  %v3604_v46 = vrot.slane %v3588_v38, %v10171_v6  ;;  %v2474_v1 = vcombine.high %v2464_v54, %v2464_v54  ;;  %v2475_v2 = vcombine.high %v2471_v55, %v2471_v55 }
 0x151   : > { %9351 = vst.sshfl [vmem:[%s10182_s21 + $0x43] sm:$0x1 pattern:$0x73625140] %v3588_v38  ;;  %v9664_v0 = vld [vmem:[%s10100_s30 + $0x378] sm:$0xff]  ;;  %v3611_v3 = vrot.slane %v3595_v52, %v10171_v6  ;;  %v2476_v4 = vcombine.high %v2396_v48, %v2396_v48  ;;  %v9584_v47 = vld [vmem:[%s10100_s30 + $0x370] sm:$0xff]  ;;  %v3618_v5 = vrot.slane %v3596_v61, %v10171_v6  ;;  %v3625_v7 = vrot.slane %v3597_v62, %v10171_v6 }
 0x152   : > { %9350 = vst.sshfl [vmem:[%s10182_s21 + $0x2b] sm:$0x1 pattern:$0x73625140] %v3548_v41  ;;  %3341 = vst [vmem:[%s10182_s21 + $0x12] sm:$0x1] %v2472_v56  ;;  %v3626_v8 = vcombine.high %v3604_v46, %v3604_v46  ;;  %v2483_v9 = vrot.slane %v2396_v48, %v10171_v6  ;;  %v3630_v11 = vcombine.high %v3502_v63, %v3502_v63  ;;  %7917 = vxpose.xlu1.b32.cont [14/16] %v9664_v0, 128 }
 0x153   : > { %9268 = vst.sshfl [vmem:[%s10182_s21 + $0xa] sm:$0x1 pattern:$0x73625140] %v2442_v43  ;;  %3345 = vst [vmem:[%s10182_s21 + $0x32] sm:$0x1] %v2473_v40  ;;  %v3627_v10 = vcombine.high %v3611_v3, %v3611_v3  ;;  %v2490_v53 = vrot.slane %v2476_v4, %v10171_v6  ;;  %v3637_v39 = vrot.slane %v3502_v63, %v10171_v6  ;;  %6812 = vxpose.xlu0.b32.cont [14/16] %v9584_v47, 128  ;;  %v3504_v40 = vpop.trf.xlu1 }
 0x154   : > { %9270 = vst.sshfl [vmem:[%s10182_s21 + $0x2a] sm:$0x1 pattern:$0x73625140] %v2443_v37  ;;  %4451 = vst [vmem:[%s10182_s21 + $0x3b] sm:$0x1] %v3580_v57  ;;  %v3628_v17 = vcombine.high %v3618_v5, %v3618_v5  ;;  %v3629_v58 = vcombine.high %v3625_v7, %v3625_v7  ;;  %v2491_v18 = vcombine.high %v2483_v9, %v2483_v9 }
 0x155   : > { %9353 = vst.sshfl [vmem:[%s10182_s21 + $0x63] sm:$0x1 pattern:$0x73625140] %v3595_v52  ;;  %3342 = vst [vmem:[%s10182_s21 + $0x1a] sm:$0x1] %v2474_v1  ;;  %v2499_v19 = vrot.slane %v2483_v9, %v10171_v6  ;;  %v2492_v21 = vcombine.high %v2490_v53, %v2490_v53  ;;  %v2506_v24 = vrot.slane %v2490_v53, %v10171_v6 }
 0x156   : > { %9352 = vst.sshfl [vmem:[%s10182_s21 + $0x4b] sm:$0x1 pattern:$0x73625140] %v3596_v61  ;;  %3346 = vst [vmem:[%s10182_s21 + $0x3a] sm:$0x1] %v2475_v2  ;;  %v3644_v25 = vrot.slane %v3630_v11, %v10171_v6  ;;  %v3645_v26 = vcombine.high %v3637_v39, %v3637_v39  ;;  %v2513_v14 = vrot.slane %v2491_v18, %v10171_v6 }
 0x157   : > { %9354 = vst.sshfl [vmem:[%s10182_s21 + $0x6b] sm:$0x1 pattern:$0x73625140] %v3597_v62  ;;  %4454 = vst [vmem:[%s10182_s21 + $0x53] sm:$0x1] %v3626_v8  ;;  %v2521_v28 = vcombine.high %v2499_v19, %v2499_v19  ;;  %v3653_v13 = vrot.slane %v3637_v39, %v10171_v6  ;;  %v2525_v29 = vcombine.high %v2397_v12, %v2397_v12 }
 0x158   : > { %9271 = vst.sshfl [vmem:[%s10182_s21 + $0x42] sm:$0x1 pattern:$0x73625140] %v2483_v9  ;;  %v9665_v36 = vld [vmem:[%s10100_s30 + $0x3b8] sm:$0xff]  ;;  %v9585_v27 = vld [vmem:[%s10100_s30 + $0x3b0] sm:$0xff]  ;;  %v2520_v30 = vrot.slane %v2492_v21, %v10171_v6  ;;  %v2522_v31 = vcombine.high %v2506_v24, %v2506_v24  ;;  %v3646_v32 = vcombine.high %v3644_v25, %v3644_v25  ;;  %v3660_v33 = vrot.slane %v3644_v25, %v10171_v6 }
 0x159   : > { %4458 = vst [vmem:[%s10182_s21 + $0x73] sm:$0x1] %v3627_v10  ;;  %9273 = vst.sshfl [vmem:[%s10182_s21 + $0x62] sm:$0x1 pattern:$0x73625140] %v2490_v53  ;;  %7918 = vxpose.xlu1.b32.cont [15/16] %v9665_v36, 128  ;;  %v2523_v60 = vcombine.high %v2513_v14, %v2513_v14  ;;  %v3667_v15 = vrot.slane %v3645_v26, %v10171_v6  ;;  %v3675_v34 = vcombine.high %v3653_v13, %v3653_v13  ;;  %v2399_v53 = vpop.trf.xlu0 }
 0x15a   : > { %9355 = vst.sshfl [vmem:[%s10182_s21 + $0x83] sm:$0x1 pattern:$0x73625140] %v3637_v39  ;;  %4455 = vst [vmem:[%s10182_s21 + $0x5b] sm:$0x1] %v3628_v17  ;;  %v2532_v35 = vrot.slane %v2397_v12, %v10171_v6  ;;  %6813 = vxpose.xlu0.b32.cont [15/16] %v9585_v27, 128  ;;  %v2524_v41 = vcombine.high %v2520_v30, %v2520_v30  ;;  %v3674_v16 = vrot.slane %v3646_v32, %v10171_v6 }
 0x15b   : > { %4459 = vst [vmem:[%s10182_s21 + $0x7b] sm:$0x1] %v3629_v58  ;;  %9272 = vst.sshfl [vmem:[%s10182_s21 + $0x4a] sm:$0x1 pattern:$0x73625140] %v2491_v18  ;;  %v3676_v42 = vcombine.high %v3660_v33, %v3660_v33  ;;  %v2539_v23 = vrot.slane %v2525_v29, %v10171_v6  ;;  %v3677_v37 = vcombine.high %v3667_v15, %v3667_v15 }
 0x15c   : > { %9274 = vst.sshfl [vmem:[%s10182_s21 + $0x6a] sm:$0x1 pattern:$0x73625140] %v2492_v21  ;;  %3349 = vst [vmem:[%s10182_s21 + $0x52] sm:$0x1] %v2521_v28  ;;  %v2540_v44 = vcombine.high %v2532_v35, %v2532_v35  ;;  %v2548_v45 = vrot.slane %v2532_v35, %v10171_v6  ;;  %v3679_v48 = vcombine.high %v3503_v20, %v3503_v20  ;;  %v3505_v21 = vpop.trf.xlu1 }
 0x15d   : > { %9356 = vst.sshfl [vmem:[%s10182_s21 + $0x8b] sm:$0x1 pattern:$0x73625140] %v3645_v26  ;;  %v9666_v38 = vld [vmem:[%s10100_s30 + $0x3f8] sm:$0xff]  ;;  %v9586_v43 = vld [vmem:[%s10100_s30 + $0x3f0] sm:$0xff]  ;;  %v3678_v49 = vcombine.high %v3674_v16, %v3674_v16  ;;  %v2541_v50 = vcombine.high %v2539_v23, %v2539_v23  ;;  %v2555_v22 = vrot.slane %v2539_v23, %v10171_v6  ;;  %v3686_v51 = vrot.slane %v3503_v20, %v10171_v6 }
 0x15e   : > { %9357 = vst.sshfl [vmem:[%s10182_s21 + $0xa3] sm:$0x1 pattern:$0x73625140] %v3644_v25  ;;  %3353 = vst [vmem:[%s10182_s21 + $0x72] sm:$0x1] %v2522_v31  ;;  %7919 = vxpose.xlu1.b32.end [16/16] %v9666_v38, 128  ;;  %v2562_v52 = vrot.slane %v2540_v44, %v10171_v6  ;;  %v2570_v54 = vcombine.high %v2548_v45, %v2548_v45  ;;  %v3693_v55 = vrot.slane %v3679_v48, %v10171_v6 }
 0x15f   : > { %9358 = vst.sshfl [vmem:[%s10182_s21 + $0xab] sm:$0x1 pattern:$0x73625140] %v3646_v32  ;;  %3350 = vst [vmem:[%s10182_s21 + $0x5a] sm:$0x1] %v2523_v60  ;;  %v2574_v56 = vcombine.high %v2398_v59, %v2398_v59  ;;  %6814 = vxpose.xlu0.b32.end [16/16] %v9586_v43, 128  ;;  %v2569_v57 = vrot.slane %v2541_v50, %v10171_v6  ;;  %v2571_v61 = vcombine.high %v2555_v22, %v2555_v22 }
 0x160   : > { %4462 = vst [vmem:[%s10182_s21 + $0x93] sm:$0x1] %v3675_v34  ;;  %9275 = vst.sshfl [vmem:[%s10182_s21 + $0x82] sm:$0x1 pattern:$0x73625140] %v2532_v35  ;;  %v3694_v62 = vcombine.high %v3686_v51, %v3686_v51  ;;  %v3702_v46 = vrot.slane %v3686_v51, %v10171_v6  ;;  %v2572_v63 = vcombine.high %v2562_v52, %v2562_v52  ;;  %v2400_v35 = vpop.trf.xlu0 }
 0x161   : > { %3354 = vst [vmem:[%s10182_s21 + $0x7a] sm:$0x1] %v2524_v41  ;;  %4466 = vst [vmem:[%s10182_s21 + $0xb3] sm:$0x1] %v3676_v42  ;;  %v3695_v0 = vcombine.high %v3693_v55, %v3693_v55  ;;  %v3709_v1 = vrot.slane %v3693_v55, %v10171_v6  ;;  %v2581_v2 = vrot.slane %v2398_v59, %v10171_v6 }
 0x162   : > { %9277 = vst.sshfl [vmem:[%s10182_s21 + $0xa2] sm:$0x1 pattern:$0x73625140] %v2539_v23  ;;  %4463 = vst [vmem:[%s10182_s21 + $0x9b] sm:$0x1] %v3677_v37  ;;  %v2573_v3 = vcombine.high %v2569_v57, %v2569_v57  ;;  %v3716_v4 = vrot.slane %v3694_v62, %v10171_v6  ;;  %v3724_v47 = vcombine.high %v3702_v46, %v3702_v46 }
 0x163   : > { %9276 = vst.sshfl [vmem:[%s10182_s21 + $0x8a] sm:$0x1 pattern:$0x73625140] %v2540_v44  ;;  %4467 = vst [vmem:[%s10182_s21 + $0xbb] sm:$0x1] %v3678_v49  ;;  %v2588_v5 = vrot.slane %v2574_v56, %v10171_v6  ;;  %v3723_v7 = vrot.slane %v3695_v0, %v10171_v6  ;;  %v3725_v8 = vcombine.high %v3709_v1, %v3709_v1  ;;  %v3506_v44 = vpop.trf.xlu1 }
 0x164   : > { %9278 = vst.sshfl [vmem:[%s10182_s21 + $0xaa] sm:$0x1 pattern:$0x73625140] %v2541_v50  ;;  %3357 = vst [vmem:[%s10182_s21 + $0x92] sm:$0x1] %v2570_v54  ;;  %v2589_v9 = vcombine.high %v2581_v2, %v2581_v2  ;;  %v2597_v10 = vrot.slane %v2581_v2, %v10171_v6  ;;  %v3726_v11 = vcombine.high %v3716_v4, %v3716_v4 }
 0x165   : > { %9359 = vst.sshfl [vmem:[%s10182_s21 + $0xc3] sm:$0x1 pattern:$0x73625140] %v3686_v51  ;;  %3361 = vst [vmem:[%s10182_s21 + $0xb2] sm:$0x1] %v2571_v61  ;;  %v2590_v39 = vcombine.high %v2588_v5, %v2588_v5  ;;  %v2604_v12 = vrot.slane %v2588_v5, %v10171_v6  ;;  %v3728_v17 = vcombine.high %v3504_v40, %v3504_v40 }
 0x166   : > { %9361 = vst.sshfl [vmem:[%s10182_s21 + $0xe3] sm:$0x1 pattern:$0x73625140] %v3693_v55  ;;  %3358 = vst [vmem:[%s10182_s21 + $0x9a] sm:$0x1] %v2572_v63  ;;  %v3727_v58 = vcombine.high %v3723_v7, %v3723_v7  ;;  %v2611_v18 = vrot.slane %v2589_v9, %v10171_v6  ;;  %v2619_v19 = vcombine.high %v2597_v10, %v2597_v10 }
 0x167   : > { %9360 = vst.sshfl [vmem:[%s10182_s21 + $0xcb] sm:$0x1 pattern:$0x73625140] %v3694_v62  ;;  %3362 = vst [vmem:[%s10182_s21 + $0xba] sm:$0x1] %v2573_v3  ;;  %v3735_v36 = vrot.slane %v3504_v40, %v10171_v6  ;;  %v2618_v24 = vrot.slane %v2590_v39, %v10171_v6  ;;  %v2620_v25 = vcombine.high %v2604_v12, %v2604_v12 }
 0x168   : > { %9362 = vst.sshfl [vmem:[%s10182_s21 + $0xeb] sm:$0x1 pattern:$0x73625140] %v3695_v0  ;;  %4470 = vst [vmem:[%s10182_s21 + $0xd3] sm:$0x1] %v3724_v47  ;;  %v3742_v26 = vrot.slane %v3728_v17, %v10171_v6  ;;  %v2623_v27 = vcombine.high %v2399_v53, %v2399_v53  ;;  %v2621_v14 = vcombine.high %v2611_v18, %v2611_v18  ;;  %v2401_v0 = vpop.trf.xlu0  ;;  %v3507_v18 = vpop.trf.xlu1 }
 0x169   : > { %9279 = vst.sshfl [vmem:[%s10182_s21 + $0xc2] sm:$0x1 pattern:$0x73625140] %v2581_v2  ;;  %4474 = vst [vmem:[%s10182_s21 + $0xf3] sm:$0x1] %v3725_v8  ;;  %v3743_v28 = vcombine.high %v3735_v36, %v3735_v36  ;;  %v3751_v13 = vrot.slane %v3735_v36, %v10171_v6  ;;  %v2630_v29 = vrot.slane %v2399_v53, %v10171_v6 }
 0x16a   : > { %9281 = vst.sshfl [vmem:[%s10182_s21 + $0xe2] sm:$0x1 pattern:$0x73625140] %v2588_v5  ;;  %4471 = vst [vmem:[%s10182_s21 + $0xdb] sm:$0x1] %v3726_v11  ;;  %v2622_v20 = vcombine.high %v2618_v24, %v2618_v24  ;;  %v3744_v30 = vcombine.high %v3742_v26, %v3742_v26  ;;  %v3758_v31 = vrot.slane %v3742_v26, %v10171_v6 }
 0x16b   : > { %9280 = vst.sshfl [vmem:[%s10182_s21 + $0xca] sm:$0x1 pattern:$0x73625140] %v2589_v9  ;;  %4475 = vst [vmem:[%s10182_s21 + $0xfb] sm:$0x1] %v3727_v58  ;;  %v2637_v32 = vrot.slane %v2623_v27, %v10171_v6  ;;  %v3765_v33 = vrot.slane %v3743_v28, %v10171_v6  ;;  %v3773_v60 = vcombine.high %v3751_v13, %v3751_v13 }
 0x16c   : > { %9282 = vst.sshfl [vmem:[%s10182_s21 + $0xea] sm:$0x1 pattern:$0x73625140] %v2590_v39  ;;  %3365 = vst [vmem:[%s10182_s21 + $0xd2] sm:$0x1] %v2619_v19  ;;  %v2638_v15 = vcombine.high %v2630_v29, %v2630_v29  ;;  %v2646_v34 = vrot.slane %v2630_v29, %v10171_v6  ;;  %v3772_v38 = vrot.slane %v3744_v30, %v10171_v6 }
 0x16d   : > { %9363 = vst.sshfl [vmem:[%s10182_s21 + $0x103] sm:$0x1 pattern:$0x73625140] %v3735_v36  ;;  %3369 = vst [vmem:[%s10182_s21 + $0xf2] sm:$0x1] %v2620_v25  ;;  %v3774_v41 = vcombine.high %v3758_v31, %v3758_v31  ;;  %v2639_v16 = vcombine.high %v2637_v32, %v2637_v32  ;;  %v2653_v42 = vrot.slane %v2637_v32, %v10171_v6 }
 0x16e   : > { %9365 = vst.sshfl [vmem:[%s10182_s21 + $0x123] sm:$0x1 pattern:$0x73625140] %v3742_v26  ;;  %3366 = vst [vmem:[%s10182_s21 + $0xda] sm:$0x1] %v2621_v14  ;;  %v3775_v23 = vcombine.high %v3765_v33, %v3765_v33  ;;  %v2660_v59 = vrot.slane %v2638_v15, %v10171_v6  ;;  %v2668_v43 = vcombine.high %v2646_v34, %v2646_v34 }
 0x16f   : > { %9364 = vst.sshfl [vmem:[%s10182_s21 + $0x10b] sm:$0x1 pattern:$0x73625140] %v3743_v28  ;;  %3370 = vst [vmem:[%s10182_s21 + $0xfa] sm:$0x1] %v2622_v20  ;;  %v3777_v37 = vcombine.high %v3505_v21, %v3505_v21  ;;  %v3776_v45 = vcombine.high %v3772_v38, %v3772_v38  ;;  %v2667_v48 = vrot.slane %v2639_v16, %v10171_v6  ;;  %v2402_v28 = vpop.trf.xlu0 }
 0x170   : > { %9283 = vst.sshfl [vmem:[%s10182_s21 + $0x102] sm:$0x1 pattern:$0x73625140] %v2630_v29  ;;  %4478 = vst [vmem:[%s10182_s21 + $0x113] sm:$0x1] %v3773_v60  ;;  %v2669_v49 = vcombine.high %v2653_v42, %v2653_v42  ;;  %v3784_v50 = vrot.slane %v3505_v21, %v10171_v6  ;;  %v2670_v22 = vcombine.high %v2660_v59, %v2660_v59 }
 0x171   : > { %9366 = vst.sshfl [vmem:[%s10182_s21 + $0x12b] sm:$0x1 pattern:$0x73625140] %v3744_v30  ;;  %4482 = vst [vmem:[%s10182_s21 + $0x133] sm:$0x1] %v3774_v41  ;;  %v3791_v51 = vrot.slane %v3777_v37, %v10171_v6  ;;  %v2672_v52 = vcombine.high %v2400_v35, %v2400_v35  ;;  %v2679_v54 = vrot.slane %v2400_v35, %v10171_v6 }
 0x172   : > { %9285 = vst.sshfl [vmem:[%s10182_s21 + $0x122] sm:$0x1 pattern:$0x73625140] %v2637_v32  ;;  %4479 = vst [vmem:[%s10182_s21 + $0x11b] sm:$0x1] %v3775_v23  ;;  %v2671_v55 = vcombine.high %v2667_v48, %v2667_v48  ;;  %v3792_v56 = vcombine.high %v3784_v50, %v3784_v50  ;;  %v3800_v40 = vrot.slane %v3784_v50, %v10171_v6 }
 0x173   : > { %9284 = vst.sshfl [vmem:[%s10182_s21 + $0x10a] sm:$0x1 pattern:$0x73625140] %v2638_v15  ;;  %3373 = vst [vmem:[%s10182_s21 + $0x112] sm:$0x1] %v2668_v43  ;;  %v3826_v57 = vcombine.high %v3506_v44, %v3506_v44  ;;  %v3793_v61 = vcombine.high %v3791_v51, %v3791_v51  ;;  %v3807_v62 = vrot.slane %v3791_v51, %v10171_v6 }
 0x174   : > { %9286 = vst.sshfl [vmem:[%s10182_s21 + $0x12a] sm:$0x1 pattern:$0x73625140] %v2639_v16  ;;  %4483 = vst [vmem:[%s10182_s21 + $0x13b] sm:$0x1] %v3776_v45  ;;  %v2686_v46 = vrot.slane %v2672_v52, %v10171_v6  ;;  %v2687_v63 = vcombine.high %v2679_v54, %v2679_v54  ;;  %v3814_v1 = vrot.slane %v3792_v56, %v10171_v6  ;;  %v3508_v45 = vpop.trf.xlu1 }
 0x175   : > { %3377 = vst [vmem:[%s10182_s21 + $0x132] sm:$0x1] %v2669_v49  ;;  %9367 = vst.sshfl [vmem:[%s10182_s21 + $0x143] sm:$0x1 pattern:$0x73625140] %v3784_v50  ;;  %v3822_v2 = vcombine.high %v3800_v40, %v3800_v40  ;;  %v2695_v3 = vrot.slane %v2679_v54, %v10171_v6  ;;  %v3833_v4 = vrot.slane %v3506_v44, %v10171_v6 }
 0x176   : > { %3374 = vst [vmem:[%s10182_s21 + $0x11a] sm:$0x1] %v2670_v22  ;;  %9369 = vst.sshfl [vmem:[%s10182_s21 + $0x163] sm:$0x1 pattern:$0x73625140] %v3791_v51  ;;  %v3821_v47 = vrot.slane %v3793_v61, %v10171_v6  ;;  %v3823_v5 = vcombine.high %v3807_v62, %v3807_v62  ;;  %v2688_v7 = vcombine.high %v2686_v46, %v2686_v46  ;;  %v2403_v62 = vpop.trf.xlu0 }
 0x177   : > { %9287 = vst.sshfl [vmem:[%s10182_s21 + $0x142] sm:$0x1 pattern:$0x73625140] %v2679_v54  ;;  %3378 = vst [vmem:[%s10182_s21 + $0x13a] sm:$0x1] %v2671_v55  ;;  %v2702_v8 = vrot.slane %v2686_v46, %v10171_v6  ;;  %v3824_v9 = vcombine.high %v3814_v1, %v3814_v1  ;;  %v2709_v10 = vrot.slane %v2687_v63, %v10171_v6 }
 0x178   : > { %9368 = vst.sshfl [vmem:[%s10182_s21 + $0x14b] sm:$0x1 pattern:$0x73625140] %v3792_v56  ;;  %4486 = vst [vmem:[%s10182_s21 + $0x153] sm:$0x1] %v3822_v2  ;;  %v2717_v53 = vcombine.high %v2695_v3, %v2695_v3  ;;  %v3840_v11 = vrot.slane %v3826_v57, %v10171_v6  ;;  %v3825_v39 = vcombine.high %v3821_v47, %v3821_v47 }
 0x179   : > { %9370 = vst.sshfl [vmem:[%s10182_s21 + $0x16b] sm:$0x1 pattern:$0x73625140] %v3793_v61  ;;  %4490 = vst [vmem:[%s10182_s21 + $0x173] sm:$0x1] %v3823_v5  ;;  %v2716_v12 = vrot.slane %v2688_v7, %v10171_v6  ;;  %v2718_v17 = vcombine.high %v2702_v8, %v2702_v8  ;;  %v3841_v58 = vcombine.high %v3833_v4, %v3833_v4 }
 0x17a   : > { %9288 = vst.sshfl [vmem:[%s10182_s21 + $0x14a] sm:$0x1 pattern:$0x73625140] %v2687_v63  ;;  %4487 = vst [vmem:[%s10182_s21 + $0x15b] sm:$0x1] %v3824_v9  ;;  %v2719_v19 = vcombine.high %v2709_v10, %v2709_v10  ;;  %v3842_v36 = vcombine.high %v3840_v11, %v3840_v11  ;;  %v3849_v21 = vrot.slane %v3833_v4, %v10171_v6  ;;  %v3509_v10 = vpop.trf.xlu1 }
 0x17b   : > { %9289 = vst.sshfl [vmem:[%s10182_s21 + $0x162] sm:$0x1 pattern:$0x73625140] %v2686_v46  ;;  %3381 = vst [vmem:[%s10182_s21 + $0x152] sm:$0x1] %v2717_v53  ;;  %v3856_v24 = vrot.slane %v3840_v11, %v10171_v6  ;;  %v2720_v25 = vcombine.high %v2716_v12, %v2716_v12  ;;  %v3863_v26 = vrot.slane %v3841_v58, %v10171_v6 }
 0x17c   : > { %9371 = vst.sshfl [vmem:[%s10182_s21 + $0x183] sm:$0x1 pattern:$0x73625140] %v3833_v4  ;;  %4491 = vst [vmem:[%s10182_s21 + $0x17b] sm:$0x1] %v3825_v39  ;;  %v2721_v27 = vcombine.high %v2401_v0, %v2401_v0  ;;  %v2728_v14 = vrot.slane %v2401_v0, %v10171_v6  ;;  %v3870_v13 = vrot.slane %v3842_v36, %v10171_v6 }
 0x17d   : > { %9290 = vst.sshfl [vmem:[%s10182_s21 + $0x16a] sm:$0x1 pattern:$0x73625140] %v2688_v7  ;;  %3385 = vst [vmem:[%s10182_s21 + $0x172] sm:$0x1] %v2718_v17  ;;  %v3871_v29 = vcombine.high %v3849_v21, %v3849_v21  ;;  %v3872_v20 = vcombine.high %v3856_v24, %v3856_v24  ;;  %v3875_v30 = vcombine.high %v3507_v18, %v3507_v18 }
 0x17e   : > { %9373 = vst.sshfl [vmem:[%s10182_s21 + $0x1a3] sm:$0x1 pattern:$0x73625140] %v3840_v11  ;;  %3382 = vst [vmem:[%s10182_s21 + $0x15a] sm:$0x1] %v2719_v19  ;;  %v3873_v31 = vcombine.high %v3863_v26, %v3863_v26  ;;  %v2735_v32 = vrot.slane %v2721_v27, %v10171_v6  ;;  %v2736_v33 = vcombine.high %v2728_v14, %v2728_v14  ;;  %v2404_v26 = vpop.trf.xlu0 }
 0x17f   : > { %9372 = vst.sshfl [vmem:[%s10182_s21 + $0x18b] sm:$0x1 pattern:$0x73625140] %v3841_v58  ;;  %3386 = vst [vmem:[%s10182_s21 + $0x17a] sm:$0x1] %v2720_v25  ;;  %v2744_v60 = vrot.slane %v2728_v14, %v10171_v6  ;;  %v3874_v15 = vcombine.high %v3870_v13, %v3870_v13  ;;  %v3882_v34 = vrot.slane %v3507_v18, %v10171_v6 }
 0x180   : > { %9374 = vst.sshfl [vmem:[%s10182_s21 + $0x1ab] sm:$0x1 pattern:$0x73625140] %v3842_v36  ;;  %4494 = vst [vmem:[%s10182_s21 + $0x193] sm:$0x1] %v3871_v29  ;;  %v3889_v35 = vrot.slane %v3875_v30, %v10171_v6  ;;  %v2770_v38 = vcombine.high %v2402_v28, %v2402_v28  ;;  %v2737_v41 = vcombine.high %v2735_v32, %v2735_v32 }
 0x181   : > { %9291 = vst.sshfl [vmem:[%s10182_s21 + $0x182] sm:$0x1 pattern:$0x73625140] %v2728_v14  ;;  %4498 = vst [vmem:[%s10182_s21 + $0x1b3] sm:$0x1] %v3872_v20  ;;  %v2751_v16 = vrot.slane %v2735_v32, %v10171_v6  ;;  %v2758_v42 = vrot.slane %v2736_v33, %v10171_v6  ;;  %v2766_v23 = vcombine.high %v2744_v60, %v2744_v60 }
 0x182   : > { %4495 = vst [vmem:[%s10182_s21 + $0x19b] sm:$0x1] %v3873_v31  ;;  %9292 = vst.sshfl [vmem:[%s10182_s21 + $0x18a] sm:$0x1 pattern:$0x73625140] %v2736_v33  ;;  %v3890_v59 = vcombine.high %v3882_v34, %v3882_v34  ;;  %v3891_v43 = vcombine.high %v3889_v35, %v3889_v35  ;;  %v3898_v37 = vrot.slane %v3882_v34, %v10171_v6 }
 0x183   : > { %9293 = vst.sshfl [vmem:[%s10182_s21 + $0x1a2] sm:$0x1 pattern:$0x73625140] %v2735_v32  ;;  %4499 = vst [vmem:[%s10182_s21 + $0x1bb] sm:$0x1] %v3874_v15  ;;  %v3905_v44 = vrot.slane %v3889_v35, %v10171_v6  ;;  %v2765_v48 = vrot.slane %v2737_v41, %v10171_v6  ;;  %v2767_v49 = vcombine.high %v2751_v16, %v2751_v16 }
 0x184   : > { %9375 = vst.sshfl [vmem:[%s10182_s21 + $0x1c3] sm:$0x1 pattern:$0x73625140] %v3882_v34  ;;  %v2768_v50 = vcombine.high %v2758_v42, %v2758_v42  ;;  %3389 = vst [vmem:[%s10182_s21 + $0x192] sm:$0x1] %v2766_v23  ;;  %v2777_v22 = vrot.slane %v2402_v28, %v10171_v6  ;;  %v3912_v51 = vrot.slane %v3890_v59, %v10171_v6  ;;  %v3510_v34 = vpop.trf.xlu1 }
 0x185   : > { %9377 = vst.sshfl [vmem:[%s10182_s21 + $0x1e3] sm:$0x1 pattern:$0x73625140] %v3889_v35  ;;  %v3919_v52 = vrot.slane %v3891_v43, %v10171_v6  ;;  %v3920_v54 = vcombine.high %v3898_v37, %v3898_v37  ;;  %v3921_v55 = vcombine.high %v3905_v44, %v3905_v44  ;;  %v2769_v56 = vcombine.high %v2765_v48, %v2765_v48 }
 0x186   : > { %9294 = vst.sshfl [vmem:[%s10182_s21 + $0x1aa] sm:$0x1 pattern:$0x73625140] %v2737_v41  ;;  %3390 = vst [vmem:[%s10182_s21 + $0x19a] sm:$0x1] %v2768_v50  ;;  %v2784_v40 = vrot.slane %v2770_v38, %v10171_v6  ;;  %v2785_v57 = vcombine.high %v2777_v22, %v2777_v22  ;;  %v2793_v61 = vrot.slane %v2777_v22, %v10171_v6 }
 0x187   : > { %9376 = vst.sshfl [vmem:[%s10182_s21 + $0x1cb] sm:$0x1 pattern:$0x73625140] %v3890_v59  ;;  %3393 = vst [vmem:[%s10182_s21 + $0x1b2] sm:$0x1] %v2767_v49  ;;  %v3922_v46 = vcombine.high %v3912_v51, %v3912_v51  ;;  %v3923_v63 = vcombine.high %v3919_v52, %v3919_v52  ;;  %v3924_v0 = vcombine.high %v3508_v45, %v3508_v45  ;;  %v2405_v52 = vpop.trf.xlu0 }
 0x188   : > { %9378 = vst.sshfl [vmem:[%s10182_s21 + $0x1eb] sm:$0x1 pattern:$0x73625140] %v3891_v43  ;;  %4502 = vst [vmem:[%s10182_s21 + $0x1d3] sm:$0x1] %v3920_v54  ;;  %v3931_v1 = vrot.slane %v3508_v45, %v10171_v6  ;;  %v2786_v2 = vcombine.high %v2784_v40, %v2784_v40  ;;  %v2800_v3 = vrot.slane %v2784_v40, %v10171_v6 }
 0x189   : > { %9295 = vst.sshfl [vmem:[%s10182_s21 + $0x1c2] sm:$0x1 pattern:$0x73625140] %v2777_v22  ;;  %4506 = vst [vmem:[%s10182_s21 + $0x1f3] sm:$0x1] %v3921_v55  ;;  %v2807_v4 = vrot.slane %v2785_v57, %v10171_v6  ;;  %v2815_v47 = vcombine.high %v2793_v61, %v2793_v61  ;;  %v3938_v5 = vrot.slane %v3924_v0, %v10171_v6 }
 0x18a   : > { %3394 = vst [vmem:[%s10182_s21 + $0x1ba] sm:$0x1] %v2769_v56  ;;  %9296 = vst.sshfl [vmem:[%s10182_s21 + $0x1ca] sm:$0x1 pattern:$0x73625140] %v2785_v57  ;;  %v3939_v7 = vcombine.high %v3931_v1, %v3931_v1  ;;  %v3947_v8 = vrot.slane %v3931_v1, %v10171_v6  ;;  %v2819_v9 = vcombine.high %v2403_v62, %v2403_v62 }
 0x18b   : > { %9297 = vst.sshfl [vmem:[%s10182_s21 + $0x1e2] sm:$0x1 pattern:$0x73625140] %v2784_v40  ;;  %4503 = vst [vmem:[%s10182_s21 + $0x1db] sm:$0x1] %v3922_v46  ;;  %v2814_v53 = vrot.slane %v2786_v2, %v10171_v6  ;;  %v2816_v11 = vcombine.high %v2800_v3, %v2800_v3  ;;  %v2817_v39 = vcombine.high %v2807_v4, %v2807_v4 }
 0x18c   : > { %4507 = vst [vmem:[%s10182_s21 + $0x1fb] sm:$0x1] %v3923_v63  ;;  %9379 = vst.sshfl [vmem:[%s10182_s21 + $0x203] sm:$0x1 pattern:$0x73625140] %v3931_v1  ;;  %v2826_v12 = vrot.slane %v2403_v62, %v10171_v6  ;;  %v3940_v17 = vcombine.high %v3938_v5, %v3938_v5  ;;  %v3954_v58 = vrot.slane %v3938_v5, %v10171_v6  ;;  %v3511_v63 = vpop.trf.xlu1 }
 0x18d   : > { %3397 = vst [vmem:[%s10182_s21 + $0x1d2] sm:$0x1] %v2815_v47  ;;  %9298 = vst.sshfl [vmem:[%s10182_s21 + $0x1ea] sm:$0x1 pattern:$0x73625140] %v2786_v2  ;;  %v3961_v18 = vrot.slane %v3939_v7, %v10171_v6  ;;  %v3969_v19 = vcombine.high %v3947_v8, %v3947_v8  ;;  %v2818_v36 = vcombine.high %v2814_v53, %v2814_v53 }
 0x18e   : > { %9380 = vst.sshfl [vmem:[%s10182_s21 + $0x20b] sm:$0x1 pattern:$0x73625140] %v3939_v7  ;;  %3398 = vst [vmem:[%s10182_s21 + $0x1da] sm:$0x1] %v2817_v39  ;;  %v2833_v21 = vrot.slane %v2819_v9, %v10171_v6  ;;  %v2834_v24 = vcombine.high %v2826_v12, %v2826_v12  ;;  %v2842_v25 = vrot.slane %v2826_v12, %v10171_v6 }
 0x18f   : > { %9381 = vst.sshfl [vmem:[%s10182_s21 + $0x223] sm:$0x1 pattern:$0x73625140] %v3938_v5  ;;  %3401 = vst [vmem:[%s10182_s21 + $0x1f2] sm:$0x1] %v2816_v11  ;;  %v3968_v27 = vrot.slane %v3940_v17, %v10171_v6  ;;  %v3970_v14 = vcombine.high %v3954_v58, %v3954_v58  ;;  %v3971_v28 = vcombine.high %v3961_v18, %v3961_v18 }
 0x190   : > { %9299 = vst.sshfl [vmem:[%s10182_s21 + $0x202] sm:$0x1 pattern:$0x73625140] %v2826_v12  ;;  %4510 = vst [vmem:[%s10182_s21 + $0x213] sm:$0x1] %v3969_v19  ;;  %v3973_v13 = vcombine.high %v3509_v10, %v3509_v10  ;;  %v2835_v29 = vcombine.high %v2833_v21, %v2833_v21  ;;  %v2849_v20 = vrot.slane %v2833_v21, %v10171_v6 }
 0x191   : > { %9382 = vst.sshfl [vmem:[%s10182_s21 + $0x22b] sm:$0x1 pattern:$0x73625140] %v3940_v17  ;;  %3402 = vst [vmem:[%s10182_s21 + $0x1fa] sm:$0x1] %v2818_v36  ;;  %v2856_v30 = vrot.slane %v2834_v24, %v10171_v6  ;;  %v2864_v31 = vcombine.high %v2842_v25, %v2842_v25  ;;  %v3972_v32 = vcombine.high %v3968_v27, %v3968_v27 }
 0x192   : > { %9300 = vst.sshfl [vmem:[%s10182_s21 + $0x20a] sm:$0x1 pattern:$0x73625140] %v2834_v24  ;;  %4511 = vst [vmem:[%s10182_s21 + $0x21b] sm:$0x1] %v3971_v28  ;;  %v3980_v33 = vrot.slane %v3509_v10, %v10171_v6  ;;  %v3987_v60 = vrot.slane %v3973_v13, %v10171_v6  ;;  %v2868_v15 = vcombine.high %v2404_v26, %v2404_v26 }
 0x193   : > { %9301 = vst.sshfl [vmem:[%s10182_s21 + $0x222] sm:$0x1 pattern:$0x73625140] %v2833_v21  ;;  %4514 = vst [vmem:[%s10182_s21 + $0x233] sm:$0x1] %v3970_v14  ;;  %v2863_v35 = vrot.slane %v2835_v29, %v10171_v6  ;;  %v2865_v38 = vcombine.high %v2849_v20, %v2849_v20  ;;  %v2866_v41 = vcombine.high %v2856_v30, %v2856_v30  ;;  %v2406_v21 = vpop.trf.xlu0 }
 0x194   : > { %3405 = vst [vmem:[%s10182_s21 + $0x212] sm:$0x1] %v2864_v31  ;;  %9302 = vst.sshfl [vmem:[%s10182_s21 + $0x22a] sm:$0x1 pattern:$0x73625140] %v2835_v29  ;;  %v2875_v16 = vrot.slane %v2404_v26, %v10171_v6  ;;  %v3988_v42 = vcombine.high %v3980_v33, %v3980_v33  ;;  %v3989_v23 = vcombine.high %v3987_v60, %v3987_v60 }
 0x195   : > { %4515 = vst [vmem:[%s10182_s21 + $0x23b] sm:$0x1] %v3972_v32  ;;  %v3996_v59 = vrot.slane %v3980_v33, %v10171_v6  ;;  %v4003_v43 = vrot.slane %v3987_v60, %v10171_v6  ;;  %9383 = vst.sshfl [vmem:[%s10182_s21 + $0x243] sm:$0x1 pattern:$0x73625140] %v3980_v33  ;;  %v2867_v37 = vcombine.high %v2863_v35, %v2863_v35  ;;  %v3512_v33 = vpop.trf.xlu1 }
 0x196   : > { %9385 = vst.sshfl [vmem:[%s10182_s21 + $0x263] sm:$0x1 pattern:$0x73625140] %v3987_v60  ;;  %3406 = vst [vmem:[%s10182_s21 + $0x21a] sm:$0x1] %v2866_v41  ;;  %v2882_v44 = vrot.slane %v2868_v15, %v10171_v6  ;;  %v2883_v45 = vcombine.high %v2875_v16, %v2875_v16  ;;  %v2891_v48 = vrot.slane %v2875_v16, %v10171_v6 }
 0x197   : > { %3409 = vst [vmem:[%s10182_s21 + $0x232] sm:$0x1] %v2865_v38  ;;  %9303 = vst.sshfl [vmem:[%s10182_s21 + $0x242] sm:$0x1 pattern:$0x73625140] %v2875_v16  ;;  %v4010_v49 = vrot.slane %v3988_v42, %v10171_v6  ;;  %v4017_v50 = vrot.slane %v3989_v23, %v10171_v6  ;;  %v4018_v22 = vcombine.high %v3996_v59, %v3996_v59 }
 0x198   : > { %v4019_v51 = vcombine.high %v4003_v43, %v4003_v43  ;;  %9384 = vst.sshfl [vmem:[%s10182_s21 + $0x24b] sm:$0x1 pattern:$0x73625140] %v3988_v42  ;;  %3410 = vst [vmem:[%s10182_s21 + $0x23a] sm:$0x1] %v2867_v37  ;;  %v2884_v54 = vcombine.high %v2882_v44, %v2882_v44  ;;  %v2898_v55 = vrot.slane %v2882_v44, %v10171_v6 }
 0x199   : > { %9386 = vst.sshfl [vmem:[%s10182_s21 + $0x26b] sm:$0x1 pattern:$0x73625140] %v3989_v23  ;;  %v2905_v56 = vrot.slane %v2883_v45, %v10171_v6  ;;  %v2913_v40 = vcombine.high %v2891_v48, %v2891_v48  ;;  %v4020_v57 = vcombine.high %v4010_v49, %v4010_v49  ;;  %v4021_v61 = vcombine.high %v4017_v50, %v4017_v50 }
 0x19a   : > { %9304 = vst.sshfl [vmem:[%s10182_s21 + $0x24a] sm:$0x1 pattern:$0x73625140] %v2883_v45  ;;  %4518 = vst [vmem:[%s10182_s21 + $0x253] sm:$0x1] %v4018_v22  ;;  %v4022_v62 = vcombine.high %v3510_v34, %v3510_v34  ;;  %v4029_v46 = vrot.slane %v3510_v34, %v10171_v6  ;;  %v2912_v0 = vrot.slane %v2884_v54, %v10171_v6 }
 0x19b   : > { %9305 = vst.sshfl [vmem:[%s10182_s21 + $0x262] sm:$0x1 pattern:$0x73625140] %v2882_v44  ;;  %4522 = vst [vmem:[%s10182_s21 + $0x273] sm:$0x1] %v4019_v51  ;;  %v2914_v1 = vcombine.high %v2898_v55, %v2898_v55  ;;  %v2915_v2 = vcombine.high %v2905_v56, %v2905_v56  ;;  %v2917_v3 = vcombine.high %v2405_v52, %v2405_v52  ;;  %v2407_v44 = vpop.trf.xlu0 }
 0x19c   : > { %3413 = vst [vmem:[%s10182_s21 + $0x252] sm:$0x1] %v2913_v40  ;;  %9306 = vst.sshfl [vmem:[%s10182_s21 + $0x26a] sm:$0x1 pattern:$0x73625140] %v2884_v54  ;;  %v4036_v4 = vrot.slane %v4022_v62, %v10171_v6  ;;  %v4037_v47 = vcombine.high %v4029_v46, %v4029_v46  ;;  %v4045_v5 = vrot.slane %v4029_v46, %v10171_v6 }
 0x19d   : > { %4519 = vst [vmem:[%s10182_s21 + $0x25b] sm:$0x1] %v4020_v57  ;;  %4523 = vst [vmem:[%s10182_s21 + $0x27b] sm:$0x1] %v4021_v61  ;;  %v2924_v7 = vrot.slane %v2405_v52, %v10171_v6  ;;  %v2916_v8 = vcombine.high %v2912_v0, %v2912_v0  ;;  %v2931_v9 = vrot.slane %v2917_v3, %v10171_v6  ;;  %v3513_v61 = vpop.trf.xlu1 }
 0x19e   : > { %9387 = vst.sshfl [vmem:[%s10182_s21 + $0x283] sm:$0x1 pattern:$0x73625140] %v4029_v46  ;;  %3414 = vst [vmem:[%s10182_s21 + $0x25a] sm:$0x1] %v2915_v2  ;;  %v4071_v10 = vcombine.high %v3511_v63, %v3511_v63  ;;  %v4078_v53 = vrot.slane %v3511_v63, %v10171_v6  ;;  %v4038_v11 = vcombine.high %v4036_v4, %v4036_v4 }
 0x19f   : > { %3417 = vst [vmem:[%s10182_s21 + $0x272] sm:$0x1] %v2914_v1  ;;  %v4052_v39 = vrot.slane %v4036_v4, %v10171_v6  ;;  %v4059_v12 = vrot.slane %v4037_v47, %v10171_v6  ;;  %v4067_v17 = vcombine.high %v4045_v5, %v4045_v5  ;;  %9388 = vst.sshfl [vmem:[%s10182_s21 + $0x28b] sm:$0x1 pattern:$0x73625140] %v4037_v47 }
 0x1a0   : > { %9389 = vst.sshfl [vmem:[%s10182_s21 + $0x2a3] sm:$0x1 pattern:$0x73625140] %v4036_v4  ;;  %3418 = vst [vmem:[%s10182_s21 + $0x27a] sm:$0x1] %v2916_v8  ;;  %v2932_v58 = vcombine.high %v2924_v7, %v2924_v7  ;;  %v2933_v18 = vcombine.high %v2931_v9, %v2931_v9  ;;  %v2940_v19 = vrot.slane %v2924_v7, %v10171_v6 }
 0x1a1   : > { %9307 = vst.sshfl [vmem:[%s10182_s21 + $0x282] sm:$0x1 pattern:$0x73625140] %v2924_v7  ;;  %v2947_v36 = vrot.slane %v2931_v9, %v10171_v6  ;;  %v4066_v24 = vrot.slane %v4038_v11, %v10171_v6  ;;  %v4068_v25 = vcombine.high %v4052_v39, %v4052_v39  ;;  %v4069_v26 = vcombine.high %v4059_v12, %v4059_v12 }
 0x1a2   : > { %9309 = vst.sshfl [vmem:[%s10182_s21 + $0x2a2] sm:$0x1 pattern:$0x73625140] %v2931_v9  ;;  %4526 = vst [vmem:[%s10182_s21 + $0x293] sm:$0x1] %v4067_v17  ;;  %v4085_v27 = vrot.slane %v4071_v10, %v10171_v6  ;;  %v2954_v14 = vrot.slane %v2932_v58, %v10171_v6  ;;  %v2961_v28 = vrot.slane %v2933_v18, %v10171_v6  ;;  %v2408_v9 = vpop.trf.xlu0 }
 0x1a3   : > { %9391 = vst.sshfl [vmem:[%s10182_s21 + $0x2c3] sm:$0x1 pattern:$0x73625140] %v4078_v53  ;;  %v2962_v13 = vcombine.high %v2940_v19, %v2940_v19  ;;  %v2963_v29 = vcombine.high %v2947_v36, %v2947_v36  ;;  %v4070_v20 = vcombine.high %v4066_v24, %v4066_v24  ;;  %4527 = vst [vmem:[%s10182_s21 + $0x29b] sm:$0x1] %v4069_v26 }
 0x1a4   : > { %9390 = vst.sshfl [vmem:[%s10182_s21 + $0x2ab] sm:$0x1 pattern:$0x73625140] %v4038_v11  ;;  %4530 = vst [vmem:[%s10182_s21 + $0x2b3] sm:$0x1] %v4068_v25  ;;  %v4086_v30 = vcombine.high %v4078_v53, %v4078_v53  ;;  %v4087_v31 = vcombine.high %v4085_v27, %v4085_v27  ;;  %v4094_v32 = vrot.slane %v4078_v53, %v10171_v6  ;;  %v3514_v25 = vpop.trf.xlu1 }
 0x1a5   : > { %9308 = vst.sshfl [vmem:[%s10182_s21 + $0x28a] sm:$0x1 pattern:$0x73625140] %v2932_v58  ;;  %v2964_v60 = vcombine.high %v2954_v14, %v2954_v14  ;;  %v2965_v15 = vcombine.high %v2961_v28, %v2961_v28  ;;  %3421 = vst [vmem:[%s10182_s21 + $0x292] sm:$0x1] %v2962_v13  ;;  %v4101_v34 = vrot.slane %v4085_v27, %v10171_v6 }
 0x1a6   : > { %9310 = vst.sshfl [vmem:[%s10182_s21 + $0x2aa] sm:$0x1 pattern:$0x73625140] %v2933_v18  ;;  %3425 = vst [vmem:[%s10182_s21 + $0x2b2] sm:$0x1] %v2963_v29  ;;  %v2966_v35 = vcombine.high %v2406_v21, %v2406_v21  ;;  %v4108_v38 = vrot.slane %v4086_v30, %v10171_v6  ;;  %v4115_v41 = vrot.slane %v4087_v31, %v10171_v6 }
 0x1a7   : > { %9393 = vst.sshfl [vmem:[%s10182_s21 + $0x2e3] sm:$0x1 pattern:$0x73625140] %v4085_v27  ;;  %4531 = vst [vmem:[%s10182_s21 + $0x2bb] sm:$0x1] %v4070_v20  ;;  %v4116_v16 = vcombine.high %v4094_v32, %v4094_v32  ;;  %v2973_v42 = vrot.slane %v2406_v21, %v10171_v6  ;;  %v4117_v23 = vcombine.high %v4101_v34, %v4101_v34 }
 0x1a8   : > { %9392 = vst.sshfl [vmem:[%s10182_s21 + $0x2cb] sm:$0x1 pattern:$0x73625140] %v4086_v30  ;;  %3422 = vst [vmem:[%s10182_s21 + $0x29a] sm:$0x1] %v2964_v60  ;;  %v2980_v59 = vrot.slane %v2966_v35, %v10171_v6  ;;  %v4120_v43 = vcombine.high %v3512_v33, %v3512_v33  ;;  %v4127_v37 = vrot.slane %v3512_v33, %v10171_v6 }
 0x1a9   : > { %9394 = vst.sshfl [vmem:[%s10182_s21 + $0x2eb] sm:$0x1 pattern:$0x73625140] %v4087_v31  ;;  %3426 = vst [vmem:[%s10182_s21 + $0x2ba] sm:$0x1] %v2965_v15  ;;  %v4118_v45 = vcombine.high %v4108_v38, %v4108_v38  ;;  %v4119_v48 = vcombine.high %v4115_v41, %v4115_v41  ;;  %v2981_v49 = vcombine.high %v2973_v42, %v2973_v42  ;;  %v2409_v41 = vpop.trf.xlu0 }
 0x1aa   : > { %4534 = vst [vmem:[%s10182_s21 + $0x2d3] sm:$0x1] %v4116_v16  ;;  %v2989_v50 = vrot.slane %v2973_v42, %v10171_v6  ;;  %9311 = vst.sshfl [vmem:[%s10182_s21 + $0x2c2] sm:$0x1 pattern:$0x73625140] %v2973_v42  ;;  %v2982_v22 = vcombine.high %v2980_v59, %v2980_v59  ;;  %v2996_v51 = vrot.slane %v2980_v59, %v10171_v6 }
 0x1ab   : > { %4538 = vst [vmem:[%s10182_s21 + $0x2f3] sm:$0x1] %v4117_v23  ;;  %9313 = vst.sshfl [vmem:[%s10182_s21 + $0x2e2] sm:$0x1 pattern:$0x73625140] %v2980_v59  ;;  %v4134_v52 = vrot.slane %v4120_v43, %v10171_v6  ;;  %v4135_v54 = vcombine.high %v4127_v37, %v4127_v37  ;;  %v3003_v55 = vrot.slane %v2981_v49, %v10171_v6 }
 0x1ac   : > { %9395 = vst.sshfl [vmem:[%s10182_s21 + $0x303] sm:$0x1 pattern:$0x73625140] %v4127_v37  ;;  %4535 = vst [vmem:[%s10182_s21 + $0x2db] sm:$0x1] %v4118_v45  ;;  %v3011_v56 = vcombine.high %v2989_v50, %v2989_v50  ;;  %v4143_v40 = vrot.slane %v4127_v37, %v10171_v6  ;;  %v3015_v57 = vcombine.high %v2407_v44, %v2407_v44 }
 0x1ad   : > { %4539 = vst [vmem:[%s10182_s21 + $0x2fb] sm:$0x1] %v4119_v48  ;;  %9312 = vst.sshfl [vmem:[%s10182_s21 + $0x2ca] sm:$0x1 pattern:$0x73625140] %v2981_v49  ;;  %v3010_v62 = vrot.slane %v2982_v22, %v10171_v6  ;;  %v3012_v46 = vcombine.high %v2996_v51, %v2996_v51  ;;  %v4136_v63 = vcombine.high %v4134_v52, %v4134_v52  ;;  %v3515_v48 = vpop.trf.xlu1 }
 0x1ae   : > { %9314 = vst.sshfl [vmem:[%s10182_s21 + $0x2ea] sm:$0x1 pattern:$0x73625140] %v2982_v22  ;;  %v4150_v0 = vrot.slane %v4134_v52, %v10171_v6  ;;  %v3013_v1 = vcombine.high %v3003_v55, %v3003_v55  ;;  %3429 = vst [vmem:[%s10182_s21 + $0x2d2] sm:$0x1] %v3011_v56  ;;  %v4157_v2 = vrot.slane %v4135_v54, %v10171_v6 }
 0x1af   : > { %9396 = vst.sshfl [vmem:[%s10182_s21 + $0x30b] sm:$0x1 pattern:$0x73625140] %v4135_v54  ;;  %v4165_v3 = vcombine.high %v4143_v40, %v4143_v40  ;;  %v3022_v4 = vrot.slane %v2407_v44, %v10171_v6  ;;  %v3014_v47 = vcombine.high %v3010_v62, %v3010_v62  ;;  %3433 = vst [vmem:[%s10182_s21 + $0x2f2] sm:$0x1] %v3012_v46 }
 0x1b0   : > { %9397 = vst.sshfl [vmem:[%s10182_s21 + $0x323] sm:$0x1 pattern:$0x73625140] %v4134_v52  ;;  %v4164_v5 = vrot.slane %v4136_v63, %v10171_v6  ;;  %v4166_v7 = vcombine.high %v4150_v0, %v4150_v0  ;;  %v3029_v8 = vrot.slane %v3015_v57, %v10171_v6  ;;  %3430 = vst [vmem:[%s10182_s21 + $0x2da] sm:$0x1] %v3013_v1 }
 0x1b1   : > { %9398 = vst.sshfl [vmem:[%s10182_s21 + $0x32b] sm:$0x1 pattern:$0x73625140] %v4136_v63  ;;  %v4167_v10 = vcombine.high %v4157_v2, %v4157_v2  ;;  %4542 = vst [vmem:[%s10182_s21 + $0x313] sm:$0x1] %v4165_v3  ;;  %v3030_v53 = vcombine.high %v3022_v4, %v3022_v4  ;;  %v3038_v11 = vrot.slane %v3022_v4, %v10171_v6  ;;  %v2410_v2 = vpop.trf.xlu0 }
 0x1b2   : > { %9315 = vst.sshfl [vmem:[%s10182_s21 + $0x302] sm:$0x1 pattern:$0x73625140] %v3022_v4  ;;  %v4169_v39 = vcombine.high %v3513_v61, %v3513_v61  ;;  %3434 = vst [vmem:[%s10182_s21 + $0x2fa] sm:$0x1] %v3014_v47  ;;  %v4168_v12 = vcombine.high %v4164_v5, %v4164_v5  ;;  %v3031_v17 = vcombine.high %v3029_v8, %v3029_v8 }
 0x1b3   : > { %4546 = vst [vmem:[%s10182_s21 + $0x333] sm:$0x1] %v4166_v7  ;;  %v3045_v58 = vrot.slane %v3029_v8, %v10171_v6  ;;  %9317 = vst.sshfl [vmem:[%s10182_s21 + $0x322] sm:$0x1 pattern:$0x73625140] %v3029_v8  ;;  %v4176_v18 = vrot.slane %v3513_v61, %v10171_v6  ;;  %v3052_v19 = vrot.slane %v3030_v53, %v10171_v6 }
 0x1b4   : > { %4543 = vst [vmem:[%s10182_s21 + $0x31b] sm:$0x1] %v4167_v10  ;;  %v3060_v36 = vcombine.high %v3038_v11, %v3038_v11  ;;  %9316 = vst.sshfl [vmem:[%s10182_s21 + $0x30a] sm:$0x1 pattern:$0x73625140] %v3030_v53  ;;  %v4183_v21 = vrot.slane %v4169_v39, %v10171_v6  ;;  %v3064_v24 = vcombine.high %v2408_v9, %v2408_v9  ;;  %v5710_v53 = vpop.trf.xlu1 }
 0x1b5   : > { %4547 = vst [vmem:[%s10182_s21 + $0x33b] sm:$0x1] %v4168_v12  ;;  %v3059_v26 = vrot.slane %v3031_v17, %v10171_v6  ;;  %v3061_v27 = vcombine.high %v3045_v58, %v3045_v58  ;;  %9318 = vst.sshfl [vmem:[%s10182_s21 + $0x32a] sm:$0x1 pattern:$0x73625140] %v3031_v17  ;;  %v4184_v14 = vcombine.high %v4176_v18, %v4176_v18 }
 0x1b6   : > { %v4192_v28 = vrot.slane %v4176_v18, %v10171_v6  ;;  %9399 = vst.sshfl [vmem:[%s10182_s21 + $0x343] sm:$0x1 pattern:$0x73625140] %v4176_v18  ;;  %v3062_v13 = vcombine.high %v3052_v19, %v3052_v19  ;;  %3437 = vst [vmem:[%s10182_s21 + $0x312] sm:$0x1] %v3060_v36  ;;  %v4185_v29 = vcombine.high %v4183_v21, %v4183_v21 }
 0x1b7   : > { %v4199_v20 = vrot.slane %v4183_v21, %v10171_v6  ;;  %9401 = vst.sshfl [vmem:[%s10182_s21 + $0x363] sm:$0x1 pattern:$0x73625140] %v4183_v21  ;;  %v3071_v30 = vrot.slane %v2408_v9, %v10171_v6  ;;  %v3063_v31 = vcombine.high %v3059_v26, %v3059_v26  ;;  %3441 = vst [vmem:[%s10182_s21 + $0x332] sm:$0x1] %v3061_v27 }
 0x1b8   : > { %v4206_v32 = vrot.slane %v4184_v14, %v10171_v6  ;;  %v4214_v33 = vcombine.high %v4192_v28, %v4192_v28  ;;  %9400 = vst.sshfl [vmem:[%s10182_s21 + $0x34b] sm:$0x1 pattern:$0x73625140] %v4184_v14  ;;  %v3078_v60 = vrot.slane %v3064_v24, %v10171_v6  ;;  %3438 = vst [vmem:[%s10182_s21 + $0x31a] sm:$0x1] %v3062_v13 }
 0x1b9   : > { %v4213_v15 = vrot.slane %v4185_v29, %v10171_v6  ;;  %v4215_v34 = vcombine.high %v4199_v20, %v4199_v20  ;;  %9402 = vst.sshfl [vmem:[%s10182_s21 + $0x36b] sm:$0x1 pattern:$0x73625140] %v4185_v29  ;;  %v3079_v35 = vcombine.high %v3071_v30, %v3071_v30  ;;  %v3087_v38 = vrot.slane %v3071_v30, %v10171_v6  ;;  %v4605_v29 = vpop.trf.xlu0 }
 0x1ba   : > { %9319 = vst.sshfl [vmem:[%s10182_s21 + $0x342] sm:$0x1 pattern:$0x73625140] %v3071_v30  ;;  %3442 = vst [vmem:[%s10182_s21 + $0x33a] sm:$0x1] %v3063_v31  ;;  %v4216_v16 = vcombine.high %v4206_v32, %v4206_v32  ;;  %v3080_v42 = vcombine.high %v3078_v60, %v3078_v60  ;;  %v3094_v23 = vrot.slane %v3078_v60, %v10171_v6 }
 0x1bb   : > { %4550 = vst [vmem:[%s10182_s21 + $0x353] sm:$0x1] %v4214_v33  ;;  %9321 = vst.sshfl [vmem:[%s10182_s21 + $0x362] sm:$0x1 pattern:$0x73625140] %v3078_v60  ;;  %v4218_v59 = vcombine.high %v3514_v25, %v3514_v25  ;;  %v4217_v43 = vcombine.high %v4213_v15, %v4213_v15  ;;  %v3101_v37 = vrot.slane %v3079_v35, %v10171_v6 }
 0x1bc   : > { %4554 = vst [vmem:[%s10182_s21 + $0x373] sm:$0x1] %v4215_v34  ;;  %v3109_v44 = vcombine.high %v3087_v38, %v3087_v38  ;;  %9320 = vst.sshfl [vmem:[%s10182_s21 + $0x34a] sm:$0x1 pattern:$0x73625140] %v3079_v35  ;;  %v4225_v45 = vrot.slane %v3514_v25, %v10171_v6  ;;  %v3108_v49 = vrot.slane %v3080_v42, %v10171_v6 }
 0x1bd   : > { %4551 = vst [vmem:[%s10182_s21 + $0x35b] sm:$0x1] %v4216_v16  ;;  %v3110_v50 = vcombine.high %v3094_v23, %v3094_v23  ;;  %9322 = vst.sshfl [vmem:[%s10182_s21 + $0x36a] sm:$0x1 pattern:$0x73625140] %v3080_v42  ;;  %v4232_v22 = vrot.slane %v4218_v59, %v10171_v6  ;;  %v3113_v51 = vcombine.high %v2409_v41, %v2409_v41 }
 0x1be   : > { %4555 = vst [vmem:[%s10182_s21 + $0x37b] sm:$0x1] %v4217_v43  ;;  %v3111_v52 = vcombine.high %v3101_v37, %v3101_v37  ;;  %3445 = vst [vmem:[%s10182_s21 + $0x352] sm:$0x1] %v3109_v44  ;;  %v4233_v54 = vcombine.high %v4225_v45, %v4225_v45  ;;  %v4241_v55 = vrot.slane %v4225_v45, %v10171_v6  ;;  %v5711_v37 = vpop.trf.xlu1 }
 0x1bf   : > { %9403 = vst.sshfl [vmem:[%s10182_s21 + $0x383] sm:$0x1 pattern:$0x73625140] %v4225_v45  ;;  %v3120_v56 = vrot.slane %v2409_v41, %v10171_v6  ;;  %v3112_v40 = vcombine.high %v3108_v49, %v3108_v49  ;;  %3449 = vst [vmem:[%s10182_s21 + $0x372] sm:$0x1] %v3110_v50  ;;  %v4234_v57 = vcombine.high %v4232_v22, %v4232_v22 }
 0x1c0   : > { %v4248_v61 = vrot.slane %v4232_v22, %v10171_v6  ;;  %9405 = vst.sshfl [vmem:[%s10182_s21 + $0x3a3] sm:$0x1 pattern:$0x73625140] %v4232_v22  ;;  %v3127_v62 = vrot.slane %v3113_v51, %v10171_v6  ;;  %3446 = vst [vmem:[%s10182_s21 + $0x35a] sm:$0x1] %v3111_v52  ;;  %v4255_v46 = vrot.slane %v4233_v54, %v10171_v6 }
 0x1c1   : > { %v4263_v63 = vcombine.high %v4241_v55, %v4241_v55  ;;  %9404 = vst.sshfl [vmem:[%s10182_s21 + $0x38b] sm:$0x1 pattern:$0x73625140] %v4233_v54  ;;  %v3128_v0 = vcombine.high %v3120_v56, %v3120_v56  ;;  %v3136_v1 = vrot.slane %v3120_v56, %v10171_v6  ;;  %3450 = vst [vmem:[%s10182_s21 + $0x37a] sm:$0x1] %v3112_v40  ;;  %v4606_v54 = vpop.trf.xlu0 }
 0x1c2   : > { %9323 = vst.sshfl [vmem:[%s10182_s21 + $0x382] sm:$0x1 pattern:$0x73625140] %v3120_v56  ;;  %v4262_v3 = vrot.slane %v4234_v57, %v10171_v6  ;;  %v4264_v4 = vcombine.high %v4248_v61, %v4248_v61  ;;  %v3129_v47 = vcombine.high %v3127_v62, %v3127_v62  ;;  %v3143_v5 = vrot.slane %v3127_v62, %v10171_v6 }
 0x1c3   : > { %9406 = vst.sshfl [vmem:[%s10182_s21 + $0x3ab] sm:$0x1 pattern:$0x73625140] %v4234_v57  ;;  %v4265_v7 = vcombine.high %v4255_v46, %v4255_v46  ;;  %4558 = vst [vmem:[%s10182_s21 + $0x393] sm:$0x1] %v4263_v63  ;;  %v3150_v8 = vrot.slane %v3128_v0, %v10171_v6  ;;  %v3158_v9 = vcombine.high %v3136_v1, %v3136_v1 }
 0x1c4   : > { %9325 = vst.sshfl [vmem:[%s10182_s21 + $0x3a2] sm:$0x1 pattern:$0x73625140] %v3127_v62  ;;  %v4267_v10 = vcombine.high %v3515_v48, %v3515_v48  ;;  %v4266_v11 = vcombine.high %v4262_v3, %v4262_v3  ;;  %4562 = vst [vmem:[%s10182_s21 + $0x3b3] sm:$0x1] %v4264_v4  ;;  %v3157_v39 = vrot.slane %v3129_v47, %v10171_v6 }
 0x1c5   : > { %9324 = vst.sshfl [vmem:[%s10182_s21 + $0x38a] sm:$0x1 pattern:$0x73625140] %v3128_v0  ;;  %v3159_v12 = vcombine.high %v3143_v5, %v3143_v5  ;;  %v4274_v17 = vrot.slane %v3515_v48, %v10171_v6  ;;  %4559 = vst [vmem:[%s10182_s21 + $0x39b] sm:$0x1] %v4265_v7  ;;  %v3160_v58 = vcombine.high %v3150_v8, %v3150_v8 }
 0x1c6   : > { %9326 = vst.sshfl [vmem:[%s10182_s21 + $0x3aa] sm:$0x1 pattern:$0x73625140] %v3129_v47  ;;  %3453 = vst [vmem:[%s10182_s21 + $0x392] sm:$0x1] %v3158_v9  ;;  %v4281_v18 = vrot.slane %v4267_v10, %v10171_v6  ;;  %v3162_v19 = vcombine.high %v2410_v2, %v2410_v2  ;;  %v3169_v36 = vrot.slane %v2410_v2, %v10171_v6 }
 0x1c7   : > { %4563 = vst [vmem:[%s10182_s21 + $0x3bb] sm:$0x1] %v4266_v11  ;;  %v3161_v21 = vcombine.high %v3157_v39, %v3157_v39  ;;  %3457 = vst [vmem:[%s10182_s21 + $0x3b2] sm:$0x1] %v3159_v12  ;;  %v4282_v24 = vcombine.high %v4274_v17, %v4274_v17  ;;  %v4290_v25 = vrot.slane %v4274_v17, %v10171_v6  ;;  %v5712_v11 = vpop.trf.xlu1 }
 0x1c8   : > { %9407 = vst.sshfl [vmem:[%s10182_s21 + $0x3c3] sm:$0x1 pattern:$0x73625140] %v4274_v17  ;;  %v5742_v26 = vcombine.high %v5710_v53, %v5710_v53  ;;  %3454 = vst [vmem:[%s10182_s21 + $0x39a] sm:$0x1] %v3160_v58  ;;  %v4283_v27 = vcombine.high %v4281_v18, %v4281_v18  ;;  %v4297_v14 = vrot.slane %v4281_v18, %v10171_v6 }
 0x1c9   : > { %9409 = vst.sshfl [vmem:[%s10182_s21 + $0x3e3] sm:$0x1 pattern:$0x73625140] %v4281_v18  ;;  %v3176_v28 = vrot.slane %v3162_v19, %v10171_v6  ;;  %v3177_v13 = vcombine.high %v3169_v36, %v3169_v36  ;;  %3458 = vst [vmem:[%s10182_s21 + $0x3ba] sm:$0x1] %v3161_v21  ;;  %v4304_v20 = vrot.slane %v4282_v24, %v10171_v6 }
 0x1ca   : > { %9327 = vst.sshfl [vmem:[%s10182_s21 + $0x3c2] sm:$0x1 pattern:$0x73625140] %v3169_v36  ;;  %v4312_v30 = vcombine.high %v4290_v25, %v4290_v25  ;;  %v3185_v31 = vrot.slane %v3169_v36, %v10171_v6  ;;  %v5749_v32 = vrot.slane %v5710_v53, %v10171_v6  ;;  %v4311_v33 = vrot.slane %v4283_v27, %v10171_v6 }
 0x1cb   : > { %9408 = vst.sshfl [vmem:[%s10182_s21 + $0x3cb] sm:$0x1 pattern:$0x73625140] %v4282_v24  ;;  %v4313_v60 = vcombine.high %v4297_v14, %v4297_v14  ;;  %v3178_v15 = vcombine.high %v3176_v28, %v3176_v28  ;;  %v3192_v34 = vrot.slane %v3176_v28, %v10171_v6  ;;  %v4314_v35 = vcombine.high %v4304_v20, %v4304_v20  ;;  %v4607_v14 = vpop.trf.xlu0 }
 0x1cc   : > { %9410 = vst.sshfl [vmem:[%s10182_s21 + $0x3eb] sm:$0x1 pattern:$0x73625140] %v4283_v27  ;;  %4566 = vst [vmem:[%s10182_s21 + $0x3d3] sm:$0x1] %v4312_v30  ;;  %v3199_v38 = vrot.slane %v3177_v13, %v10171_v6  ;;  %v3207_v41 = vcombine.high %v3185_v31, %v3185_v31  ;;  %v5756_v16 = vrot.slane %v5742_v26, %v10171_v6 }
 0x1cd   : > { %9328 = vst.sshfl [vmem:[%s10182_s21 + $0x3ca] sm:$0x1 pattern:$0x73625140] %v3177_v13  ;;  %v4315_v42 = vcombine.high %v4311_v33, %v4311_v33  ;;  %4570 = vst [vmem:[%s10182_s21 + $0x3f3] sm:$0x1] %v4313_v60  ;;  %v3206_v23 = vrot.slane %v3178_v15, %v10171_v6  ;;  %v3208_v59 = vcombine.high %v3192_v34, %v3192_v34 }
 0x1ce   : > { %9329 = vst.sshfl [vmem:[%s10182_s21 + $0x3e2] sm:$0x1 pattern:$0x73625140] %v3176_v28  ;;  %v5757_v43 = vcombine.high %v5749_v32, %v5749_v32  ;;  %4567 = vst [vmem:[%s10182_s21 + $0x3db] sm:$0x1] %v4314_v35  ;;  %v3209_v44 = vcombine.high %v3199_v38, %v3199_v38  ;;  %v5758_v45 = vcombine.high %v5756_v16, %v5756_v16  ;;  %v5713_v38 = vpop.trf.xlu1 }
 0x1cf   : > { %9507 = vst.sshfl [vmem:[%s10182_s21 + $0x5] sm:$0x1 pattern:$0x73625140] %v5749_v32  ;;  %3461 = vst [vmem:[%s10182_s21 + $0x3d2] sm:$0x1] %v3207_v41  ;;  %v5765_v48 = vrot.slane %v5749_v32, %v10171_v6  ;;  %v5772_v49 = vrot.slane %v5756_v16, %v10171_v6  ;;  %v3210_v50 = vcombine.high %v3206_v23, %v3206_v23 }
 0x1d0   : > { %9330 = vst.sshfl [vmem:[%s10182_s21 + $0x3ea] sm:$0x1 pattern:$0x73625140] %v3178_v15  ;;  %4571 = vst [vmem:[%s10182_s21 + $0x3fb] sm:$0x1] %v4315_v42  ;;  %v5779_v22 = vrot.slane %v5757_v43, %v10171_v6  ;;  %v4637_v51 = vcombine.high %v4605_v29, %v4605_v29  ;;  %v4644_v52 = vrot.slane %v4605_v29, %v10171_v6 }
 0x1d1   : > { %9509 = vst.sshfl [vmem:[%s10182_s21 + $0x25] sm:$0x1 pattern:$0x73625140] %v5756_v16  ;;  %3465 = vst [vmem:[%s10182_s21 + $0x3f2] sm:$0x1] %v3208_v59  ;;  %v5786_v55 = vrot.slane %v5758_v45, %v10171_v6  ;;  %v5787_v56 = vcombine.high %v5765_v48, %v5765_v48  ;;  %v5788_v40 = vcombine.high %v5772_v49, %v5772_v49 }
 0x1d2   : > { %9508 = vst.sshfl [vmem:[%s10182_s21 + $0xd] sm:$0x1 pattern:$0x73625140] %v5757_v43  ;;  %3462 = vst [vmem:[%s10182_s21 + $0x3da] sm:$0x1] %v3209_v44  ;;  %v5791_v57 = vcombine.high %v5711_v37, %v5711_v37  ;;  %v5789_v61 = vcombine.high %v5779_v22, %v5779_v22  ;;  %v4651_v62 = vrot.slane %v4637_v51, %v10171_v6  ;;  %v4608_v22 = vpop.trf.xlu0 }
 0x1d3   : > { %9510 = vst.sshfl [vmem:[%s10182_s21 + $0x2d] sm:$0x1 pattern:$0x73625140] %v5758_v45  ;;  %3466 = vst [vmem:[%s10182_s21 + $0x3fa] sm:$0x1] %v3210_v50  ;;  %v4652_v46 = vcombine.high %v4644_v52, %v4644_v52  ;;  %v4660_v63 = vrot.slane %v4644_v52, %v10171_v6  ;;  %v5790_v0 = vcombine.high %v5786_v55, %v5786_v55 }
 0x1d4   : > { %9427 = vst.sshfl [vmem:[%s10182_s21 + $0x4] sm:$0x1 pattern:$0x73625140] %v4644_v52  ;;  %6656 = vst [vmem:[%s10182_s21 + $0x15] sm:$0x1] %v5787_v56  ;;  %v5798_v1 = vrot.slane %v5711_v37, %v10171_v6  ;;  %v5805_v2 = vrot.slane %v5791_v57, %v10171_v6  ;;  %v4686_v3 = vcombine.high %v4606_v54, %v4606_v54 }
 0x1d5   : > { %6660 = vst [vmem:[%s10182_s21 + $0x35] sm:$0x1] %v5788_v40  ;;  %6657 = vst [vmem:[%s10182_s21 + $0x1d] sm:$0x1] %v5789_v61  ;;  %v4653_v4 = vcombine.high %v4651_v62, %v4651_v62  ;;  %v4667_v47 = vrot.slane %v4651_v62, %v10171_v6  ;;  %v4674_v5 = vrot.slane %v4652_v46, %v10171_v6 }
 0x1d6   : > { %v4682_v7 = vcombine.high %v4660_v63, %v4660_v63  ;;  %9428 = vst.sshfl [vmem:[%s10182_s21 + $0xc] sm:$0x1 pattern:$0x73625140] %v4652_v46  ;;  %6661 = vst [vmem:[%s10182_s21 + $0x3d] sm:$0x1] %v5790_v0  ;;  %v5806_v8 = vcombine.high %v5798_v1, %v5798_v1  ;;  %v5807_v9 = vcombine.high %v5805_v2, %v5805_v2 }
 0x1d7   : > { %9429 = vst.sshfl [vmem:[%s10182_s21 + $0x24] sm:$0x1 pattern:$0x73625140] %v4651_v62  ;;  %v5814_v10 = vrot.slane %v5798_v1, %v10171_v6  ;;  %v5821_v53 = vrot.slane %v5805_v2, %v10171_v6  ;;  %v4681_v39 = vrot.slane %v4653_v4, %v10171_v6  ;;  %v4683_v12 = vcombine.high %v4667_v47, %v4667_v47 }
 0x1d8   : > { %9511 = vst.sshfl [vmem:[%s10182_s21 + $0x45] sm:$0x1 pattern:$0x73625140] %v5798_v1  ;;  %v4684_v17 = vcombine.high %v4674_v5, %v4674_v5  ;;  %5551 = vst [vmem:[%s10182_s21 + $0x14] sm:$0x1] %v4682_v7  ;;  %v4693_v58 = vrot.slane %v4606_v54, %v10171_v6  ;;  %v5828_v18 = vrot.slane %v5806_v8, %v10171_v6  ;;  %v5714_v1 = vpop.trf.xlu1 }
 0x1d9   : > { %9513 = vst.sshfl [vmem:[%s10182_s21 + $0x65] sm:$0x1 pattern:$0x73625140] %v5805_v2  ;;  %v5835_v19 = vrot.slane %v5807_v9, %v10171_v6  ;;  %v5836_v36 = vcombine.high %v5814_v10, %v5814_v10  ;;  %v5837_v21 = vcombine.high %v5821_v53, %v5821_v53  ;;  %v4685_v24 = vcombine.high %v4681_v39, %v4681_v39 }
 0x1da   : > { %9430 = vst.sshfl [vmem:[%s10182_s21 + $0x2c] sm:$0x1 pattern:$0x73625140] %v4653_v4  ;;  %5552 = vst [vmem:[%s10182_s21 + $0x1c] sm:$0x1] %v4684_v17  ;;  %v4700_v25 = vrot.slane %v4686_v3, %v10171_v6  ;;  %v4701_v26 = vcombine.high %v4693_v58, %v4693_v58  ;;  %v4709_v27 = vrot.slane %v4693_v58, %v10171_v6 }
 0x1db   : > { %9512 = vst.sshfl [vmem:[%s10182_s21 + $0x4d] sm:$0x1 pattern:$0x73625140] %v5806_v8  ;;  %5555 = vst [vmem:[%s10182_s21 + $0x34] sm:$0x1] %v4683_v12  ;;  %v5838_v28 = vcombine.high %v5828_v18, %v5828_v18  ;;  %v5839_v13 = vcombine.high %v5835_v19, %v5835_v19  ;;  %v5840_v29 = vcombine.high %v5712_v11, %v5712_v11  ;;  %v4609_v19 = vpop.trf.xlu0 }
 0x1dc   : > { %9514 = vst.sshfl [vmem:[%s10182_s21 + $0x6d] sm:$0x1 pattern:$0x73625140] %v5807_v9  ;;  %6664 = vst [vmem:[%s10182_s21 + $0x55] sm:$0x1] %v5836_v36  ;;  %v5847_v20 = vrot.slane %v5712_v11, %v10171_v6  ;;  %v4702_v30 = vcombine.high %v4700_v25, %v4700_v25  ;;  %v4716_v31 = vrot.slane %v4700_v25, %v10171_v6 }
 0x1dd   : > { %9431 = vst.sshfl [vmem:[%s10182_s21 + $0x44] sm:$0x1 pattern:$0x73625140] %v4693_v58  ;;  %6668 = vst [vmem:[%s10182_s21 + $0x75] sm:$0x1] %v5837_v21  ;;  %v4723_v32 = vrot.slane %v4701_v26, %v10171_v6  ;;  %v4731_v33 = vcombine.high %v4709_v27, %v4709_v27  ;;  %v5854_v60 = vrot.slane %v5840_v29, %v10171_v6 }
 0x1de   : > { %5556 = vst [vmem:[%s10182_s21 + $0x3c] sm:$0x1] %v4685_v24  ;;  %9432 = vst.sshfl [vmem:[%s10182_s21 + $0x4c] sm:$0x1 pattern:$0x73625140] %v4701_v26  ;;  %v5855_v15 = vcombine.high %v5847_v20, %v5847_v20  ;;  %v5863_v34 = vrot.slane %v5847_v20, %v10171_v6  ;;  %v4735_v35 = vcombine.high %v4607_v14, %v4607_v14 }
 0x1df   : > { %9433 = vst.sshfl [vmem:[%s10182_s21 + $0x64] sm:$0x1 pattern:$0x73625140] %v4700_v25  ;;  %6665 = vst [vmem:[%s10182_s21 + $0x5d] sm:$0x1] %v5838_v28  ;;  %v4730_v41 = vrot.slane %v4702_v30, %v10171_v6  ;;  %v4732_v16 = vcombine.high %v4716_v31, %v4716_v31  ;;  %v4733_v42 = vcombine.high %v4723_v32, %v4723_v32 }
 0x1e0   : > { %6669 = vst [vmem:[%s10182_s21 + $0x7d] sm:$0x1] %v5839_v13  ;;  %9515 = vst.sshfl [vmem:[%s10182_s21 + $0x85] sm:$0x1 pattern:$0x73625140] %v5847_v20  ;;  %v4742_v23 = vrot.slane %v4607_v14, %v10171_v6  ;;  %v5856_v59 = vcombine.high %v5854_v60, %v5854_v60  ;;  %v5870_v43 = vrot.slane %v5854_v60, %v10171_v6  ;;  %v5715_v13 = vpop.trf.xlu1 }
 0x1e1   : > { %5559 = vst [vmem:[%s10182_s21 + $0x54] sm:$0x1] %v4731_v33  ;;  %9434 = vst.sshfl [vmem:[%s10182_s21 + $0x6c] sm:$0x1 pattern:$0x73625140] %v4702_v30  ;;  %v5877_v37 = vrot.slane %v5855_v15, %v10171_v6  ;;  %v5885_v44 = vcombine.high %v5863_v34, %v5863_v34  ;;  %v4734_v45 = vcombine.high %v4730_v41, %v4730_v41 }
 0x1e2   : > { %9516 = vst.sshfl [vmem:[%s10182_s21 + $0x8d] sm:$0x1 pattern:$0x73625140] %v5855_v15  ;;  %5560 = vst [vmem:[%s10182_s21 + $0x5c] sm:$0x1] %v4733_v42  ;;  %v4749_v48 = vrot.slane %v4735_v35, %v10171_v6  ;;  %v4750_v49 = vcombine.high %v4742_v23, %v4742_v23  ;;  %v4758_v50 = vrot.slane %v4742_v23, %v10171_v6 }
 0x1e3   : > { %9517 = vst.sshfl [vmem:[%s10182_s21 + $0xa5] sm:$0x1 pattern:$0x73625140] %v5854_v60  ;;  %5563 = vst [vmem:[%s10182_s21 + $0x74] sm:$0x1] %v4732_v16  ;;  %v5884_v51 = vrot.slane %v5856_v59, %v10171_v6  ;;  %v5886_v52 = vcombine.high %v5870_v43, %v5870_v43  ;;  %v5887_v54 = vcombine.high %v5877_v37, %v5877_v37 }
 0x1e4   : > { %9435 = vst.sshfl [vmem:[%s10182_s21 + $0x84] sm:$0x1 pattern:$0x73625140] %v4742_v23  ;;  %6672 = vst [vmem:[%s10182_s21 + $0x95] sm:$0x1] %v5885_v44  ;;  %v5889_v55 = vcombine.high %v5713_v38, %v5713_v38  ;;  %v4751_v56 = vcombine.high %v4749_v48, %v4749_v48  ;;  %v4765_v40 = vrot.slane %v4749_v48, %v10171_v6 }
 0x1e5   : > { %9518 = vst.sshfl [vmem:[%s10182_s21 + $0xad] sm:$0x1 pattern:$0x73625140] %v5856_v59  ;;  %5564 = vst [vmem:[%s10182_s21 + $0x7c] sm:$0x1] %v4734_v45  ;;  %v4772_v57 = vrot.slane %v4750_v49, %v10171_v6  ;;  %v4780_v61 = vcombine.high %v4758_v50, %v4758_v50  ;;  %v5888_v62 = vcombine.high %v5884_v51, %v5884_v51 }
 0x1e6   : > { %9436 = vst.sshfl [vmem:[%s10182_s21 + $0x8c] sm:$0x1 pattern:$0x73625140] %v4750_v49  ;;  %6673 = vst [vmem:[%s10182_s21 + $0x9d] sm:$0x1] %v5887_v54  ;;  %v5896_v46 = vrot.slane %v5713_v38, %v10171_v6  ;;  %v5903_v63 = vrot.slane %v5889_v55, %v10171_v6  ;;  %v4784_v0 = vcombine.high %v4608_v22, %v4608_v22 }
 0x1e7   : > { %9437 = vst.sshfl [vmem:[%s10182_s21 + $0xa4] sm:$0x1 pattern:$0x73625140] %v4749_v48  ;;  %6676 = vst [vmem:[%s10182_s21 + $0xb5] sm:$0x1] %v5886_v52  ;;  %v4779_v2 = vrot.slane %v4751_v56, %v10171_v6  ;;  %v4781_v3 = vcombine.high %v4765_v40, %v4765_v40  ;;  %v4782_v4 = vcombine.high %v4772_v57, %v4772_v57  ;;  %v4610_v48 = vpop.trf.xlu0 }
 0x1e8   : > { %5567 = vst [vmem:[%s10182_s21 + $0x94] sm:$0x1] %v4780_v61  ;;  %9438 = vst.sshfl [vmem:[%s10182_s21 + $0xac] sm:$0x1 pattern:$0x73625140] %v4751_v56  ;;  %v4791_v47 = vrot.slane %v4608_v22, %v10171_v6  ;;  %v5904_v5 = vcombine.high %v5896_v46, %v5896_v46  ;;  %v5905_v7 = vcombine.high %v5903_v63, %v5903_v63 }
 0x1e9   : > { %6677 = vst [vmem:[%s10182_s21 + $0xbd] sm:$0x1] %v5888_v62  ;;  %v5912_v8 = vrot.slane %v5896_v46, %v10171_v6  ;;  %v5919_v9 = vrot.slane %v5903_v63, %v10171_v6  ;;  %9519 = vst.sshfl [vmem:[%s10182_s21 + $0xc5] sm:$0x1 pattern:$0x73625140] %v5896_v46  ;;  %v4783_v10 = vcombine.high %v4779_v2, %v4779_v2  ;;  %v5716_v46 = vpop.trf.xlu1 }
 0x1ea   : > { %9521 = vst.sshfl [vmem:[%s10182_s21 + $0xe5] sm:$0x1 pattern:$0x73625140] %v5903_v63  ;;  %5568 = vst [vmem:[%s10182_s21 + $0x9c] sm:$0x1] %v4782_v4  ;;  %v4798_v53 = vrot.slane %v4784_v0, %v10171_v6  ;;  %v4799_v11 = vcombine.high %v4791_v47, %v4791_v47  ;;  %v4807_v39 = vrot.slane %v4791_v47, %v10171_v6 }
 0x1eb   : > { %5571 = vst [vmem:[%s10182_s21 + $0xb4] sm:$0x1] %v4781_v3  ;;  %9439 = vst.sshfl [vmem:[%s10182_s21 + $0xc4] sm:$0x1 pattern:$0x73625140] %v4791_v47  ;;  %v5926_v12 = vrot.slane %v5904_v5, %v10171_v6  ;;  %v5933_v17 = vrot.slane %v5905_v7, %v10171_v6  ;;  %v5934_v58 = vcombine.high %v5912_v8, %v5912_v8 }
 0x1ec   : > { %v5935_v18 = vcombine.high %v5919_v9, %v5919_v9  ;;  %9520 = vst.sshfl [vmem:[%s10182_s21 + $0xcd] sm:$0x1 pattern:$0x73625140] %v5904_v5  ;;  %5572 = vst [vmem:[%s10182_s21 + $0xbc] sm:$0x1] %v4783_v10  ;;  %v4800_v36 = vcombine.high %v4798_v53, %v4798_v53  ;;  %v4814_v21 = vrot.slane %v4798_v53, %v10171_v6 }
 0x1ed   : > { %9522 = vst.sshfl [vmem:[%s10182_s21 + $0xed] sm:$0x1 pattern:$0x73625140] %v5905_v7  ;;  %v4821_v24 = vrot.slane %v4799_v11, %v10171_v6  ;;  %v4829_v25 = vcombine.high %v4807_v39, %v4807_v39  ;;  %v5936_v26 = vcombine.high %v5926_v12, %v5926_v12  ;;  %v5937_v27 = vcombine.high %v5933_v17, %v5933_v17 }
 0x1ee   : > { %9440 = vst.sshfl [vmem:[%s10182_s21 + $0xcc] sm:$0x1 pattern:$0x73625140] %v4799_v11  ;;  %6680 = vst [vmem:[%s10182_s21 + $0xd5] sm:$0x1] %v5934_v58  ;;  %v5938_v14 = vcombine.high %v5714_v1, %v5714_v1  ;;  %v5945_v28 = vrot.slane %v5714_v1, %v10171_v6  ;;  %v4828_v29 = vrot.slane %v4800_v36, %v10171_v6 }
 0x1ef   : > { %9441 = vst.sshfl [vmem:[%s10182_s21 + $0xe4] sm:$0x1 pattern:$0x73625140] %v4798_v53  ;;  %6684 = vst [vmem:[%s10182_s21 + $0xf5] sm:$0x1] %v5935_v18  ;;  %v4830_v20 = vcombine.high %v4814_v21, %v4814_v21  ;;  %v4831_v30 = vcombine.high %v4821_v24, %v4821_v24  ;;  %v4833_v31 = vcombine.high %v4609_v19, %v4609_v19  ;;  %v4611_v53 = vpop.trf.xlu0 }
 0x1f0   : > { %5575 = vst [vmem:[%s10182_s21 + $0xd4] sm:$0x1] %v4829_v25  ;;  %9442 = vst.sshfl [vmem:[%s10182_s21 + $0xec] sm:$0x1 pattern:$0x73625140] %v4800_v36  ;;  %v5952_v32 = vrot.slane %v5938_v14, %v10171_v6  ;;  %v5953_v33 = vcombine.high %v5945_v28, %v5945_v28  ;;  %v5961_v60 = vrot.slane %v5945_v28, %v10171_v6 }
 0x1f1   : > { %6681 = vst [vmem:[%s10182_s21 + $0xdd] sm:$0x1] %v5936_v26  ;;  %6685 = vst [vmem:[%s10182_s21 + $0xfd] sm:$0x1] %v5937_v27  ;;  %v4840_v15 = vrot.slane %v4609_v19, %v10171_v6  ;;  %v4832_v34 = vcombine.high %v4828_v29, %v4828_v29  ;;  %v4847_v35 = vrot.slane %v4833_v31, %v10171_v6  ;;  %v5717_v27 = vpop.trf.xlu1 }
 0x1f2   : > { %9523 = vst.sshfl [vmem:[%s10182_s21 + $0x105] sm:$0x1 pattern:$0x73625140] %v5945_v28  ;;  %5576 = vst [vmem:[%s10182_s21 + $0xdc] sm:$0x1] %v4831_v30  ;;  %v5987_v38 = vcombine.high %v5715_v13, %v5715_v13  ;;  %v5994_v41 = vrot.slane %v5715_v13, %v10171_v6  ;;  %v5954_v16 = vcombine.high %v5952_v32, %v5952_v32 }
 0x1f3   : > { %5579 = vst [vmem:[%s10182_s21 + $0xf4] sm:$0x1] %v4830_v20  ;;  %v5968_v42 = vrot.slane %v5952_v32, %v10171_v6  ;;  %v5975_v23 = vrot.slane %v5953_v33, %v10171_v6  ;;  %v5983_v59 = vcombine.high %v5961_v60, %v5961_v60  ;;  %9524 = vst.sshfl [vmem:[%s10182_s21 + $0x10d] sm:$0x1 pattern:$0x73625140] %v5953_v33 }
 0x1f4   : > { %9525 = vst.sshfl [vmem:[%s10182_s21 + $0x125] sm:$0x1 pattern:$0x73625140] %v5952_v32  ;;  %5580 = vst [vmem:[%s10182_s21 + $0xfc] sm:$0x1] %v4832_v34  ;;  %v4848_v43 = vcombine.high %v4840_v15, %v4840_v15  ;;  %v4849_v37 = vcombine.high %v4847_v35, %v4847_v35  ;;  %v4856_v44 = vrot.slane %v4840_v15, %v10171_v6 }
 0x1f5   : > { %9443 = vst.sshfl [vmem:[%s10182_s21 + $0x104] sm:$0x1 pattern:$0x73625140] %v4840_v15  ;;  %v4863_v45 = vrot.slane %v4847_v35, %v10171_v6  ;;  %v5982_v49 = vrot.slane %v5954_v16, %v10171_v6  ;;  %v5984_v50 = vcombine.high %v5968_v42, %v5968_v42  ;;  %v5985_v22 = vcombine.high %v5975_v23, %v5975_v23 }
 0x1f6   : > { %9445 = vst.sshfl [vmem:[%s10182_s21 + $0x124] sm:$0x1 pattern:$0x73625140] %v4847_v35  ;;  %6688 = vst [vmem:[%s10182_s21 + $0x115] sm:$0x1] %v5983_v59  ;;  %v6001_v51 = vrot.slane %v5987_v38, %v10171_v6  ;;  %v4870_v52 = vrot.slane %v4848_v43, %v10171_v6  ;;  %v4877_v54 = vrot.slane %v4849_v37, %v10171_v6  ;;  %v4612_v35 = vpop.trf.xlu0 }
 0x1f7   : > { %9527 = vst.sshfl [vmem:[%s10182_s21 + $0x145] sm:$0x1 pattern:$0x73625140] %v5994_v41  ;;  %v4878_v55 = vcombine.high %v4856_v44, %v4856_v44  ;;  %v4879_v56 = vcombine.high %v4863_v45, %v4863_v45  ;;  %v5986_v40 = vcombine.high %v5982_v49, %v5982_v49  ;;  %6689 = vst [vmem:[%s10182_s21 + $0x11d] sm:$0x1] %v5985_v22 }
 0x1f8   : > { %9526 = vst.sshfl [vmem:[%s10182_s21 + $0x12d] sm:$0x1 pattern:$0x73625140] %v5954_v16  ;;  %6692 = vst [vmem:[%s10182_s21 + $0x135] sm:$0x1] %v5984_v50  ;;  %v6002_v57 = vcombine.high %v5994_v41, %v5994_v41  ;;  %v6003_v61 = vcombine.high %v6001_v51, %v6001_v51  ;;  %v6010_v62 = vrot.slane %v5994_v41, %v10171_v6  ;;  %v5718_v50 = vpop.trf.xlu1 }
 0x1f9   : > { %9444 = vst.sshfl [vmem:[%s10182_s21 + $0x10c] sm:$0x1 pattern:$0x73625140] %v4848_v43  ;;  %v4880_v63 = vcombine.high %v4870_v52, %v4870_v52  ;;  %v4881_v0 = vcombine.high %v4877_v54, %v4877_v54  ;;  %5583 = vst [vmem:[%s10182_s21 + $0x114] sm:$0x1] %v4878_v55  ;;  %v6017_v1 = vrot.slane %v6001_v51, %v10171_v6 }
 0x1fa   : > { %9446 = vst.sshfl [vmem:[%s10182_s21 + $0x12c] sm:$0x1 pattern:$0x73625140] %v4849_v37  ;;  %5587 = vst [vmem:[%s10182_s21 + $0x134] sm:$0x1] %v4879_v56  ;;  %v4882_v2 = vcombine.high %v4610_v48, %v4610_v48  ;;  %v6024_v3 = vrot.slane %v6002_v57, %v10171_v6  ;;  %v6031_v4 = vrot.slane %v6003_v61, %v10171_v6 }
 0x1fb   : > { %9529 = vst.sshfl [vmem:[%s10182_s21 + $0x165] sm:$0x1 pattern:$0x73625140] %v6001_v51  ;;  %6693 = vst [vmem:[%s10182_s21 + $0x13d] sm:$0x1] %v5986_v40  ;;  %v6032_v47 = vcombine.high %v6010_v62, %v6010_v62  ;;  %v4889_v5 = vrot.slane %v4610_v48, %v10171_v6  ;;  %v6033_v7 = vcombine.high %v6017_v1, %v6017_v1 }
 0x1fc   : > { %9528 = vst.sshfl [vmem:[%s10182_s21 + $0x14d] sm:$0x1 pattern:$0x73625140] %v6002_v57  ;;  %5584 = vst [vmem:[%s10182_s21 + $0x11c] sm:$0x1] %v4880_v63  ;;  %v4896_v8 = vrot.slane %v4882_v2, %v10171_v6  ;;  %v6036_v9 = vcombine.high %v5716_v46, %v5716_v46  ;;  %v6043_v10 = vrot.slane %v5716_v46, %v10171_v6 }
 0x1fd   : > { %9530 = vst.sshfl [vmem:[%s10182_s21 + $0x16d] sm:$0x1 pattern:$0x73625140] %v6003_v61  ;;  %5588 = vst [vmem:[%s10182_s21 + $0x13c] sm:$0x1] %v4881_v0  ;;  %v6034_v11 = vcombine.high %v6024_v3, %v6024_v3  ;;  %v6035_v39 = vcombine.high %v6031_v4, %v6031_v4  ;;  %v4897_v12 = vcombine.high %v4889_v5, %v4889_v5  ;;  %v4613_v4 = vpop.trf.xlu0 }
 0x1fe   : > { %6696 = vst [vmem:[%s10182_s21 + $0x155] sm:$0x1] %v6032_v47  ;;  %v4905_v17 = vrot.slane %v4889_v5, %v10171_v6  ;;  %9447 = vst.sshfl [vmem:[%s10182_s21 + $0x144] sm:$0x1 pattern:$0x73625140] %v4889_v5  ;;  %v4898_v58 = vcombine.high %v4896_v8, %v4896_v8  ;;  %v4912_v18 = vrot.slane %v4896_v8, %v10171_v6 }
 0x1ff   : > { %6700 = vst [vmem:[%s10182_s21 + $0x175] sm:$0x1] %v6033_v7  ;;  %9449 = vst.sshfl [vmem:[%s10182_s21 + $0x164] sm:$0x1 pattern:$0x73625140] %v4896_v8  ;;  %v6050_v19 = vrot.slane %v6036_v9, %v10171_v6  ;;  %v6051_v36 = vcombine.high %v6043_v10, %v6043_v10  ;;  %v4919_v21 = vrot.slane %v4897_v12, %v10171_v6 }
 0x200   : > { %9531 = vst.sshfl [vmem:[%s10182_s21 + $0x185] sm:$0x1 pattern:$0x73625140] %v6043_v10  ;;  %6697 = vst [vmem:[%s10182_s21 + $0x15d] sm:$0x1] %v6034_v11  ;;  %v4927_v24 = vcombine.high %v4905_v17, %v4905_v17  ;;  %v6059_v25 = vrot.slane %v6043_v10, %v10171_v6  ;;  %v4931_v26 = vcombine.high %v4611_v53, %v4611_v53 }
 0x201   : > { %6701 = vst [vmem:[%s10182_s21 + $0x17d] sm:$0x1] %v6035_v39  ;;  %9448 = vst.sshfl [vmem:[%s10182_s21 + $0x14c] sm:$0x1 pattern:$0x73625140] %v4897_v12  ;;  %v4926_v14 = vrot.slane %v4898_v58, %v10171_v6  ;;  %v4928_v28 = vcombine.high %v4912_v18, %v4912_v18  ;;  %v6052_v13 = vcombine.high %v6050_v19, %v6050_v19  ;;  %v5719_v39 = vpop.trf.xlu1 }
 0x202   : > { %9450 = vst.sshfl [vmem:[%s10182_s21 + $0x16c] sm:$0x1 pattern:$0x73625140] %v4898_v58  ;;  %v6066_v29 = vrot.slane %v6050_v19, %v10171_v6  ;;  %v4929_v20 = vcombine.high %v4919_v21, %v4919_v21  ;;  %5591 = vst [vmem:[%s10182_s21 + $0x154] sm:$0x1] %v4927_v24  ;;  %v6073_v30 = vrot.slane %v6051_v36, %v10171_v6 }
 0x203   : > { %9532 = vst.sshfl [vmem:[%s10182_s21 + $0x18d] sm:$0x1 pattern:$0x73625140] %v6051_v36  ;;  %v6081_v31 = vcombine.high %v6059_v25, %v6059_v25  ;;  %v4938_v32 = vrot.slane %v4611_v53, %v10171_v6  ;;  %v4930_v33 = vcombine.high %v4926_v14, %v4926_v14  ;;  %5595 = vst [vmem:[%s10182_s21 + $0x174] sm:$0x1] %v4928_v28 }
 0x204   : > { %9533 = vst.sshfl [vmem:[%s10182_s21 + $0x1a5] sm:$0x1 pattern:$0x73625140] %v6050_v19  ;;  %v6080_v60 = vrot.slane %v6052_v13, %v10171_v6  ;;  %v6082_v15 = vcombine.high %v6066_v29, %v6066_v29  ;;  %v4945_v34 = vrot.slane %v4931_v26, %v10171_v6  ;;  %5592 = vst [vmem:[%s10182_s21 + $0x15c] sm:$0x1] %v4929_v20 }
 0x205   : > { %9534 = vst.sshfl [vmem:[%s10182_s21 + $0x1ad] sm:$0x1 pattern:$0x73625140] %v6052_v13  ;;  %v6083_v38 = vcombine.high %v6073_v30, %v6073_v30  ;;  %6704 = vst [vmem:[%s10182_s21 + $0x195] sm:$0x1] %v6081_v31  ;;  %v4946_v41 = vcombine.high %v4938_v32, %v4938_v32  ;;  %v4954_v16 = vrot.slane %v4938_v32, %v10171_v6  ;;  %v4614_v30 = vpop.trf.xlu0 }
 0x206   : > { %9451 = vst.sshfl [vmem:[%s10182_s21 + $0x184] sm:$0x1 pattern:$0x73625140] %v4938_v32  ;;  %v6085_v42 = vcombine.high %v5717_v27, %v5717_v27  ;;  %5596 = vst [vmem:[%s10182_s21 + $0x17c] sm:$0x1] %v4930_v33  ;;  %v6084_v23 = vcombine.high %v6080_v60, %v6080_v60  ;;  %v4947_v59 = vcombine.high %v4945_v34, %v4945_v34 }
 0x207   : > { %6708 = vst [vmem:[%s10182_s21 + $0x1b5] sm:$0x1] %v6082_v15  ;;  %v4961_v43 = vrot.slane %v4945_v34, %v10171_v6  ;;  %9453 = vst.sshfl [vmem:[%s10182_s21 + $0x1a4] sm:$0x1 pattern:$0x73625140] %v4945_v34  ;;  %v6092_v37 = vrot.slane %v5717_v27, %v10171_v6  ;;  %v4968_v44 = vrot.slane %v4946_v41, %v10171_v6 }
 0x208   : > { %6705 = vst [vmem:[%s10182_s21 + $0x19d] sm:$0x1] %v6083_v38  ;;  %v4976_v45 = vcombine.high %v4954_v16, %v4954_v16  ;;  %9452 = vst.sshfl [vmem:[%s10182_s21 + $0x18c] sm:$0x1 pattern:$0x73625140] %v4946_v41  ;;  %v6099_v48 = vrot.slane %v6085_v42, %v10171_v6  ;;  %v4980_v49 = vcombine.high %v4612_v35, %v4612_v35  ;;  %v5720_v41 = vpop.trf.xlu1 }
 0x209   : > { %6709 = vst [vmem:[%s10182_s21 + $0x1bd] sm:$0x1] %v6084_v23  ;;  %v4975_v22 = vrot.slane %v4947_v59, %v10171_v6  ;;  %v4977_v51 = vcombine.high %v4961_v43, %v4961_v43  ;;  %9454 = vst.sshfl [vmem:[%s10182_s21 + $0x1ac] sm:$0x1 pattern:$0x73625140] %v4947_v59  ;;  %v6100_v52 = vcombine.high %v6092_v37, %v6092_v37 }
 0x20a   : > { %v6108_v54 = vrot.slane %v6092_v37, %v10171_v6  ;;  %9535 = vst.sshfl [vmem:[%s10182_s21 + $0x1c5] sm:$0x1 pattern:$0x73625140] %v6092_v37  ;;  %v4978_v55 = vcombine.high %v4968_v44, %v4968_v44  ;;  %5599 = vst [vmem:[%s10182_s21 + $0x194] sm:$0x1] %v4976_v45  ;;  %v6101_v56 = vcombine.high %v6099_v48, %v6099_v48 }
 0x20b   : > { %v6115_v40 = vrot.slane %v6099_v48, %v10171_v6  ;;  %9537 = vst.sshfl [vmem:[%s10182_s21 + $0x1e5] sm:$0x1 pattern:$0x73625140] %v6099_v48  ;;  %v4987_v57 = vrot.slane %v4612_v35, %v10171_v6  ;;  %v4979_v61 = vcombine.high %v4975_v22, %v4975_v22  ;;  %5603 = vst [vmem:[%s10182_s21 + $0x1b4] sm:$0x1] %v4977_v51 }
 0x20c   : > { %v6122_v62 = vrot.slane %v6100_v52, %v10171_v6  ;;  %v6130_v46 = vcombine.high %v6108_v54, %v6108_v54  ;;  %9536 = vst.sshfl [vmem:[%s10182_s21 + $0x1cd] sm:$0x1 pattern:$0x73625140] %v6100_v52  ;;  %v4994_v63 = vrot.slane %v4980_v49, %v10171_v6  ;;  %5600 = vst [vmem:[%s10182_s21 + $0x19c] sm:$0x1] %v4978_v55 }
 0x20d   : > { %v6129_v0 = vrot.slane %v6101_v56, %v10171_v6  ;;  %v6131_v1 = vcombine.high %v6115_v40, %v6115_v40  ;;  %9538 = vst.sshfl [vmem:[%s10182_s21 + $0x1ed] sm:$0x1 pattern:$0x73625140] %v6101_v56  ;;  %v4995_v2 = vcombine.high %v4987_v57, %v4987_v57  ;;  %v5003_v3 = vrot.slane %v4987_v57, %v10171_v6  ;;  %v4615_v56 = vpop.trf.xlu0 }
 0x20e   : > { %9455 = vst.sshfl [vmem:[%s10182_s21 + $0x1c4] sm:$0x1 pattern:$0x73625140] %v4987_v57  ;;  %5604 = vst [vmem:[%s10182_s21 + $0x1bc] sm:$0x1] %v4979_v61  ;;  %v6132_v47 = vcombine.high %v6122_v62, %v6122_v62  ;;  %v4996_v5 = vcombine.high %v4994_v63, %v4994_v63  ;;  %v5010_v7 = vrot.slane %v4994_v63, %v10171_v6 }
 0x20f   : > { %6712 = vst [vmem:[%s10182_s21 + $0x1d5] sm:$0x1] %v6130_v46  ;;  %9457 = vst.sshfl [vmem:[%s10182_s21 + $0x1e4] sm:$0x1 pattern:$0x73625140] %v4994_v63  ;;  %v6134_v8 = vcombine.high %v5718_v50, %v5718_v50  ;;  %v6133_v9 = vcombine.high %v6129_v0, %v6129_v0  ;;  %v5017_v10 = vrot.slane %v4995_v2, %v10171_v6 }
 0x210   : > { %6716 = vst [vmem:[%s10182_s21 + $0x1f5] sm:$0x1] %v6131_v1  ;;  %v5025_v53 = vcombine.high %v5003_v3, %v5003_v3  ;;  %9456 = vst.sshfl [vmem:[%s10182_s21 + $0x1cc] sm:$0x1 pattern:$0x73625140] %v4995_v2  ;;  %v6141_v11 = vrot.slane %v5718_v50, %v10171_v6  ;;  %v5024_v12 = vrot.slane %v4996_v5, %v10171_v6 }
 0x211   : > { %6713 = vst [vmem:[%s10182_s21 + $0x1dd] sm:$0x1] %v6132_v47  ;;  %v5026_v17 = vcombine.high %v5010_v7, %v5010_v7  ;;  %9458 = vst.sshfl [vmem:[%s10182_s21 + $0x1ec] sm:$0x1 pattern:$0x73625140] %v4996_v5  ;;  %v6148_v58 = vrot.slane %v6134_v8, %v10171_v6  ;;  %v5029_v18 = vcombine.high %v4613_v4, %v4613_v4 }
 0x212   : > { %6717 = vst [vmem:[%s10182_s21 + $0x1fd] sm:$0x1] %v6133_v9  ;;  %v5027_v19 = vcombine.high %v5017_v10, %v5017_v10  ;;  %5607 = vst [vmem:[%s10182_s21 + $0x1d4] sm:$0x1] %v5025_v53  ;;  %v6149_v36 = vcombine.high %v6141_v11, %v6141_v11  ;;  %v6157_v21 = vrot.slane %v6141_v11, %v10171_v6  ;;  %v5721_v10 = vpop.trf.xlu1 }
 0x213   : > { %9539 = vst.sshfl [vmem:[%s10182_s21 + $0x205] sm:$0x1 pattern:$0x73625140] %v6141_v11  ;;  %v5036_v24 = vrot.slane %v4613_v4, %v10171_v6  ;;  %v5028_v25 = vcombine.high %v5024_v12, %v5024_v12  ;;  %5611 = vst [vmem:[%s10182_s21 + $0x1f4] sm:$0x1] %v5026_v17  ;;  %v6150_v26 = vcombine.high %v6148_v58, %v6148_v58 }
 0x214   : > { %v6164_v27 = vrot.slane %v6148_v58, %v10171_v6  ;;  %9541 = vst.sshfl [vmem:[%s10182_s21 + $0x225] sm:$0x1 pattern:$0x73625140] %v6148_v58  ;;  %v5043_v14 = vrot.slane %v5029_v18, %v10171_v6  ;;  %5608 = vst [vmem:[%s10182_s21 + $0x1dc] sm:$0x1] %v5027_v19  ;;  %v6171_v28 = vrot.slane %v6149_v36, %v10171_v6 }
 0x215   : > { %v6179_v13 = vcombine.high %v6157_v21, %v6157_v21  ;;  %9540 = vst.sshfl [vmem:[%s10182_s21 + $0x20d] sm:$0x1 pattern:$0x73625140] %v6149_v36  ;;  %v5044_v29 = vcombine.high %v5036_v24, %v5036_v24  ;;  %v5052_v20 = vrot.slane %v5036_v24, %v10171_v6  ;;  %5612 = vst [vmem:[%s10182_s21 + $0x1fc] sm:$0x1] %v5028_v25  ;;  %v4616_v36 = vpop.trf.xlu0 }
 0x216   : > { %9459 = vst.sshfl [vmem:[%s10182_s21 + $0x204] sm:$0x1 pattern:$0x73625140] %v5036_v24  ;;  %v6178_v31 = vrot.slane %v6150_v26, %v10171_v6  ;;  %v6180_v32 = vcombine.high %v6164_v27, %v6164_v27  ;;  %v5045_v33 = vcombine.high %v5043_v14, %v5043_v14  ;;  %v5059_v60 = vrot.slane %v5043_v14, %v10171_v6 }
 0x217   : > { %9542 = vst.sshfl [vmem:[%s10182_s21 + $0x22d] sm:$0x1 pattern:$0x73625140] %v6150_v26  ;;  %v6181_v15 = vcombine.high %v6171_v28, %v6171_v28  ;;  %6720 = vst [vmem:[%s10182_s21 + $0x215] sm:$0x1] %v6179_v13  ;;  %v5066_v34 = vrot.slane %v5044_v29, %v10171_v6  ;;  %v5074_v35 = vcombine.high %v5052_v20, %v5052_v20 }
 0x218   : > { %9461 = vst.sshfl [vmem:[%s10182_s21 + $0x224] sm:$0x1 pattern:$0x73625140] %v5043_v14  ;;  %v6183_v38 = vcombine.high %v5719_v39, %v5719_v39  ;;  %v6182_v16 = vcombine.high %v6178_v31, %v6178_v31  ;;  %6724 = vst [vmem:[%s10182_s21 + $0x235] sm:$0x1] %v6180_v32  ;;  %v5073_v42 = vrot.slane %v5045_v33, %v10171_v6 }
 0x219   : > { %9460 = vst.sshfl [vmem:[%s10182_s21 + $0x20c] sm:$0x1 pattern:$0x73625140] %v5044_v29  ;;  %v5075_v23 = vcombine.high %v5059_v60, %v5059_v60  ;;  %v6190_v59 = vrot.slane %v5719_v39, %v10171_v6  ;;  %6721 = vst [vmem:[%s10182_s21 + $0x21d] sm:$0x1] %v6181_v15  ;;  %v5076_v43 = vcombine.high %v5066_v34, %v5066_v34 }
 0x21a   : > { %9462 = vst.sshfl [vmem:[%s10182_s21 + $0x22c] sm:$0x1 pattern:$0x73625140] %v5045_v33  ;;  %5615 = vst [vmem:[%s10182_s21 + $0x214] sm:$0x1] %v5074_v35  ;;  %v6197_v37 = vrot.slane %v6183_v38, %v10171_v6  ;;  %v5078_v44 = vcombine.high %v4614_v30, %v4614_v30  ;;  %v5085_v45 = vrot.slane %v4614_v30, %v10171_v6 }
 0x21b   : > { %6725 = vst [vmem:[%s10182_s21 + $0x23d] sm:$0x1] %v6182_v16  ;;  %v5077_v48 = vcombine.high %v5073_v42, %v5073_v42  ;;  %5619 = vst [vmem:[%s10182_s21 + $0x234] sm:$0x1] %v5075_v23  ;;  %v6198_v49 = vcombine.high %v6190_v59, %v6190_v59  ;;  %v6206_v50 = vrot.slane %v6190_v59, %v10171_v6  ;;  %v5722_v16 = vpop.trf.xlu1 }
 0x21c   : > { %9543 = vst.sshfl [vmem:[%s10182_s21 + $0x245] sm:$0x1 pattern:$0x73625140] %v6190_v59  ;;  %v6232_v22 = vcombine.high %v5720_v41, %v5720_v41  ;;  %5616 = vst [vmem:[%s10182_s21 + $0x21c] sm:$0x1] %v5076_v43  ;;  %v6199_v51 = vcombine.high %v6197_v37, %v6197_v37  ;;  %v6213_v52 = vrot.slane %v6197_v37, %v10171_v6 }
 0x21d   : > { %9545 = vst.sshfl [vmem:[%s10182_s21 + $0x265] sm:$0x1 pattern:$0x73625140] %v6197_v37  ;;  %v5092_v54 = vrot.slane %v5078_v44, %v10171_v6  ;;  %v5093_v55 = vcombine.high %v5085_v45, %v5085_v45  ;;  %5620 = vst [vmem:[%s10182_s21 + $0x23c] sm:$0x1] %v5077_v48  ;;  %v6220_v40 = vrot.slane %v6198_v49, %v10171_v6 }
 0x21e   : > { %9463 = vst.sshfl [vmem:[%s10182_s21 + $0x244] sm:$0x1 pattern:$0x73625140] %v5085_v45  ;;  %v6228_v57 = vcombine.high %v6206_v50, %v6206_v50  ;;  %v5101_v61 = vrot.slane %v5085_v45, %v10171_v6  ;;  %v6239_v62 = vrot.slane %v5720_v41, %v10171_v6  ;;  %v6227_v46 = vrot.slane %v6199_v51, %v10171_v6 }
 0x21f   : > { %9544 = vst.sshfl [vmem:[%s10182_s21 + $0x24d] sm:$0x1 pattern:$0x73625140] %v6198_v49  ;;  %v6229_v63 = vcombine.high %v6213_v52, %v6213_v52  ;;  %v5094_v0 = vcombine.high %v5092_v54, %v5092_v54  ;;  %v5108_v1 = vrot.slane %v5092_v54, %v10171_v6  ;;  %v6230_v2 = vcombine.high %v6220_v40, %v6220_v40  ;;  %v4617_v52 = vpop.trf.xlu0 }
 0x220   : > { %9546 = vst.sshfl [vmem:[%s10182_s21 + $0x26d] sm:$0x1 pattern:$0x73625140] %v6199_v51  ;;  %6728 = vst [vmem:[%s10182_s21 + $0x255] sm:$0x1] %v6228_v57  ;;  %v5115_v3 = vrot.slane %v5093_v55, %v10171_v6  ;;  %v5123_v4 = vcombine.high %v5101_v61, %v5101_v61  ;;  %v6246_v47 = vrot.slane %v6232_v22, %v10171_v6 }
 0x221   : > { %9464 = vst.sshfl [vmem:[%s10182_s21 + $0x24c] sm:$0x1 pattern:$0x73625140] %v5093_v55  ;;  %v6231_v5 = vcombine.high %v6227_v46, %v6227_v46  ;;  %6732 = vst [vmem:[%s10182_s21 + $0x275] sm:$0x1] %v6229_v63  ;;  %v5122_v7 = vrot.slane %v5094_v0, %v10171_v6  ;;  %v5124_v8 = vcombine.high %v5108_v1, %v5108_v1 }
 0x222   : > { %9465 = vst.sshfl [vmem:[%s10182_s21 + $0x264] sm:$0x1 pattern:$0x73625140] %v5092_v54  ;;  %v6247_v9 = vcombine.high %v6239_v62, %v6239_v62  ;;  %6729 = vst [vmem:[%s10182_s21 + $0x25d] sm:$0x1] %v6230_v2  ;;  %v5125_v53 = vcombine.high %v5115_v3, %v5115_v3  ;;  %v6248_v11 = vcombine.high %v6246_v47, %v6246_v47  ;;  %v5723_v3 = vpop.trf.xlu1 }
 0x223   : > { %9547 = vst.sshfl [vmem:[%s10182_s21 + $0x285] sm:$0x1 pattern:$0x73625140] %v6239_v62  ;;  %5623 = vst [vmem:[%s10182_s21 + $0x254] sm:$0x1] %v5123_v4  ;;  %v6255_v39 = vrot.slane %v6239_v62, %v10171_v6  ;;  %v6262_v12 = vrot.slane %v6246_v47, %v10171_v6  ;;  %v5126_v17 = vcombine.high %v5122_v7, %v5122_v7 }
 0x224   : > { %9466 = vst.sshfl [vmem:[%s10182_s21 + $0x26c] sm:$0x1 pattern:$0x73625140] %v5094_v0  ;;  %6733 = vst [vmem:[%s10182_s21 + $0x27d] sm:$0x1] %v6231_v5  ;;  %v6269_v58 = vrot.slane %v6247_v9, %v10171_v6  ;;  %v5127_v18 = vcombine.high %v4615_v56, %v4615_v56  ;;  %v5134_v19 = vrot.slane %v4615_v56, %v10171_v6 }
 0x225   : > { %9549 = vst.sshfl [vmem:[%s10182_s21 + $0x2a5] sm:$0x1 pattern:$0x73625140] %v6246_v47  ;;  %5627 = vst [vmem:[%s10182_s21 + $0x274] sm:$0x1] %v5124_v8  ;;  %v6276_v21 = vrot.slane %v6248_v11, %v10171_v6  ;;  %v6277_v24 = vcombine.high %v6255_v39, %v6255_v39  ;;  %v6278_v25 = vcombine.high %v6262_v12, %v6262_v12 }
 0x226   : > { %9548 = vst.sshfl [vmem:[%s10182_s21 + $0x28d] sm:$0x1 pattern:$0x73625140] %v6247_v9  ;;  %5624 = vst [vmem:[%s10182_s21 + $0x25c] sm:$0x1] %v5125_v53  ;;  %v6281_v26 = vcombine.high %v5721_v10, %v5721_v10  ;;  %v6279_v27 = vcombine.high %v6269_v58, %v6269_v58  ;;  %v5141_v14 = vrot.slane %v5127_v18, %v10171_v6  ;;  %v4618_v58 = vpop.trf.xlu0 }
 0x227   : > { %9550 = vst.sshfl [vmem:[%s10182_s21 + $0x2ad] sm:$0x1 pattern:$0x73625140] %v6248_v11  ;;  %5628 = vst [vmem:[%s10182_s21 + $0x27c] sm:$0x1] %v5126_v17  ;;  %v5142_v28 = vcombine.high %v5134_v19, %v5134_v19  ;;  %v5150_v13 = vrot.slane %v5134_v19, %v10171_v6  ;;  %v6280_v29 = vcombine.high %v6276_v21, %v6276_v21 }
 0x228   : > { %9467 = vst.sshfl [vmem:[%s10182_s21 + $0x284] sm:$0x1 pattern:$0x73625140] %v5134_v19  ;;  %6736 = vst [vmem:[%s10182_s21 + $0x295] sm:$0x1] %v6277_v24  ;;  %v6288_v20 = vrot.slane %v5721_v10, %v10171_v6  ;;  %v6295_v30 = vrot.slane %v6281_v26, %v10171_v6  ;;  %v5176_v31 = vcombine.high %v4616_v36, %v4616_v36 }
 0x229   : > { %6740 = vst [vmem:[%s10182_s21 + $0x2b5] sm:$0x1] %v6278_v25  ;;  %6737 = vst [vmem:[%s10182_s21 + $0x29d] sm:$0x1] %v6279_v27  ;;  %v5143_v32 = vcombine.high %v5141_v14, %v5141_v14  ;;  %v5157_v33 = vrot.slane %v5141_v14, %v10171_v6  ;;  %v5164_v60 = vrot.slane %v5142_v28, %v10171_v6 }
 0x22a   : > { %v5172_v15 = vcombine.high %v5150_v13, %v5150_v13  ;;  %9468 = vst.sshfl [vmem:[%s10182_s21 + $0x28c] sm:$0x1 pattern:$0x73625140] %v5142_v28  ;;  %6741 = vst [vmem:[%s10182_s21 + $0x2bd] sm:$0x1] %v6280_v29  ;;  %v6296_v34 = vcombine.high %v6288_v20, %v6288_v20  ;;  %v6297_v35 = vcombine.high %v6295_v30, %v6295_v30 }
 0x22b   : > { %9469 = vst.sshfl [vmem:[%s10182_s21 + $0x2a4] sm:$0x1 pattern:$0x73625140] %v5141_v14  ;;  %v6304_v38 = vrot.slane %v6288_v20, %v10171_v6  ;;  %v6311_v41 = vrot.slane %v6295_v30, %v10171_v6  ;;  %v5171_v42 = vrot.slane %v5143_v32, %v10171_v6  ;;  %v5173_v23 = vcombine.high %v5157_v33, %v5157_v33 }
 0x22c   : > { %9551 = vst.sshfl [vmem:[%s10182_s21 + $0x2c5] sm:$0x1 pattern:$0x73625140] %v6288_v20  ;;  %v5174_v59 = vcombine.high %v5164_v60, %v5164_v60  ;;  %5631 = vst [vmem:[%s10182_s21 + $0x294] sm:$0x1] %v5172_v15  ;;  %v5183_v43 = vrot.slane %v4616_v36, %v10171_v6  ;;  %v6318_v37 = vrot.slane %v6296_v34, %v10171_v6  ;;  %v5724_v20 = vpop.trf.xlu1 }
 0x22d   : > { %9553 = vst.sshfl [vmem:[%s10182_s21 + $0x2e5] sm:$0x1 pattern:$0x73625140] %v6295_v30  ;;  %v6325_v44 = vrot.slane %v6297_v35, %v10171_v6  ;;  %v6326_v45 = vcombine.high %v6304_v38, %v6304_v38  ;;  %v6327_v48 = vcombine.high %v6311_v41, %v6311_v41  ;;  %v5175_v49 = vcombine.high %v5171_v42, %v5171_v42 }
 0x22e   : > { %9470 = vst.sshfl [vmem:[%s10182_s21 + $0x2ac] sm:$0x1 pattern:$0x73625140] %v5143_v32  ;;  %5632 = vst [vmem:[%s10182_s21 + $0x29c] sm:$0x1] %v5174_v59  ;;  %v5190_v50 = vrot.slane %v5176_v31, %v10171_v6  ;;  %v5191_v22 = vcombine.high %v5183_v43, %v5183_v43  ;;  %v5199_v51 = vrot.slane %v5183_v43, %v10171_v6 }
 0x22f   : > { %9552 = vst.sshfl [vmem:[%s10182_s21 + $0x2cd] sm:$0x1 pattern:$0x73625140] %v6296_v34  ;;  %5635 = vst [vmem:[%s10182_s21 + $0x2b4] sm:$0x1] %v5173_v23  ;;  %v6328_v54 = vcombine.high %v6318_v37, %v6318_v37  ;;  %v6329_v55 = vcombine.high %v6325_v44, %v6325_v44  ;;  %v6330_v56 = vcombine.high %v5722_v16, %v5722_v16  ;;  %v4619_v44 = vpop.trf.xlu0 }
 0x230   : > { %9554 = vst.sshfl [vmem:[%s10182_s21 + $0x2ed] sm:$0x1 pattern:$0x73625140] %v6297_v35  ;;  %6744 = vst [vmem:[%s10182_s21 + $0x2d5] sm:$0x1] %v6326_v45  ;;  %v6337_v40 = vrot.slane %v5722_v16, %v10171_v6  ;;  %v5192_v57 = vcombine.high %v5190_v50, %v5190_v50  ;;  %v5206_v61 = vrot.slane %v5190_v50, %v10171_v6 }
 0x231   : > { %9471 = vst.sshfl [vmem:[%s10182_s21 + $0x2c4] sm:$0x1 pattern:$0x73625140] %v5183_v43  ;;  %6748 = vst [vmem:[%s10182_s21 + $0x2f5] sm:$0x1] %v6327_v48  ;;  %v5213_v62 = vrot.slane %v5191_v22, %v10171_v6  ;;  %v5221_v46 = vcombine.high %v5199_v51, %v5199_v51  ;;  %v6344_v63 = vrot.slane %v6330_v56, %v10171_v6 }
 0x232   : > { %5636 = vst [vmem:[%s10182_s21 + $0x2bc] sm:$0x1] %v5175_v49  ;;  %9472 = vst.sshfl [vmem:[%s10182_s21 + $0x2cc] sm:$0x1 pattern:$0x73625140] %v5191_v22  ;;  %v6345_v0 = vcombine.high %v6337_v40, %v6337_v40  ;;  %v6353_v1 = vrot.slane %v6337_v40, %v10171_v6  ;;  %v5225_v2 = vcombine.high %v4617_v52, %v4617_v52 }
 0x233   : > { %9473 = vst.sshfl [vmem:[%s10182_s21 + $0x2e4] sm:$0x1 pattern:$0x73625140] %v5190_v50  ;;  %6745 = vst [vmem:[%s10182_s21 + $0x2dd] sm:$0x1] %v6328_v54  ;;  %v5220_v4 = vrot.slane %v5192_v57, %v10171_v6  ;;  %v5222_v47 = vcombine.high %v5206_v61, %v5206_v61  ;;  %v5223_v5 = vcombine.high %v5213_v62, %v5213_v62 }
 0x234   : > { %6749 = vst [vmem:[%s10182_s21 + $0x2fd] sm:$0x1] %v6329_v55  ;;  %9555 = vst.sshfl [vmem:[%s10182_s21 + $0x305] sm:$0x1 pattern:$0x73625140] %v6337_v40  ;;  %v5232_v7 = vrot.slane %v4617_v52, %v10171_v6  ;;  %v6346_v8 = vcombine.high %v6344_v63, %v6344_v63  ;;  %v6360_v9 = vrot.slane %v6344_v63, %v10171_v6  ;;  %v5725_v55 = vpop.trf.xlu1 }
 0x235   : > { %5639 = vst [vmem:[%s10182_s21 + $0x2d4] sm:$0x1] %v5221_v46  ;;  %9474 = vst.sshfl [vmem:[%s10182_s21 + $0x2ec] sm:$0x1 pattern:$0x73625140] %v5192_v57  ;;  %v6367_v10 = vrot.slane %v6345_v0, %v10171_v6  ;;  %v6375_v53 = vcombine.high %v6353_v1, %v6353_v1  ;;  %v5224_v11 = vcombine.high %v5220_v4, %v5220_v4 }
 0x236   : > { %9556 = vst.sshfl [vmem:[%s10182_s21 + $0x30d] sm:$0x1 pattern:$0x73625140] %v6345_v0  ;;  %5640 = vst [vmem:[%s10182_s21 + $0x2dc] sm:$0x1] %v5223_v5  ;;  %v5239_v39 = vrot.slane %v5225_v2, %v10171_v6  ;;  %v5240_v12 = vcombine.high %v5232_v7, %v5232_v7  ;;  %v5248_v17 = vrot.slane %v5232_v7, %v10171_v6 }
 0x237   : > { %9557 = vst.sshfl [vmem:[%s10182_s21 + $0x325] sm:$0x1 pattern:$0x73625140] %v6344_v63  ;;  %5643 = vst [vmem:[%s10182_s21 + $0x2f4] sm:$0x1] %v5222_v47  ;;  %v6374_v18 = vrot.slane %v6346_v8, %v10171_v6  ;;  %v6376_v19 = vcombine.high %v6360_v9, %v6360_v9  ;;  %v6377_v36 = vcombine.high %v6367_v10, %v6367_v10 }
 0x238   : > { %9475 = vst.sshfl [vmem:[%s10182_s21 + $0x304] sm:$0x1 pattern:$0x73625140] %v5232_v7  ;;  %6752 = vst [vmem:[%s10182_s21 + $0x315] sm:$0x1] %v6375_v53  ;;  %v6379_v21 = vcombine.high %v5723_v3, %v5723_v3  ;;  %v5241_v24 = vcombine.high %v5239_v39, %v5239_v39  ;;  %v5255_v25 = vrot.slane %v5239_v39, %v10171_v6 }
 0x239   : > { %9558 = vst.sshfl [vmem:[%s10182_s21 + $0x32d] sm:$0x1 pattern:$0x73625140] %v6346_v8  ;;  %5644 = vst [vmem:[%s10182_s21 + $0x2fc] sm:$0x1] %v5224_v11  ;;  %v5262_v26 = vrot.slane %v5240_v12, %v10171_v6  ;;  %v5270_v27 = vcombine.high %v5248_v17, %v5248_v17  ;;  %v6378_v14 = vcombine.high %v6374_v18, %v6374_v18 }
 0x23a   : > { %9476 = vst.sshfl [vmem:[%s10182_s21 + $0x30c] sm:$0x1 pattern:$0x73625140] %v5240_v12  ;;  %6753 = vst [vmem:[%s10182_s21 + $0x31d] sm:$0x1] %v6377_v36  ;;  %v6386_v28 = vrot.slane %v5723_v3, %v10171_v6  ;;  %v6393_v13 = vrot.slane %v6379_v21, %v10171_v6  ;;  %v5274_v29 = vcombine.high %v4618_v58, %v4618_v58 }
 0x23b   : > { %9477 = vst.sshfl [vmem:[%s10182_s21 + $0x324] sm:$0x1 pattern:$0x73625140] %v5239_v39  ;;  %6756 = vst [vmem:[%s10182_s21 + $0x335] sm:$0x1] %v6376_v19  ;;  %v5269_v30 = vrot.slane %v5241_v24, %v10171_v6  ;;  %v5271_v31 = vcombine.high %v5255_v25, %v5255_v25  ;;  %v5272_v32 = vcombine.high %v5262_v26, %v5262_v26  ;;  %v4620_v39 = vpop.trf.xlu0 }
 0x23c   : > { %5647 = vst [vmem:[%s10182_s21 + $0x314] sm:$0x1] %v5270_v27  ;;  %9478 = vst.sshfl [vmem:[%s10182_s21 + $0x32c] sm:$0x1 pattern:$0x73625140] %v5241_v24  ;;  %v5281_v33 = vrot.slane %v4618_v58, %v10171_v6  ;;  %v6394_v60 = vcombine.high %v6386_v28, %v6386_v28  ;;  %v6395_v15 = vcombine.high %v6393_v13, %v6393_v13 }
 0x23d   : > { %6757 = vst [vmem:[%s10182_s21 + $0x33d] sm:$0x1] %v6378_v14  ;;  %v6402_v34 = vrot.slane %v6386_v28, %v10171_v6  ;;  %v6409_v35 = vrot.slane %v6393_v13, %v10171_v6  ;;  %9559 = vst.sshfl [vmem:[%s10182_s21 + $0x345] sm:$0x1 pattern:$0x73625140] %v6386_v28  ;;  %v5273_v38 = vcombine.high %v5269_v30, %v5269_v30  ;;  %v7920_v28 = vpop.trf.xlu1 }
 0x23e   : > { %9561 = vst.sshfl [vmem:[%s10182_s21 + $0x365] sm:$0x1 pattern:$0x73625140] %v6393_v13  ;;  %5648 = vst [vmem:[%s10182_s21 + $0x31c] sm:$0x1] %v5272_v32  ;;  %v5288_v41 = vrot.slane %v5274_v29, %v10171_v6  ;;  %v5289_v16 = vcombine.high %v5281_v33, %v5281_v33  ;;  %v5297_v42 = vrot.slane %v5281_v33, %v10171_v6 }
 0x23f   : > { %5651 = vst [vmem:[%s10182_s21 + $0x334] sm:$0x1] %v5271_v31  ;;  %9479 = vst.sshfl [vmem:[%s10182_s21 + $0x344] sm:$0x1 pattern:$0x73625140] %v5281_v33  ;;  %v6416_v23 = vrot.slane %v6394_v60, %v10171_v6  ;;  %v6423_v59 = vrot.slane %v6395_v15, %v10171_v6  ;;  %v6424_v43 = vcombine.high %v6402_v34, %v6402_v34 }
 0x240   : > { %v6425_v37 = vcombine.high %v6409_v35, %v6409_v35  ;;  %9560 = vst.sshfl [vmem:[%s10182_s21 + $0x34d] sm:$0x1 pattern:$0x73625140] %v6394_v60  ;;  %5652 = vst [vmem:[%s10182_s21 + $0x33c] sm:$0x1] %v5273_v38  ;;  %v5290_v45 = vcombine.high %v5288_v41, %v5288_v41  ;;  %v5304_v48 = vrot.slane %v5288_v41, %v10171_v6 }
 0x241   : > { %9562 = vst.sshfl [vmem:[%s10182_s21 + $0x36d] sm:$0x1 pattern:$0x73625140] %v6395_v15  ;;  %v5311_v49 = vrot.slane %v5289_v16, %v10171_v6  ;;  %v5319_v50 = vcombine.high %v5297_v42, %v5297_v42  ;;  %v6426_v22 = vcombine.high %v6416_v23, %v6416_v23  ;;  %v6427_v51 = vcombine.high %v6423_v59, %v6423_v59 }
 0x242   : > { %9480 = vst.sshfl [vmem:[%s10182_s21 + $0x34c] sm:$0x1 pattern:$0x73625140] %v5289_v16  ;;  %6760 = vst [vmem:[%s10182_s21 + $0x355] sm:$0x1] %v6424_v43  ;;  %v6428_v52 = vcombine.high %v5724_v20, %v5724_v20  ;;  %v6435_v54 = vrot.slane %v5724_v20, %v10171_v6  ;;  %v5318_v56 = vrot.slane %v5290_v45, %v10171_v6 }
 0x243   : > { %9481 = vst.sshfl [vmem:[%s10182_s21 + $0x364] sm:$0x1 pattern:$0x73625140] %v5288_v41  ;;  %6764 = vst [vmem:[%s10182_s21 + $0x375] sm:$0x1] %v6425_v37  ;;  %v5320_v40 = vcombine.high %v5304_v48, %v5304_v48  ;;  %v5321_v57 = vcombine.high %v5311_v49, %v5311_v49  ;;  %v5323_v61 = vcombine.high %v4619_v44, %v4619_v44  ;;  %v6815_v41 = vpop.trf.xlu0 }
 0x244   : > { %5655 = vst [vmem:[%s10182_s21 + $0x354] sm:$0x1] %v5319_v50  ;;  %9482 = vst.sshfl [vmem:[%s10182_s21 + $0x36c] sm:$0x1 pattern:$0x73625140] %v5290_v45  ;;  %v6442_v62 = vrot.slane %v6428_v52, %v10171_v6  ;;  %v6443_v46 = vcombine.high %v6435_v54, %v6435_v54  ;;  %v6451_v63 = vrot.slane %v6435_v54, %v10171_v6 }
 0x245   : > { %6761 = vst [vmem:[%s10182_s21 + $0x35d] sm:$0x1] %v6426_v22  ;;  %6765 = vst [vmem:[%s10182_s21 + $0x37d] sm:$0x1] %v6427_v51  ;;  %v5330_v0 = vrot.slane %v4619_v44, %v10171_v6  ;;  %v5322_v1 = vcombine.high %v5318_v56, %v5318_v56  ;;  %v5337_v2 = vrot.slane %v5323_v61, %v10171_v6  ;;  %v7921_v51 = vpop.trf.xlu1 }
 0x246   : > { %9563 = vst.sshfl [vmem:[%s10182_s21 + $0x385] sm:$0x1 pattern:$0x73625140] %v6435_v54  ;;  %5656 = vst [vmem:[%s10182_s21 + $0x35c] sm:$0x1] %v5321_v57  ;;  %v6477_v3 = vcombine.high %v5725_v55, %v5725_v55  ;;  %v6484_v4 = vrot.slane %v5725_v55, %v10171_v6  ;;  %v6444_v47 = vcombine.high %v6442_v62, %v6442_v62 }
 0x247   : > { %5659 = vst [vmem:[%s10182_s21 + $0x374] sm:$0x1] %v5320_v40  ;;  %v6458_v5 = vrot.slane %v6442_v62, %v10171_v6  ;;  %v6465_v7 = vrot.slane %v6443_v46, %v10171_v6  ;;  %v6473_v8 = vcombine.high %v6451_v63, %v6451_v63  ;;  %9564 = vst.sshfl [vmem:[%s10182_s21 + $0x38d] sm:$0x1 pattern:$0x73625140] %v6443_v46 }
 0x248   : > { %9565 = vst.sshfl [vmem:[%s10182_s21 + $0x3a5] sm:$0x1 pattern:$0x73625140] %v6442_v62  ;;  %5660 = vst [vmem:[%s10182_s21 + $0x37c] sm:$0x1] %v5322_v1  ;;  %v5338_v9 = vcombine.high %v5330_v0, %v5330_v0  ;;  %v5339_v10 = vcombine.high %v5337_v2, %v5337_v2  ;;  %v5346_v53 = vrot.slane %v5330_v0, %v10171_v6 }
 0x249   : > { %9483 = vst.sshfl [vmem:[%s10182_s21 + $0x384] sm:$0x1 pattern:$0x73625140] %v5330_v0  ;;  %v5353_v11 = vrot.slane %v5337_v2, %v10171_v6  ;;  %v6472_v12 = vrot.slane %v6444_v47, %v10171_v6  ;;  %v6474_v17 = vcombine.high %v6458_v5, %v6458_v5  ;;  %v6475_v58 = vcombine.high %v6465_v7, %v6465_v7 }
 0x24a   : > { %9485 = vst.sshfl [vmem:[%s10182_s21 + $0x3a4] sm:$0x1 pattern:$0x73625140] %v5337_v2  ;;  %6768 = vst [vmem:[%s10182_s21 + $0x395] sm:$0x1] %v6473_v8  ;;  %v6491_v18 = vrot.slane %v6477_v3, %v10171_v6  ;;  %v5360_v19 = vrot.slane %v5338_v9, %v10171_v6  ;;  %v5367_v36 = vrot.slane %v5339_v10, %v10171_v6  ;;  %v6816_v2 = vpop.trf.xlu0 }
 0x24b   : > { %9567 = vst.sshfl [vmem:[%s10182_s21 + $0x3c5] sm:$0x1 pattern:$0x73625140] %v6484_v4  ;;  %v5368_v21 = vcombine.high %v5346_v53, %v5346_v53  ;;  %v5369_v24 = vcombine.high %v5353_v11, %v5353_v11  ;;  %v6476_v25 = vcombine.high %v6472_v12, %v6472_v12  ;;  %6769 = vst [vmem:[%s10182_s21 + $0x39d] sm:$0x1] %v6475_v58 }
 0x24c   : > { %9566 = vst.sshfl [vmem:[%s10182_s21 + $0x3ad] sm:$0x1 pattern:$0x73625140] %v6444_v47  ;;  %6772 = vst [vmem:[%s10182_s21 + $0x3b5] sm:$0x1] %v6474_v17  ;;  %v6492_v26 = vcombine.high %v6484_v4, %v6484_v4  ;;  %v6493_v27 = vcombine.high %v6491_v18, %v6491_v18  ;;  %v6500_v14 = vrot.slane %v6484_v4, %v10171_v6  ;;  %v7922_v17 = vpop.trf.xlu1 }
 0x24d   : > { %9484 = vst.sshfl [vmem:[%s10182_s21 + $0x38c] sm:$0x1 pattern:$0x73625140] %v5338_v9  ;;  %v5370_v13 = vcombine.high %v5360_v19, %v5360_v19  ;;  %v5371_v29 = vcombine.high %v5367_v36, %v5367_v36  ;;  %5663 = vst [vmem:[%s10182_s21 + $0x394] sm:$0x1] %v5368_v21  ;;  %v6507_v20 = vrot.slane %v6491_v18, %v10171_v6 }
 0x24e   : > { %9486 = vst.sshfl [vmem:[%s10182_s21 + $0x3ac] sm:$0x1 pattern:$0x73625140] %v5339_v10  ;;  %5667 = vst [vmem:[%s10182_s21 + $0x3b4] sm:$0x1] %v5369_v24  ;;  %v5372_v30 = vcombine.high %v4620_v39, %v4620_v39  ;;  %v6514_v31 = vrot.slane %v6492_v26, %v10171_v6  ;;  %v6521_v32 = vrot.slane %v6493_v27, %v10171_v6 }
 0x24f   : > { %9569 = vst.sshfl [vmem:[%s10182_s21 + $0x3e5] sm:$0x1 pattern:$0x73625140] %v6491_v18  ;;  %6773 = vst [vmem:[%s10182_s21 + $0x3bd] sm:$0x1] %v6476_v25  ;;  %v6522_v33 = vcombine.high %v6500_v14, %v6500_v14  ;;  %v5379_v60 = vrot.slane %v4620_v39, %v10171_v6  ;;  %v6523_v15 = vcombine.high %v6507_v20, %v6507_v20 }
 0x250   : > { %9568 = vst.sshfl [vmem:[%s10182_s21 + $0x3cd] sm:$0x1 pattern:$0x73625140] %v6492_v26  ;;  %5664 = vst [vmem:[%s10182_s21 + $0x39c] sm:$0x1] %v5370_v13  ;;  %v5386_v34 = vrot.slane %v5372_v30, %v10171_v6  ;;  %v7952_v35 = vcombine.high %v7920_v28, %v7920_v28  ;;  %v7959_v38 = vrot.slane %v7920_v28, %v10171_v6 }
 0x251   : > { %9570 = vst.sshfl [vmem:[%s10182_s21 + $0x3ed] sm:$0x1 pattern:$0x73625140] %v6493_v27  ;;  %5668 = vst [vmem:[%s10182_s21 + $0x3bc] sm:$0x1] %v5371_v29  ;;  %v6524_v16 = vcombine.high %v6514_v31, %v6514_v31  ;;  %v6525_v42 = vcombine.high %v6521_v32, %v6521_v32  ;;  %v5387_v23 = vcombine.high %v5379_v60, %v5379_v60  ;;  %v6817_v32 = vpop.trf.xlu0 }
 0x252   : > { %6776 = vst [vmem:[%s10182_s21 + $0x3d5] sm:$0x1] %v6522_v33  ;;  %v5395_v59 = vrot.slane %v5379_v60, %v10171_v6  ;;  %9487 = vst.sshfl [vmem:[%s10182_s21 + $0x3c4] sm:$0x1 pattern:$0x73625140] %v5379_v60  ;;  %v5388_v43 = vcombine.high %v5386_v34, %v5386_v34  ;;  %v5402_v37 = vrot.slane %v5386_v34, %v10171_v6 }
 0x253   : > { %6780 = vst [vmem:[%s10182_s21 + $0x3f5] sm:$0x1] %v6523_v15  ;;  %9489 = vst.sshfl [vmem:[%s10182_s21 + $0x3e4] sm:$0x1 pattern:$0x73625140] %v5386_v34  ;;  %v7966_v44 = vrot.slane %v7952_v35, %v10171_v6  ;;  %v7967_v45 = vcombine.high %v7959_v38, %v7959_v38  ;;  %v5409_v48 = vrot.slane %v5387_v23, %v10171_v6 }
 0x254   : > { %9667 = vst.sshfl [vmem:[%s10182_s21 + $0x7] sm:$0x1 pattern:$0x73625140] %v7959_v38  ;;  %6777 = vst [vmem:[%s10182_s21 + $0x3dd] sm:$0x1] %v6524_v16  ;;  %v5417_v49 = vcombine.high %v5395_v59, %v5395_v59  ;;  %v7975_v50 = vrot.slane %v7959_v38, %v10171_v6  ;;  %v6847_v22 = vcombine.high %v6815_v41, %v6815_v41 }
 0x255   : > { %6781 = vst [vmem:[%s10182_s21 + $0x3fd] sm:$0x1] %v6525_v42  ;;  %9488 = vst.sshfl [vmem:[%s10182_s21 + $0x3cc] sm:$0x1 pattern:$0x73625140] %v5387_v23  ;;  %v5416_v52 = vrot.slane %v5388_v43, %v10171_v6  ;;  %v5418_v54 = vcombine.high %v5402_v37, %v5402_v37  ;;  %v7968_v55 = vcombine.high %v7966_v44, %v7966_v44  ;;  %v7923_v42 = vpop.trf.xlu1 }
 0x256   : > { %9490 = vst.sshfl [vmem:[%s10182_s21 + $0x3ec] sm:$0x1 pattern:$0x73625140] %v5388_v43  ;;  %v7982_v56 = vrot.slane %v7966_v44, %v10171_v6  ;;  %v5419_v40 = vcombine.high %v5409_v48, %v5409_v48  ;;  %5671 = vst [vmem:[%s10182_s21 + $0x3d4] sm:$0x1] %v5417_v49  ;;  %v7989_v57 = vrot.slane %v7967_v45, %v10171_v6 }
 0x257   : > { %9668 = vst.sshfl [vmem:[%s10182_s21 + $0xf] sm:$0x1 pattern:$0x73625140] %v7967_v45  ;;  %v7997_v61 = vcombine.high %v7975_v50, %v7975_v50  ;;  %v6854_v62 = vrot.slane %v6815_v41, %v10171_v6  ;;  %v5420_v46 = vcombine.high %v5416_v52, %v5416_v52  ;;  %5675 = vst [vmem:[%s10182_s21 + $0x3f4] sm:$0x1] %v5418_v54 }
 0x258   : > { %9669 = vst.sshfl [vmem:[%s10182_s21 + $0x27] sm:$0x1 pattern:$0x73625140] %v7966_v44  ;;  %v7996_v63 = vrot.slane %v7968_v55, %v10171_v6  ;;  %v7998_v0 = vcombine.high %v7982_v56, %v7982_v56  ;;  %v6861_v1 = vrot.slane %v6847_v22, %v10171_v6  ;;  %5672 = vst [vmem:[%s10182_s21 + $0x3dc] sm:$0x1] %v5419_v40 }
 0x259   : > { %9670 = vst.sshfl [vmem:[%s10182_s21 + $0x2f] sm:$0x1 pattern:$0x73625140] %v7968_v55  ;;  %v7999_v3 = vcombine.high %v7989_v57, %v7989_v57  ;;  %8866 = vst [vmem:[%s10182_s21 + $0x17] sm:$0x1] %v7997_v61  ;;  %v6862_v4 = vcombine.high %v6854_v62, %v6854_v62  ;;  %v6870_v47 = vrot.slane %v6854_v62, %v10171_v6  ;;  %v6818_v57 = vpop.trf.xlu0 }
 0x25a   : > { %9587 = vst.sshfl [vmem:[%s10182_s21 + $0x6] sm:$0x1 pattern:$0x73625140] %v6854_v62  ;;  %v8001_v5 = vcombine.high %v7921_v51, %v7921_v51  ;;  %5676 = vst [vmem:[%s10182_s21 + $0x3fc] sm:$0x1] %v5420_v46  ;;  %v8000_v7 = vcombine.high %v7996_v63, %v7996_v63  ;;  %v6863_v8 = vcombine.high %v6861_v1, %v6861_v1 }
 0x25b   : > { %8870 = vst [vmem:[%s10182_s21 + $0x37] sm:$0x1] %v7998_v0  ;;  %v6877_v9 = vrot.slane %v6861_v1, %v10171_v6  ;;  %9589 = vst.sshfl [vmem:[%s10182_s21 + $0x26] sm:$0x1 pattern:$0x73625140] %v6861_v1  ;;  %v8008_v10 = vrot.slane %v7921_v51, %v10171_v6  ;;  %v6884_v53 = vrot.slane %v6862_v4, %v10171_v6 }
 0x25c   : > { %8867 = vst [vmem:[%s10182_s21 + $0x1f] sm:$0x1] %v7999_v3  ;;  %v6892_v11 = vcombine.high %v6870_v47, %v6870_v47  ;;  %9588 = vst.sshfl [vmem:[%s10182_s21 + $0xe] sm:$0x1 pattern:$0x73625140] %v6862_v4  ;;  %v8015_v39 = vrot.slane %v8001_v5, %v10171_v6  ;;  %v6896_v12 = vcombine.high %v6816_v2, %v6816_v2  ;;  %v7924_v4 = vpop.trf.xlu1 }
 0x25d   : > { %8871 = vst [vmem:[%s10182_s21 + $0x3f] sm:$0x1] %v8000_v7  ;;  %v6891_v58 = vrot.slane %v6863_v8, %v10171_v6  ;;  %v6893_v18 = vcombine.high %v6877_v9, %v6877_v9  ;;  %9590 = vst.sshfl [vmem:[%s10182_s21 + $0x2e] sm:$0x1 pattern:$0x73625140] %v6863_v8  ;;  %v8016_v19 = vcombine.high %v8008_v10, %v8008_v10 }
 0x25e   : > { %v8024_v36 = vrot.slane %v8008_v10, %v10171_v6  ;;  %9671 = vst.sshfl [vmem:[%s10182_s21 + $0x47] sm:$0x1 pattern:$0x73625140] %v8008_v10  ;;  %v6894_v21 = vcombine.high %v6884_v53, %v6884_v53  ;;  %7761 = vst [vmem:[%s10182_s21 + $0x16] sm:$0x1] %v6892_v11  ;;  %v8017_v24 = vcombine.high %v8015_v39, %v8015_v39 }
 0x25f   : > { %v8031_v25 = vrot.slane %v8015_v39, %v10171_v6  ;;  %9673 = vst.sshfl [vmem:[%s10182_s21 + $0x67] sm:$0x1 pattern:$0x73625140] %v8015_v39  ;;  %v6903_v26 = vrot.slane %v6816_v2, %v10171_v6  ;;  %v6895_v27 = vcombine.high %v6891_v58, %v6891_v58  ;;  %7765 = vst [vmem:[%s10182_s21 + $0x36] sm:$0x1] %v6893_v18 }
 0x260   : > { %v8038_v14 = vrot.slane %v8016_v19, %v10171_v6  ;;  %v8046_v28 = vcombine.high %v8024_v36, %v8024_v36  ;;  %9672 = vst.sshfl [vmem:[%s10182_s21 + $0x4f] sm:$0x1 pattern:$0x73625140] %v8016_v19  ;;  %v6910_v13 = vrot.slane %v6896_v12, %v10171_v6  ;;  %7762 = vst [vmem:[%s10182_s21 + $0x1e] sm:$0x1] %v6894_v21 }
 0x261   : > { %v8045_v29 = vrot.slane %v8017_v24, %v10171_v6  ;;  %v8047_v20 = vcombine.high %v8031_v25, %v8031_v25  ;;  %9674 = vst.sshfl [vmem:[%s10182_s21 + $0x6f] sm:$0x1 pattern:$0x73625140] %v8017_v24  ;;  %v6911_v30 = vcombine.high %v6903_v26, %v6903_v26  ;;  %v6919_v31 = vrot.slane %v6903_v26, %v10171_v6  ;;  %v6819_v24 = vpop.trf.xlu0 }
 0x262   : > { %9591 = vst.sshfl [vmem:[%s10182_s21 + $0x46] sm:$0x1 pattern:$0x73625140] %v6903_v26  ;;  %7766 = vst [vmem:[%s10182_s21 + $0x3e] sm:$0x1] %v6895_v27  ;;  %v8048_v33 = vcombine.high %v8038_v14, %v8038_v14  ;;  %v6912_v60 = vcombine.high %v6910_v13, %v6910_v13  ;;  %v6926_v15 = vrot.slane %v6910_v13, %v10171_v6 }
 0x263   : > { %8874 = vst [vmem:[%s10182_s21 + $0x57] sm:$0x1] %v8046_v28  ;;  %9593 = vst.sshfl [vmem:[%s10182_s21 + $0x66] sm:$0x1 pattern:$0x73625140] %v6910_v13  ;;  %v8050_v34 = vcombine.high %v7922_v17, %v7922_v17  ;;  %v8049_v35 = vcombine.high %v8045_v29, %v8045_v29  ;;  %v6933_v38 = vrot.slane %v6911_v30, %v10171_v6 }
 0x264   : > { %8878 = vst [vmem:[%s10182_s21 + $0x77] sm:$0x1] %v8047_v20  ;;  %v6941_v41 = vcombine.high %v6919_v31, %v6919_v31  ;;  %9592 = vst.sshfl [vmem:[%s10182_s21 + $0x4e] sm:$0x1 pattern:$0x73625140] %v6911_v30  ;;  %v8057_v16 = vrot.slane %v7922_v17, %v10171_v6  ;;  %v6940_v23 = vrot.slane %v6912_v60, %v10171_v6 }
 0x265   : > { %8875 = vst [vmem:[%s10182_s21 + $0x5f] sm:$0x1] %v8048_v33  ;;  %v6942_v59 = vcombine.high %v6926_v15, %v6926_v15  ;;  %9594 = vst.sshfl [vmem:[%s10182_s21 + $0x6e] sm:$0x1 pattern:$0x73625140] %v6912_v60  ;;  %v8064_v43 = vrot.slane %v8050_v34, %v10171_v6  ;;  %v6945_v37 = vcombine.high %v6817_v32, %v6817_v32 }
 0x266   : > { %8879 = vst [vmem:[%s10182_s21 + $0x7f] sm:$0x1] %v8049_v35  ;;  %v6943_v44 = vcombine.high %v6933_v38, %v6933_v38  ;;  %7769 = vst [vmem:[%s10182_s21 + $0x56] sm:$0x1] %v6941_v41  ;;  %v8065_v45 = vcombine.high %v8057_v16, %v8057_v16  ;;  %v8073_v48 = vrot.slane %v8057_v16, %v10171_v6  ;;  %v7925_v38 = vpop.trf.xlu1 }
 0x267   : > { %9675 = vst.sshfl [vmem:[%s10182_s21 + $0x87] sm:$0x1 pattern:$0x73625140] %v8057_v16  ;;  %v6952_v49 = vrot.slane %v6817_v32, %v10171_v6  ;;  %v6944_v50 = vcombine.high %v6940_v23, %v6940_v23  ;;  %7773 = vst [vmem:[%s10182_s21 + $0x76] sm:$0x1] %v6942_v59  ;;  %v8066_v22 = vcombine.high %v8064_v43, %v8064_v43 }
 0x268   : > { %v8080_v51 = vrot.slane %v8064_v43, %v10171_v6  ;;  %9677 = vst.sshfl [vmem:[%s10182_s21 + $0xa7] sm:$0x1 pattern:$0x73625140] %v8064_v43  ;;  %v6959_v52 = vrot.slane %v6945_v37, %v10171_v6  ;;  %7770 = vst [vmem:[%s10182_s21 + $0x5e] sm:$0x1] %v6943_v44  ;;  %v8087_v54 = vrot.slane %v8065_v45, %v10171_v6 }
 0x269   : > { %v8095_v55 = vcombine.high %v8073_v48, %v8073_v48  ;;  %9676 = vst.sshfl [vmem:[%s10182_s21 + $0x8f] sm:$0x1 pattern:$0x73625140] %v8065_v45  ;;  %v6960_v56 = vcombine.high %v6952_v49, %v6952_v49  ;;  %v6968_v40 = vrot.slane %v6952_v49, %v10171_v6  ;;  %7774 = vst [vmem:[%s10182_s21 + $0x7e] sm:$0x1] %v6944_v50  ;;  %v6820_v45 = vpop.trf.xlu0 }
 0x26a   : > { %9595 = vst.sshfl [vmem:[%s10182_s21 + $0x86] sm:$0x1 pattern:$0x73625140] %v6952_v49  ;;  %v8094_v61 = vrot.slane %v8066_v22, %v10171_v6  ;;  %v8096_v62 = vcombine.high %v8080_v51, %v8080_v51  ;;  %v6961_v46 = vcombine.high %v6959_v52, %v6959_v52  ;;  %v6975_v63 = vrot.slane %v6959_v52, %v10171_v6 }
 0x26b   : > { %9678 = vst.sshfl [vmem:[%s10182_s21 + $0xaf] sm:$0x1 pattern:$0x73625140] %v8066_v22  ;;  %v8097_v0 = vcombine.high %v8087_v54, %v8087_v54  ;;  %8882 = vst [vmem:[%s10182_s21 + $0x97] sm:$0x1] %v8095_v55  ;;  %v6982_v1 = vrot.slane %v6960_v56, %v10171_v6  ;;  %v6990_v2 = vcombine.high %v6968_v40, %v6968_v40 }
 0x26c   : > { %9597 = vst.sshfl [vmem:[%s10182_s21 + $0xa6] sm:$0x1 pattern:$0x73625140] %v6959_v52  ;;  %v8099_v3 = vcombine.high %v7923_v42, %v7923_v42  ;;  %v8098_v47 = vcombine.high %v8094_v61, %v8094_v61  ;;  %8886 = vst [vmem:[%s10182_s21 + $0xb7] sm:$0x1] %v8096_v62  ;;  %v6989_v5 = vrot.slane %v6961_v46, %v10171_v6 }
 0x26d   : > { %9596 = vst.sshfl [vmem:[%s10182_s21 + $0x8e] sm:$0x1 pattern:$0x73625140] %v6960_v56  ;;  %v6991_v7 = vcombine.high %v6975_v63, %v6975_v63  ;;  %v8106_v8 = vrot.slane %v7923_v42, %v10171_v6  ;;  %8883 = vst [vmem:[%s10182_s21 + $0x9f] sm:$0x1] %v8097_v0  ;;  %v6992_v9 = vcombine.high %v6982_v1, %v6982_v1 }
 0x26e   : > { %9598 = vst.sshfl [vmem:[%s10182_s21 + $0xae] sm:$0x1 pattern:$0x73625140] %v6961_v46  ;;  %7777 = vst [vmem:[%s10182_s21 + $0x96] sm:$0x1] %v6990_v2  ;;  %v8113_v10 = vrot.slane %v8099_v3, %v10171_v6  ;;  %v6994_v53 = vcombine.high %v6818_v57, %v6818_v57  ;;  %v7001_v11 = vrot.slane %v6818_v57, %v10171_v6 }
 0x26f   : > { %8887 = vst [vmem:[%s10182_s21 + $0xbf] sm:$0x1] %v8098_v47  ;;  %v6993_v39 = vcombine.high %v6989_v5, %v6989_v5  ;;  %7781 = vst [vmem:[%s10182_s21 + $0xb6] sm:$0x1] %v6991_v7  ;;  %v8114_v12 = vcombine.high %v8106_v8, %v8106_v8  ;;  %v8122_v17 = vrot.slane %v8106_v8, %v10171_v6  ;;  %v7926_v47 = vpop.trf.xlu1 }
 0x270   : > { %9679 = vst.sshfl [vmem:[%s10182_s21 + $0xc7] sm:$0x1 pattern:$0x73625140] %v8106_v8  ;;  %v8148_v58 = vcombine.high %v7924_v4, %v7924_v4  ;;  %7778 = vst [vmem:[%s10182_s21 + $0x9e] sm:$0x1] %v6992_v9  ;;  %v8115_v18 = vcombine.high %v8113_v10, %v8113_v10  ;;  %v8129_v19 = vrot.slane %v8113_v10, %v10171_v6 }
 0x271   : > { %9681 = vst.sshfl [vmem:[%s10182_s21 + $0xe7] sm:$0x1 pattern:$0x73625140] %v8113_v10  ;;  %v7008_v36 = vrot.slane %v6994_v53, %v10171_v6  ;;  %v7009_v21 = vcombine.high %v7001_v11, %v7001_v11  ;;  %7782 = vst [vmem:[%s10182_s21 + $0xbe] sm:$0x1] %v6993_v39  ;;  %v8136_v25 = vrot.slane %v8114_v12, %v10171_v6 }
 0x272   : > { %9599 = vst.sshfl [vmem:[%s10182_s21 + $0xc6] sm:$0x1 pattern:$0x73625140] %v7001_v11  ;;  %v8144_v26 = vcombine.high %v8122_v17, %v8122_v17  ;;  %v7017_v27 = vrot.slane %v7001_v11, %v10171_v6  ;;  %v8155_v14 = vrot.slane %v7924_v4, %v10171_v6  ;;  %v8143_v28 = vrot.slane %v8115_v18, %v10171_v6 }
 0x273   : > { %9680 = vst.sshfl [vmem:[%s10182_s21 + $0xcf] sm:$0x1 pattern:$0x73625140] %v8114_v12  ;;  %v8145_v13 = vcombine.high %v8129_v19, %v8129_v19  ;;  %v7010_v29 = vcombine.high %v7008_v36, %v7008_v36  ;;  %v7024_v20 = vrot.slane %v7008_v36, %v10171_v6  ;;  %v8146_v30 = vcombine.high %v8136_v25, %v8136_v25  ;;  %v6821_v19 = vpop.trf.xlu0 }
 0x274   : > { %9682 = vst.sshfl [vmem:[%s10182_s21 + $0xef] sm:$0x1 pattern:$0x73625140] %v8115_v18  ;;  %8890 = vst [vmem:[%s10182_s21 + $0xd7] sm:$0x1] %v8144_v26  ;;  %v7031_v31 = vrot.slane %v7009_v21, %v10171_v6  ;;  %v7039_v32 = vcombine.high %v7017_v27, %v7017_v27  ;;  %v8162_v33 = vrot.slane %v8148_v58, %v10171_v6 }
 0x275   : > { %9600 = vst.sshfl [vmem:[%s10182_s21 + $0xce] sm:$0x1 pattern:$0x73625140] %v7009_v21  ;;  %v8147_v60 = vcombine.high %v8143_v28, %v8143_v28  ;;  %8894 = vst [vmem:[%s10182_s21 + $0xf7] sm:$0x1] %v8145_v13  ;;  %v7038_v15 = vrot.slane %v7010_v29, %v10171_v6  ;;  %v7040_v34 = vcombine.high %v7024_v20, %v7024_v20 }
 0x276   : > { %9601 = vst.sshfl [vmem:[%s10182_s21 + $0xe6] sm:$0x1 pattern:$0x73625140] %v7008_v36  ;;  %v8163_v35 = vcombine.high %v8155_v14, %v8155_v14  ;;  %8891 = vst [vmem:[%s10182_s21 + $0xdf] sm:$0x1] %v8146_v30  ;;  %v7041_v41 = vcombine.high %v7031_v31, %v7031_v31  ;;  %v8164_v16 = vcombine.high %v8162_v33, %v8162_v33  ;;  %v7927_v31 = vpop.trf.xlu1 }
 0x277   : > { %9683 = vst.sshfl [vmem:[%s10182_s21 + $0x107] sm:$0x1 pattern:$0x73625140] %v8155_v14  ;;  %7785 = vst [vmem:[%s10182_s21 + $0xd6] sm:$0x1] %v7039_v32  ;;  %v8171_v42 = vrot.slane %v8155_v14, %v10171_v6  ;;  %v8178_v23 = vrot.slane %v8162_v33, %v10171_v6  ;;  %v7042_v59 = vcombine.high %v7038_v15, %v7038_v15 }
 0x278   : > { %9602 = vst.sshfl [vmem:[%s10182_s21 + $0xee] sm:$0x1 pattern:$0x73625140] %v7010_v29  ;;  %8895 = vst [vmem:[%s10182_s21 + $0xff] sm:$0x1] %v8147_v60  ;;  %v8185_v43 = vrot.slane %v8163_v35, %v10171_v6  ;;  %v7043_v37 = vcombine.high %v6819_v24, %v6819_v24  ;;  %v7050_v44 = vrot.slane %v6819_v24, %v10171_v6 }
 0x279   : > { %9685 = vst.sshfl [vmem:[%s10182_s21 + $0x127] sm:$0x1 pattern:$0x73625140] %v8162_v33  ;;  %7789 = vst [vmem:[%s10182_s21 + $0xf6] sm:$0x1] %v7040_v34  ;;  %v8192_v48 = vrot.slane %v8164_v16, %v10171_v6  ;;  %v8193_v49 = vcombine.high %v8171_v42, %v8171_v42  ;;  %v8194_v50 = vcombine.high %v8178_v23, %v8178_v23 }
 0x27a   : > { %9684 = vst.sshfl [vmem:[%s10182_s21 + $0x10f] sm:$0x1 pattern:$0x73625140] %v8163_v35  ;;  %7786 = vst [vmem:[%s10182_s21 + $0xde] sm:$0x1] %v7041_v41  ;;  %v8197_v22 = vcombine.high %v7925_v38, %v7925_v38  ;;  %v8195_v51 = vcombine.high %v8185_v43, %v8185_v43  ;;  %v7057_v52 = vrot.slane %v7043_v37, %v10171_v6  ;;  %v6822_v43 = vpop.trf.xlu0 }
 0x27b   : > { %9686 = vst.sshfl [vmem:[%s10182_s21 + $0x12f] sm:$0x1 pattern:$0x73625140] %v8164_v16  ;;  %7790 = vst [vmem:[%s10182_s21 + $0xfe] sm:$0x1] %v7042_v59  ;;  %v7058_v54 = vcombine.high %v7050_v44, %v7050_v44  ;;  %v7066_v55 = vrot.slane %v7050_v44, %v10171_v6  ;;  %v8196_v56 = vcombine.high %v8192_v48, %v8192_v48 }
 0x27c   : > { %9603 = vst.sshfl [vmem:[%s10182_s21 + $0x106] sm:$0x1 pattern:$0x73625140] %v7050_v44  ;;  %8898 = vst [vmem:[%s10182_s21 + $0x117] sm:$0x1] %v8193_v49  ;;  %v8204_v40 = vrot.slane %v7925_v38, %v10171_v6  ;;  %v8211_v57 = vrot.slane %v8197_v22, %v10171_v6  ;;  %v7092_v61 = vcombine.high %v6820_v45, %v6820_v45 }
 0x27d   : > { %8902 = vst [vmem:[%s10182_s21 + $0x137] sm:$0x1] %v8194_v50  ;;  %8899 = vst [vmem:[%s10182_s21 + $0x11f] sm:$0x1] %v8195_v51  ;;  %v7059_v62 = vcombine.high %v7057_v52, %v7057_v52  ;;  %v7073_v46 = vrot.slane %v7057_v52, %v10171_v6  ;;  %v7080_v63 = vrot.slane %v7058_v54, %v10171_v6 }
 0x27e   : > { %v7088_v0 = vcombine.high %v7066_v55, %v7066_v55  ;;  %9604 = vst.sshfl [vmem:[%s10182_s21 + $0x10e] sm:$0x1 pattern:$0x73625140] %v7058_v54  ;;  %8903 = vst [vmem:[%s10182_s21 + $0x13f] sm:$0x1] %v8196_v56  ;;  %v8212_v1 = vcombine.high %v8204_v40, %v8204_v40  ;;  %v8213_v2 = vcombine.high %v8211_v57, %v8211_v57 }
 0x27f   : > { %9605 = vst.sshfl [vmem:[%s10182_s21 + $0x126] sm:$0x1 pattern:$0x73625140] %v7057_v52  ;;  %v8220_v3 = vrot.slane %v8204_v40, %v10171_v6  ;;  %v8227_v4 = vrot.slane %v8211_v57, %v10171_v6  ;;  %v7087_v5 = vrot.slane %v7059_v62, %v10171_v6  ;;  %v7089_v7 = vcombine.high %v7073_v46, %v7073_v46 }
 0x280   : > { %9687 = vst.sshfl [vmem:[%s10182_s21 + $0x147] sm:$0x1 pattern:$0x73625140] %v8204_v40  ;;  %v7090_v8 = vcombine.high %v7080_v63, %v7080_v63  ;;  %7793 = vst [vmem:[%s10182_s21 + $0x116] sm:$0x1] %v7088_v0  ;;  %v7099_v9 = vrot.slane %v6820_v45, %v10171_v6  ;;  %v8234_v10 = vrot.slane %v8212_v1, %v10171_v6  ;;  %v7928_v40 = vpop.trf.xlu1 }
 0x281   : > { %9689 = vst.sshfl [vmem:[%s10182_s21 + $0x167] sm:$0x1 pattern:$0x73625140] %v8211_v57  ;;  %v8241_v53 = vrot.slane %v8213_v2, %v10171_v6  ;;  %v8242_v11 = vcombine.high %v8220_v3, %v8220_v3  ;;  %v8243_v39 = vcombine.high %v8227_v4, %v8227_v4  ;;  %v7091_v12 = vcombine.high %v7087_v5, %v7087_v5 }
 0x282   : > { %9606 = vst.sshfl [vmem:[%s10182_s21 + $0x12e] sm:$0x1 pattern:$0x73625140] %v7059_v62  ;;  %7794 = vst [vmem:[%s10182_s21 + $0x11e] sm:$0x1] %v7090_v8  ;;  %v7106_v17 = vrot.slane %v7092_v61, %v10171_v6  ;;  %v7107_v58 = vcombine.high %v7099_v9, %v7099_v9  ;;  %v7115_v18 = vrot.slane %v7099_v9, %v10171_v6 }
 0x283   : > { %9688 = vst.sshfl [vmem:[%s10182_s21 + $0x14f] sm:$0x1 pattern:$0x73625140] %v8212_v1  ;;  %7797 = vst [vmem:[%s10182_s21 + $0x136] sm:$0x1] %v7089_v7  ;;  %v8244_v36 = vcombine.high %v8234_v10, %v8234_v10  ;;  %v8245_v21 = vcombine.high %v8241_v53, %v8241_v53  ;;  %v8246_v24 = vcombine.high %v7926_v47, %v7926_v47  ;;  %v6823_v53 = vpop.trf.xlu0 }
 0x284   : > { %9690 = vst.sshfl [vmem:[%s10182_s21 + $0x16f] sm:$0x1 pattern:$0x73625140] %v8213_v2  ;;  %8906 = vst [vmem:[%s10182_s21 + $0x157] sm:$0x1] %v8242_v11  ;;  %v8253_v25 = vrot.slane %v7926_v47, %v10171_v6  ;;  %v7108_v26 = vcombine.high %v7106_v17, %v7106_v17  ;;  %v7122_v27 = vrot.slane %v7106_v17, %v10171_v6 }
 0x285   : > { %9607 = vst.sshfl [vmem:[%s10182_s21 + $0x146] sm:$0x1 pattern:$0x73625140] %v7099_v9  ;;  %8910 = vst [vmem:[%s10182_s21 + $0x177] sm:$0x1] %v8243_v39  ;;  %v7129_v14 = vrot.slane %v7107_v58, %v10171_v6  ;;  %v7137_v28 = vcombine.high %v7115_v18, %v7115_v18  ;;  %v8260_v13 = vrot.slane %v8246_v24, %v10171_v6 }
 0x286   : > { %7798 = vst [vmem:[%s10182_s21 + $0x13e] sm:$0x1] %v7091_v12  ;;  %9608 = vst.sshfl [vmem:[%s10182_s21 + $0x14e] sm:$0x1 pattern:$0x73625140] %v7107_v58  ;;  %v8261_v29 = vcombine.high %v8253_v25, %v8253_v25  ;;  %v8269_v20 = vrot.slane %v8253_v25, %v10171_v6  ;;  %v7141_v30 = vcombine.high %v6821_v19, %v6821_v19 }
 0x287   : > { %9609 = vst.sshfl [vmem:[%s10182_s21 + $0x166] sm:$0x1 pattern:$0x73625140] %v7106_v17  ;;  %8907 = vst [vmem:[%s10182_s21 + $0x15f] sm:$0x1] %v8244_v36  ;;  %v7136_v32 = vrot.slane %v7108_v26, %v10171_v6  ;;  %v7138_v33 = vcombine.high %v7122_v27, %v7122_v27  ;;  %v7139_v60 = vcombine.high %v7129_v14, %v7129_v14 }
 0x288   : > { %8911 = vst [vmem:[%s10182_s21 + $0x17f] sm:$0x1] %v8245_v21  ;;  %9691 = vst.sshfl [vmem:[%s10182_s21 + $0x187] sm:$0x1 pattern:$0x73625140] %v8253_v25  ;;  %v7148_v15 = vrot.slane %v6821_v19, %v10171_v6  ;;  %v8262_v34 = vcombine.high %v8260_v13, %v8260_v13  ;;  %v8276_v35 = vrot.slane %v8260_v13, %v10171_v6  ;;  %v7929_v21 = vpop.trf.xlu1 }
 0x289   : > { %7801 = vst [vmem:[%s10182_s21 + $0x156] sm:$0x1] %v7137_v28  ;;  %9610 = vst.sshfl [vmem:[%s10182_s21 + $0x16e] sm:$0x1 pattern:$0x73625140] %v7108_v26  ;;  %v8283_v38 = vrot.slane %v8261_v29, %v10171_v6  ;;  %v8291_v41 = vcombine.high %v8269_v20, %v8269_v20  ;;  %v7140_v16 = vcombine.high %v7136_v32, %v7136_v32 }
 0x28a   : > { %9692 = vst.sshfl [vmem:[%s10182_s21 + $0x18f] sm:$0x1 pattern:$0x73625140] %v8261_v29  ;;  %7802 = vst [vmem:[%s10182_s21 + $0x15e] sm:$0x1] %v7139_v60  ;;  %v7155_v42 = vrot.slane %v7141_v30, %v10171_v6  ;;  %v7156_v23 = vcombine.high %v7148_v15, %v7148_v15  ;;  %v7164_v59 = vrot.slane %v7148_v15, %v10171_v6 }
 0x28b   : > { %9693 = vst.sshfl [vmem:[%s10182_s21 + $0x1a7] sm:$0x1 pattern:$0x73625140] %v8260_v13  ;;  %7805 = vst [vmem:[%s10182_s21 + $0x176] sm:$0x1] %v7138_v33  ;;  %v8290_v37 = vrot.slane %v8262_v34, %v10171_v6  ;;  %v8292_v44 = vcombine.high %v8276_v35, %v8276_v35  ;;  %v8293_v45 = vcombine.high %v8283_v38, %v8283_v38 }
 0x28c   : > { %9611 = vst.sshfl [vmem:[%s10182_s21 + $0x186] sm:$0x1 pattern:$0x73625140] %v7148_v15  ;;  %8914 = vst [vmem:[%s10182_s21 + $0x197] sm:$0x1] %v8291_v41  ;;  %v8295_v48 = vcombine.high %v7927_v31, %v7927_v31  ;;  %v7157_v49 = vcombine.high %v7155_v42, %v7155_v42  ;;  %v7171_v50 = vrot.slane %v7155_v42, %v10171_v6 }
 0x28d   : > { %9694 = vst.sshfl [vmem:[%s10182_s21 + $0x1af] sm:$0x1 pattern:$0x73625140] %v8262_v34  ;;  %7806 = vst [vmem:[%s10182_s21 + $0x17e] sm:$0x1] %v7140_v16  ;;  %v7178_v22 = vrot.slane %v7156_v23, %v10171_v6  ;;  %v7186_v51 = vcombine.high %v7164_v59, %v7164_v59  ;;  %v8294_v52 = vcombine.high %v8290_v37, %v8290_v37 }
 0x28e   : > { %9612 = vst.sshfl [vmem:[%s10182_s21 + $0x18e] sm:$0x1 pattern:$0x73625140] %v7156_v23  ;;  %8915 = vst [vmem:[%s10182_s21 + $0x19f] sm:$0x1] %v8293_v45  ;;  %v8302_v54 = vrot.slane %v7927_v31, %v10171_v6  ;;  %v8309_v55 = vrot.slane %v8295_v48, %v10171_v6  ;;  %v7190_v56 = vcombine.high %v6822_v43, %v6822_v43 }
 0x28f   : > { %9613 = vst.sshfl [vmem:[%s10182_s21 + $0x1a6] sm:$0x1 pattern:$0x73625140] %v7155_v42  ;;  %8918 = vst [vmem:[%s10182_s21 + $0x1b7] sm:$0x1] %v8292_v44  ;;  %v7185_v57 = vrot.slane %v7157_v49, %v10171_v6  ;;  %v7187_v61 = vcombine.high %v7171_v50, %v7171_v50  ;;  %v7188_v62 = vcombine.high %v7178_v22, %v7178_v22  ;;  %v6824_v42 = vpop.trf.xlu0 }
 0x290   : > { %7809 = vst [vmem:[%s10182_s21 + $0x196] sm:$0x1] %v7186_v51  ;;  %9614 = vst.sshfl [vmem:[%s10182_s21 + $0x1ae] sm:$0x1 pattern:$0x73625140] %v7157_v49  ;;  %v7197_v46 = vrot.slane %v6822_v43, %v10171_v6  ;;  %v8310_v63 = vcombine.high %v8302_v54, %v8302_v54  ;;  %v8311_v0 = vcombine.high %v8309_v55, %v8309_v55 }
 0x291   : > { %8919 = vst [vmem:[%s10182_s21 + $0x1bf] sm:$0x1] %v8294_v52  ;;  %v8318_v1 = vrot.slane %v8302_v54, %v10171_v6  ;;  %v8325_v2 = vrot.slane %v8309_v55, %v10171_v6  ;;  %9695 = vst.sshfl [vmem:[%s10182_s21 + $0x1c7] sm:$0x1 pattern:$0x73625140] %v8302_v54  ;;  %v7189_v3 = vcombine.high %v7185_v57, %v7185_v57  ;;  %v7930_v54 = vpop.trf.xlu1 }
 0x292   : > { %9697 = vst.sshfl [vmem:[%s10182_s21 + $0x1e7] sm:$0x1 pattern:$0x73625140] %v8309_v55  ;;  %7810 = vst [vmem:[%s10182_s21 + $0x19e] sm:$0x1] %v7188_v62  ;;  %v7204_v4 = vrot.slane %v7190_v56, %v10171_v6  ;;  %v7205_v47 = vcombine.high %v7197_v46, %v7197_v46  ;;  %v7213_v5 = vrot.slane %v7197_v46, %v10171_v6 }
 0x293   : > { %7813 = vst [vmem:[%s10182_s21 + $0x1b6] sm:$0x1] %v7187_v61  ;;  %9615 = vst.sshfl [vmem:[%s10182_s21 + $0x1c6] sm:$0x1 pattern:$0x73625140] %v7197_v46  ;;  %v8332_v7 = vrot.slane %v8310_v63, %v10171_v6  ;;  %v8339_v8 = vrot.slane %v8311_v0, %v10171_v6  ;;  %v8340_v9 = vcombine.high %v8318_v1, %v8318_v1 }
 0x294   : > { %v8341_v10 = vcombine.high %v8325_v2, %v8325_v2  ;;  %9696 = vst.sshfl [vmem:[%s10182_s21 + $0x1cf] sm:$0x1 pattern:$0x73625140] %v8310_v63  ;;  %7814 = vst [vmem:[%s10182_s21 + $0x1be] sm:$0x1] %v7189_v3  ;;  %v7206_v11 = vcombine.high %v7204_v4, %v7204_v4  ;;  %v7220_v39 = vrot.slane %v7204_v4, %v10171_v6 }
 0x295   : > { %9698 = vst.sshfl [vmem:[%s10182_s21 + $0x1ef] sm:$0x1 pattern:$0x73625140] %v8311_v0  ;;  %v7227_v12 = vrot.slane %v7205_v47, %v10171_v6  ;;  %v7235_v17 = vcombine.high %v7213_v5, %v7213_v5  ;;  %v8342_v58 = vcombine.high %v8332_v7, %v8332_v7  ;;  %v8343_v18 = vcombine.high %v8339_v8, %v8339_v8 }
 0x296   : > { %9616 = vst.sshfl [vmem:[%s10182_s21 + $0x1ce] sm:$0x1 pattern:$0x73625140] %v7205_v47  ;;  %8922 = vst [vmem:[%s10182_s21 + $0x1d7] sm:$0x1] %v8340_v9  ;;  %v8344_v19 = vcombine.high %v7928_v40, %v7928_v40  ;;  %v8351_v36 = vrot.slane %v7928_v40, %v10171_v6  ;;  %v7234_v24 = vrot.slane %v7206_v11, %v10171_v6 }
 0x297   : > { %9617 = vst.sshfl [vmem:[%s10182_s21 + $0x1e6] sm:$0x1 pattern:$0x73625140] %v7204_v4  ;;  %8926 = vst [vmem:[%s10182_s21 + $0x1f7] sm:$0x1] %v8341_v10  ;;  %v7236_v25 = vcombine.high %v7220_v39, %v7220_v39  ;;  %v7237_v26 = vcombine.high %v7227_v12, %v7227_v12  ;;  %v7239_v27 = vcombine.high %v6823_v53, %v6823_v53  ;;  %v6825_v4 = vpop.trf.xlu0 }
 0x298   : > { %7817 = vst [vmem:[%s10182_s21 + $0x1d6] sm:$0x1] %v7235_v17  ;;  %9618 = vst.sshfl [vmem:[%s10182_s21 + $0x1ee] sm:$0x1 pattern:$0x73625140] %v7206_v11  ;;  %v8358_v14 = vrot.slane %v8344_v19, %v10171_v6  ;;  %v8359_v28 = vcombine.high %v8351_v36, %v8351_v36  ;;  %v8367_v13 = vrot.slane %v8351_v36, %v10171_v6 }
 0x299   : > { %8923 = vst [vmem:[%s10182_s21 + $0x1df] sm:$0x1] %v8342_v58  ;;  %8927 = vst [vmem:[%s10182_s21 + $0x1ff] sm:$0x1] %v8343_v18  ;;  %v7246_v29 = vrot.slane %v6823_v53, %v10171_v6  ;;  %v7238_v20 = vcombine.high %v7234_v24, %v7234_v24  ;;  %v7253_v30 = vrot.slane %v7239_v27, %v10171_v6  ;;  %v7931_v18 = vpop.trf.xlu1 }
 0x29a   : > { %9699 = vst.sshfl [vmem:[%s10182_s21 + $0x207] sm:$0x1 pattern:$0x73625140] %v8351_v36  ;;  %7818 = vst [vmem:[%s10182_s21 + $0x1de] sm:$0x1] %v7237_v26  ;;  %v8393_v31 = vcombine.high %v7929_v21, %v7929_v21  ;;  %v8400_v32 = vrot.slane %v7929_v21, %v10171_v6  ;;  %v8360_v33 = vcombine.high %v8358_v14, %v8358_v14 }
 0x29b   : > { %7821 = vst [vmem:[%s10182_s21 + $0x1f6] sm:$0x1] %v7236_v25  ;;  %v8374_v60 = vrot.slane %v8358_v14, %v10171_v6  ;;  %v8381_v15 = vrot.slane %v8359_v28, %v10171_v6  ;;  %v8389_v34 = vcombine.high %v8367_v13, %v8367_v13  ;;  %9700 = vst.sshfl [vmem:[%s10182_s21 + $0x20f] sm:$0x1 pattern:$0x73625140] %v8359_v28 }
 0x29c   : > { %9701 = vst.sshfl [vmem:[%s10182_s21 + $0x227] sm:$0x1 pattern:$0x73625140] %v8358_v14  ;;  %7822 = vst [vmem:[%s10182_s21 + $0x1fe] sm:$0x1] %v7238_v20  ;;  %v7254_v35 = vcombine.high %v7246_v29, %v7246_v29  ;;  %v7255_v38 = vcombine.high %v7253_v30, %v7253_v30  ;;  %v7262_v41 = vrot.slane %v7246_v29, %v10171_v6 }
 0x29d   : > { %9619 = vst.sshfl [vmem:[%s10182_s21 + $0x206] sm:$0x1 pattern:$0x73625140] %v7246_v29  ;;  %v7269_v16 = vrot.slane %v7253_v30, %v10171_v6  ;;  %v8388_v23 = vrot.slane %v8360_v33, %v10171_v6  ;;  %v8390_v59 = vcombine.high %v8374_v60, %v8374_v60  ;;  %v8391_v43 = vcombine.high %v8381_v15, %v8381_v15 }
 0x29e   : > { %9621 = vst.sshfl [vmem:[%s10182_s21 + $0x226] sm:$0x1 pattern:$0x73625140] %v7253_v30  ;;  %8930 = vst [vmem:[%s10182_s21 + $0x217] sm:$0x1] %v8389_v34  ;;  %v8407_v37 = vrot.slane %v8393_v31, %v10171_v6  ;;  %v7276_v44 = vrot.slane %v7254_v35, %v10171_v6  ;;  %v7283_v45 = vrot.slane %v7255_v38, %v10171_v6  ;;  %v6826_v30 = vpop.trf.xlu0 }
 0x29f   : > { %9703 = vst.sshfl [vmem:[%s10182_s21 + $0x247] sm:$0x1 pattern:$0x73625140] %v8400_v32  ;;  %v7284_v48 = vcombine.high %v7262_v41, %v7262_v41  ;;  %v7285_v49 = vcombine.high %v7269_v16, %v7269_v16  ;;  %v8392_v50 = vcombine.high %v8388_v23, %v8388_v23  ;;  %8931 = vst [vmem:[%s10182_s21 + $0x21f] sm:$0x1] %v8391_v43 }
 0x2a0   : > { %9702 = vst.sshfl [vmem:[%s10182_s21 + $0x22f] sm:$0x1 pattern:$0x73625140] %v8360_v33  ;;  %8934 = vst [vmem:[%s10182_s21 + $0x237] sm:$0x1] %v8390_v59  ;;  %v8408_v22 = vcombine.high %v8400_v32, %v8400_v32  ;;  %v8409_v51 = vcombine.high %v8407_v37, %v8407_v37  ;;  %v8416_v52 = vrot.slane %v8400_v32, %v10171_v6  ;;  %v7932_v59 = vpop.trf.xlu1 }
 0x2a1   : > { %9620 = vst.sshfl [vmem:[%s10182_s21 + $0x20e] sm:$0x1 pattern:$0x73625140] %v7254_v35  ;;  %v7286_v55 = vcombine.high %v7276_v44, %v7276_v44  ;;  %v7287_v56 = vcombine.high %v7283_v45, %v7283_v45  ;;  %7825 = vst [vmem:[%s10182_s21 + $0x216] sm:$0x1] %v7284_v48  ;;  %v8423_v40 = vrot.slane %v8407_v37, %v10171_v6 }
 0x2a2   : > { %9622 = vst.sshfl [vmem:[%s10182_s21 + $0x22e] sm:$0x1 pattern:$0x73625140] %v7255_v38  ;;  %7829 = vst [vmem:[%s10182_s21 + $0x236] sm:$0x1] %v7285_v49  ;;  %v7288_v57 = vcombine.high %v6824_v42, %v6824_v42  ;;  %v8430_v61 = vrot.slane %v8408_v22, %v10171_v6  ;;  %v8437_v62 = vrot.slane %v8409_v51, %v10171_v6 }
 0x2a3   : > { %9705 = vst.sshfl [vmem:[%s10182_s21 + $0x267] sm:$0x1 pattern:$0x73625140] %v8407_v37  ;;  %8935 = vst [vmem:[%s10182_s21 + $0x23f] sm:$0x1] %v8392_v50  ;;  %v8438_v46 = vcombine.high %v8416_v52, %v8416_v52  ;;  %v7295_v63 = vrot.slane %v6824_v42, %v10171_v6  ;;  %v8439_v0 = vcombine.high %v8423_v40, %v8423_v40 }
 0x2a4   : > { %9704 = vst.sshfl [vmem:[%s10182_s21 + $0x24f] sm:$0x1 pattern:$0x73625140] %v8408_v22  ;;  %7826 = vst [vmem:[%s10182_s21 + $0x21e] sm:$0x1] %v7286_v55  ;;  %v7302_v1 = vrot.slane %v7288_v57, %v10171_v6  ;;  %v8442_v2 = vcombine.high %v7930_v54, %v7930_v54  ;;  %v8449_v3 = vrot.slane %v7930_v54, %v10171_v6 }
 0x2a5   : > { %9706 = vst.sshfl [vmem:[%s10182_s21 + $0x26f] sm:$0x1 pattern:$0x73625140] %v8409_v51  ;;  %7830 = vst [vmem:[%s10182_s21 + $0x23e] sm:$0x1] %v7287_v56  ;;  %v8440_v47 = vcombine.high %v8430_v61, %v8430_v61  ;;  %v8441_v5 = vcombine.high %v8437_v62, %v8437_v62  ;;  %v7303_v7 = vcombine.high %v7295_v63, %v7295_v63  ;;  %v6827_v62 = vpop.trf.xlu0 }
 0x2a6   : > { %8938 = vst [vmem:[%s10182_s21 + $0x257] sm:$0x1] %v8438_v46  ;;  %v7311_v8 = vrot.slane %v7295_v63, %v10171_v6  ;;  %9623 = vst.sshfl [vmem:[%s10182_s21 + $0x246] sm:$0x1 pattern:$0x73625140] %v7295_v63  ;;  %v7304_v9 = vcombine.high %v7302_v1, %v7302_v1  ;;  %v7318_v10 = vrot.slane %v7302_v1, %v10171_v6 }
 0x2a7   : > { %8942 = vst [vmem:[%s10182_s21 + $0x277] sm:$0x1] %v8439_v0  ;;  %9625 = vst.sshfl [vmem:[%s10182_s21 + $0x266] sm:$0x1 pattern:$0x73625140] %v7302_v1  ;;  %v8456_v53 = vrot.slane %v8442_v2, %v10171_v6  ;;  %v8457_v11 = vcombine.high %v8449_v3, %v8449_v3  ;;  %v7325_v39 = vrot.slane %v7303_v7, %v10171_v6 }
 0x2a8   : > { %9707 = vst.sshfl [vmem:[%s10182_s21 + $0x287] sm:$0x1 pattern:$0x73625140] %v8449_v3  ;;  %8939 = vst [vmem:[%s10182_s21 + $0x25f] sm:$0x1] %v8440_v47  ;;  %v7333_v12 = vcombine.high %v7311_v8, %v7311_v8  ;;  %v8465_v17 = vrot.slane %v8449_v3, %v10171_v6  ;;  %v7337_v58 = vcombine.high %v6825_v4, %v6825_v4 }
 0x2a9   : > { %8943 = vst [vmem:[%s10182_s21 + $0x27f] sm:$0x1] %v8441_v5  ;;  %9624 = vst.sshfl [vmem:[%s10182_s21 + $0x24e] sm:$0x1 pattern:$0x73625140] %v7303_v7  ;;  %v7332_v19 = vrot.slane %v7304_v9, %v10171_v6  ;;  %v7334_v36 = vcombine.high %v7318_v10, %v7318_v10  ;;  %v8458_v21 = vcombine.high %v8456_v53, %v8456_v53  ;;  %v7933_v5 = vpop.trf.xlu1 }
 0x2aa   : > { %9626 = vst.sshfl [vmem:[%s10182_s21 + $0x26e] sm:$0x1 pattern:$0x73625140] %v7304_v9  ;;  %v8472_v24 = vrot.slane %v8456_v53, %v10171_v6  ;;  %v7335_v25 = vcombine.high %v7325_v39, %v7325_v39  ;;  %7833 = vst [vmem:[%s10182_s21 + $0x256] sm:$0x1] %v7333_v12  ;;  %v8479_v26 = vrot.slane %v8457_v11, %v10171_v6 }
 0x2ab   : > { %9708 = vst.sshfl [vmem:[%s10182_s21 + $0x28f] sm:$0x1 pattern:$0x73625140] %v8457_v11  ;;  %v8487_v27 = vcombine.high %v8465_v17, %v8465_v17  ;;  %v7344_v14 = vrot.slane %v6825_v4, %v10171_v6  ;;  %v7336_v28 = vcombine.high %v7332_v19, %v7332_v19  ;;  %7837 = vst [vmem:[%s10182_s21 + $0x276] sm:$0x1] %v7334_v36 }
 0x2ac   : > { %9709 = vst.sshfl [vmem:[%s10182_s21 + $0x2a7] sm:$0x1 pattern:$0x73625140] %v8456_v53  ;;  %v8486_v13 = vrot.slane %v8458_v21, %v10171_v6  ;;  %v8488_v29 = vcombine.high %v8472_v24, %v8472_v24  ;;  %v7351_v20 = vrot.slane %v7337_v58, %v10171_v6  ;;  %7834 = vst [vmem:[%s10182_s21 + $0x25e] sm:$0x1] %v7335_v25 }
 0x2ad   : > { %9710 = vst.sshfl [vmem:[%s10182_s21 + $0x2af] sm:$0x1 pattern:$0x73625140] %v8458_v21  ;;  %v8489_v31 = vcombine.high %v8479_v26, %v8479_v26  ;;  %8946 = vst [vmem:[%s10182_s21 + $0x297] sm:$0x1] %v8487_v27  ;;  %v7352_v32 = vcombine.high %v7344_v14, %v7344_v14  ;;  %v7360_v33 = vrot.slane %v7344_v14, %v10171_v6  ;;  %v6828_v26 = vpop.trf.xlu0 }
 0x2ae   : > { %9627 = vst.sshfl [vmem:[%s10182_s21 + $0x286] sm:$0x1 pattern:$0x73625140] %v7344_v14  ;;  %v8491_v60 = vcombine.high %v7931_v18, %v7931_v18  ;;  %7838 = vst [vmem:[%s10182_s21 + $0x27e] sm:$0x1] %v7336_v28  ;;  %v8490_v15 = vcombine.high %v8486_v13, %v8486_v13  ;;  %v7353_v34 = vcombine.high %v7351_v20, %v7351_v20 }
 0x2af   : > { %8950 = vst [vmem:[%s10182_s21 + $0x2b7] sm:$0x1] %v8488_v29  ;;  %v7367_v35 = vrot.slane %v7351_v20, %v10171_v6  ;;  %9629 = vst.sshfl [vmem:[%s10182_s21 + $0x2a6] sm:$0x1 pattern:$0x73625140] %v7351_v20  ;;  %v8498_v38 = vrot.slane %v7931_v18, %v10171_v6  ;;  %v7374_v41 = vrot.slane %v7352_v32, %v10171_v6 }
 0x2b0   : > { %8947 = vst [vmem:[%s10182_s21 + $0x29f] sm:$0x1] %v8489_v31  ;;  %v7382_v16 = vcombine.high %v7360_v33, %v7360_v33  ;;  %9628 = vst.sshfl [vmem:[%s10182_s21 + $0x28e] sm:$0x1 pattern:$0x73625140] %v7352_v32  ;;  %v8505_v42 = vrot.slane %v8491_v60, %v10171_v6  ;;  %v7386_v23 = vcombine.high %v6826_v30, %v6826_v30  ;;  %v7934_v32 = vpop.trf.xlu1 }
 0x2b1   : > { %8951 = vst [vmem:[%s10182_s21 + $0x2bf] sm:$0x1] %v8490_v15  ;;  %v7381_v43 = vrot.slane %v7353_v34, %v10171_v6  ;;  %v7383_v37 = vcombine.high %v7367_v35, %v7367_v35  ;;  %9630 = vst.sshfl [vmem:[%s10182_s21 + $0x2ae] sm:$0x1 pattern:$0x73625140] %v7353_v34  ;;  %v8506_v44 = vcombine.high %v8498_v38, %v8498_v38 }
 0x2b2   : > { %v8514_v45 = vrot.slane %v8498_v38, %v10171_v6  ;;  %9711 = vst.sshfl [vmem:[%s10182_s21 + $0x2c7] sm:$0x1 pattern:$0x73625140] %v8498_v38  ;;  %v7384_v48 = vcombine.high %v7374_v41, %v7374_v41  ;;  %7841 = vst [vmem:[%s10182_s21 + $0x296] sm:$0x1] %v7382_v16  ;;  %v8507_v49 = vcombine.high %v8505_v42, %v8505_v42 }
 0x2b3   : > { %v8521_v50 = vrot.slane %v8505_v42, %v10171_v6  ;;  %9713 = vst.sshfl [vmem:[%s10182_s21 + $0x2e7] sm:$0x1 pattern:$0x73625140] %v8505_v42  ;;  %v7393_v22 = vrot.slane %v6826_v30, %v10171_v6  ;;  %v7385_v51 = vcombine.high %v7381_v43, %v7381_v43  ;;  %7845 = vst [vmem:[%s10182_s21 + $0x2b6] sm:$0x1] %v7383_v37 }
 0x2b4   : > { %v8528_v52 = vrot.slane %v8506_v44, %v10171_v6  ;;  %v8536_v54 = vcombine.high %v8514_v45, %v8514_v45  ;;  %9712 = vst.sshfl [vmem:[%s10182_s21 + $0x2cf] sm:$0x1 pattern:$0x73625140] %v8506_v44  ;;  %v7400_v55 = vrot.slane %v7386_v23, %v10171_v6  ;;  %7842 = vst [vmem:[%s10182_s21 + $0x29e] sm:$0x1] %v7384_v48 }
 0x2b5   : > { %v8535_v56 = vrot.slane %v8507_v49, %v10171_v6  ;;  %v8537_v40 = vcombine.high %v8521_v50, %v8521_v50  ;;  %9714 = vst.sshfl [vmem:[%s10182_s21 + $0x2ef] sm:$0x1 pattern:$0x73625140] %v8507_v49  ;;  %v7401_v57 = vcombine.high %v7393_v22, %v7393_v22  ;;  %v7409_v61 = vrot.slane %v7393_v22, %v10171_v6  ;;  %v6829_v49 = vpop.trf.xlu0 }
 0x2b6   : > { %9631 = vst.sshfl [vmem:[%s10182_s21 + $0x2c6] sm:$0x1 pattern:$0x73625140] %v7393_v22  ;;  %7846 = vst [vmem:[%s10182_s21 + $0x2be] sm:$0x1] %v7385_v51  ;;  %v8538_v46 = vcombine.high %v8528_v52, %v8528_v52  ;;  %v7402_v63 = vcombine.high %v7400_v55, %v7400_v55  ;;  %v7416_v0 = vrot.slane %v7400_v55, %v10171_v6 }
 0x2b7   : > { %8954 = vst [vmem:[%s10182_s21 + $0x2d7] sm:$0x1] %v8536_v54  ;;  %9633 = vst.sshfl [vmem:[%s10182_s21 + $0x2e6] sm:$0x1 pattern:$0x73625140] %v7400_v55  ;;  %v8540_v1 = vcombine.high %v7932_v59, %v7932_v59  ;;  %v8539_v2 = vcombine.high %v8535_v56, %v8535_v56  ;;  %v7423_v3 = vrot.slane %v7401_v57, %v10171_v6 }
 0x2b8   : > { %8958 = vst [vmem:[%s10182_s21 + $0x2f7] sm:$0x1] %v8537_v40  ;;  %v7431_v4 = vcombine.high %v7409_v61, %v7409_v61  ;;  %9632 = vst.sshfl [vmem:[%s10182_s21 + $0x2ce] sm:$0x1 pattern:$0x73625140] %v7401_v57  ;;  %v8547_v47 = vrot.slane %v7932_v59, %v10171_v6  ;;  %v7430_v7 = vrot.slane %v7402_v63, %v10171_v6 }
 0x2b9   : > { %8955 = vst [vmem:[%s10182_s21 + $0x2df] sm:$0x1] %v8538_v46  ;;  %v7432_v8 = vcombine.high %v7416_v0, %v7416_v0  ;;  %9634 = vst.sshfl [vmem:[%s10182_s21 + $0x2ee] sm:$0x1 pattern:$0x73625140] %v7402_v63  ;;  %v8554_v9 = vrot.slane %v8540_v1, %v10171_v6  ;;  %v7435_v10 = vcombine.high %v6827_v62, %v6827_v62 }
 0x2ba   : > { %8959 = vst [vmem:[%s10182_s21 + $0x2ff] sm:$0x1] %v8539_v2  ;;  %v7433_v53 = vcombine.high %v7423_v3, %v7423_v3  ;;  %7849 = vst [vmem:[%s10182_s21 + $0x2d6] sm:$0x1] %v7431_v4  ;;  %v8555_v11 = vcombine.high %v8547_v47, %v8547_v47  ;;  %v8563_v39 = vrot.slane %v8547_v47, %v10171_v6  ;;  %v7935_v3 = vpop.trf.xlu1 }
 0x2bb   : > { %9715 = vst.sshfl [vmem:[%s10182_s21 + $0x307] sm:$0x1 pattern:$0x73625140] %v8547_v47  ;;  %v7442_v12 = vrot.slane %v6827_v62, %v10171_v6  ;;  %v7434_v17 = vcombine.high %v7430_v7, %v7430_v7  ;;  %7853 = vst [vmem:[%s10182_s21 + $0x2f6] sm:$0x1] %v7432_v8  ;;  %v8556_v58 = vcombine.high %v8554_v9, %v8554_v9 }
 0x2bc   : > { %v8570_v18 = vrot.slane %v8554_v9, %v10171_v6  ;;  %9717 = vst.sshfl [vmem:[%s10182_s21 + $0x327] sm:$0x1 pattern:$0x73625140] %v8554_v9  ;;  %v7449_v19 = vrot.slane %v7435_v10, %v10171_v6  ;;  %7850 = vst [vmem:[%s10182_s21 + $0x2de] sm:$0x1] %v7433_v53  ;;  %v8577_v36 = vrot.slane %v8555_v11, %v10171_v6 }
 0x2bd   : > { %v8585_v21 = vcombine.high %v8563_v39, %v8563_v39  ;;  %9716 = vst.sshfl [vmem:[%s10182_s21 + $0x30f] sm:$0x1 pattern:$0x73625140] %v8555_v11  ;;  %v7450_v24 = vcombine.high %v7442_v12, %v7442_v12  ;;  %v7458_v25 = vrot.slane %v7442_v12, %v10171_v6  ;;  %7854 = vst [vmem:[%s10182_s21 + $0x2fe] sm:$0x1] %v7434_v17  ;;  %v6830_v11 = vpop.trf.xlu0 }
 0x2be   : > { %9635 = vst.sshfl [vmem:[%s10182_s21 + $0x306] sm:$0x1 pattern:$0x73625140] %v7442_v12  ;;  %v8584_v27 = vrot.slane %v8556_v58, %v10171_v6  ;;  %v8586_v14 = vcombine.high %v8570_v18, %v8570_v18  ;;  %v7451_v28 = vcombine.high %v7449_v19, %v7449_v19  ;;  %v7465_v13 = vrot.slane %v7449_v19, %v10171_v6 }
 0x2bf   : > { %9718 = vst.sshfl [vmem:[%s10182_s21 + $0x32f] sm:$0x1 pattern:$0x73625140] %v8556_v58  ;;  %v8587_v29 = vcombine.high %v8577_v36, %v8577_v36  ;;  %8962 = vst [vmem:[%s10182_s21 + $0x317] sm:$0x1] %v8585_v21  ;;  %v7472_v20 = vrot.slane %v7450_v24, %v10171_v6  ;;  %v7480_v30 = vcombine.high %v7458_v25, %v7458_v25 }
 0x2c0   : > { %9637 = vst.sshfl [vmem:[%s10182_s21 + $0x326] sm:$0x1 pattern:$0x73625140] %v7449_v19  ;;  %v8589_v31 = vcombine.high %v7933_v5, %v7933_v5  ;;  %v8588_v33 = vcombine.high %v8584_v27, %v8584_v27  ;;  %8966 = vst [vmem:[%s10182_s21 + $0x337] sm:$0x1] %v8586_v14  ;;  %v7479_v60 = vrot.slane %v7451_v28, %v10171_v6 }
 0x2c1   : > { %9636 = vst.sshfl [vmem:[%s10182_s21 + $0x30e] sm:$0x1 pattern:$0x73625140] %v7450_v24  ;;  %v7481_v15 = vcombine.high %v7465_v13, %v7465_v13  ;;  %v8596_v34 = vrot.slane %v7933_v5, %v10171_v6  ;;  %8963 = vst [vmem:[%s10182_s21 + $0x31f] sm:$0x1] %v8587_v29  ;;  %v7482_v35 = vcombine.high %v7472_v20, %v7472_v20 }
 0x2c2   : > { %9638 = vst.sshfl [vmem:[%s10182_s21 + $0x32e] sm:$0x1 pattern:$0x73625140] %v7451_v28  ;;  %7857 = vst [vmem:[%s10182_s21 + $0x316] sm:$0x1] %v7480_v30  ;;  %v8603_v38 = vrot.slane %v8589_v31, %v10171_v6  ;;  %v7484_v41 = vcombine.high %v6828_v26, %v6828_v26  ;;  %v7491_v16 = vrot.slane %v6828_v26, %v10171_v6 }
 0x2c3   : > { %8967 = vst [vmem:[%s10182_s21 + $0x33f] sm:$0x1] %v8588_v33  ;;  %v7483_v42 = vcombine.high %v7479_v60, %v7479_v60  ;;  %7861 = vst [vmem:[%s10182_s21 + $0x336] sm:$0x1] %v7481_v15  ;;  %v8604_v23 = vcombine.high %v8596_v34, %v8596_v34  ;;  %v8612_v59 = vrot.slane %v8596_v34, %v10171_v6 }
 0x2c4   : > { %9719 = vst.sshfl [vmem:[%s10182_s21 + $0x347] sm:$0x1 pattern:$0x73625140] %v8596_v34  ;;  %v8638_v43 = vcombine.high %v7934_v32, %v7934_v32  ;;  %7858 = vst [vmem:[%s10182_s21 + $0x31e] sm:$0x1] %v7482_v35  ;;  %v8605_v37 = vcombine.high %v8603_v38, %v8603_v38  ;;  %v8619_v44 = vrot.slane %v8603_v38, %v10171_v6 }
 0x2c5   : > { %9721 = vst.sshfl [vmem:[%s10182_s21 + $0x367] sm:$0x1 pattern:$0x73625140] %v8603_v38  ;;  %v7498_v45 = vrot.slane %v7484_v41, %v10171_v6  ;;  %v7499_v48 = vcombine.high %v7491_v16, %v7491_v16  ;;  %7862 = vst [vmem:[%s10182_s21 + $0x33e] sm:$0x1] %v7483_v42  ;;  %v8626_v50 = vrot.slane %v8604_v23, %v10171_v6 }
 0x2c6   : > { %9639 = vst.sshfl [vmem:[%s10182_s21 + $0x346] sm:$0x1 pattern:$0x73625140] %v7491_v16  ;;  %v8634_v22 = vcombine.high %v8612_v59, %v8612_v59  ;;  %v7507_v51 = vrot.slane %v7491_v16, %v10171_v6  ;;  %v8645_v52 = vrot.slane %v7934_v32, %v10171_v6  ;;  %v8633_v54 = vrot.slane %v8605_v37, %v10171_v6 }
 0x2c7   : > { %9720 = vst.sshfl [vmem:[%s10182_s21 + $0x34f] sm:$0x1 pattern:$0x73625140] %v8604_v23  ;;  %v8635_v55 = vcombine.high %v8619_v44, %v8619_v44  ;;  %v7500_v56 = vcombine.high %v7498_v45, %v7498_v45  ;;  %v7514_v40 = vrot.slane %v7498_v45, %v10171_v6  ;;  %v8636_v57 = vcombine.high %v8626_v50, %v8626_v50 }
 0x2c8   : > { %9722 = vst.sshfl [vmem:[%s10182_s21 + $0x36f] sm:$0x1 pattern:$0x73625140] %v8605_v37  ;;  %8970 = vst [vmem:[%s10182_s21 + $0x357] sm:$0x1] %v8634_v22  ;;  %v7521_v61 = vrot.slane %v7499_v48, %v10171_v6  ;;  %v7529_v62 = vcombine.high %v7507_v51, %v7507_v51  ;;  %v8652_v46 = vrot.slane %v8638_v43, %v10171_v6 }
 0x2c9   : > { %9640 = vst.sshfl [vmem:[%s10182_s21 + $0x34e] sm:$0x1 pattern:$0x73625140] %v7499_v48  ;;  %v8637_v63 = vcombine.high %v8633_v54, %v8633_v54  ;;  %8974 = vst [vmem:[%s10182_s21 + $0x377] sm:$0x1] %v8635_v55  ;;  %v7528_v0 = vrot.slane %v7500_v56, %v10171_v6  ;;  %v7530_v1 = vcombine.high %v7514_v40, %v7514_v40 }
 0x2ca   : > { %9641 = vst.sshfl [vmem:[%s10182_s21 + $0x366] sm:$0x1 pattern:$0x73625140] %v7498_v45  ;;  %v8653_v2 = vcombine.high %v8645_v52, %v8645_v52  ;;  %8971 = vst [vmem:[%s10182_s21 + $0x35f] sm:$0x1] %v8636_v57  ;;  %v7531_v4 = vcombine.high %v7521_v61, %v7521_v61  ;;  %v8654_v47 = vcombine.high %v8652_v46, %v8652_v46 }
 0x2cb   : > { %9723 = vst.sshfl [vmem:[%s10182_s21 + $0x387] sm:$0x1 pattern:$0x73625140] %v8645_v52  ;;  %7865 = vst [vmem:[%s10182_s21 + $0x356] sm:$0x1] %v7529_v62  ;;  %v8661_v5 = vrot.slane %v8645_v52, %v10171_v6  ;;  %v8668_v7 = vrot.slane %v8652_v46, %v10171_v6  ;;  %v7532_v8 = vcombine.high %v7528_v0, %v7528_v0 }
 0x2cc   : > { %9642 = vst.sshfl [vmem:[%s10182_s21 + $0x36e] sm:$0x1 pattern:$0x73625140] %v7500_v56  ;;  %8975 = vst [vmem:[%s10182_s21 + $0x37f] sm:$0x1] %v8637_v63  ;;  %v8675_v9 = vrot.slane %v8653_v2, %v10171_v6  ;;  %v7533_v10 = vcombine.high %v6829_v49, %v6829_v49  ;;  %v7540_v53 = vrot.slane %v6829_v49, %v10171_v6 }
 0x2cd   : > { %9725 = vst.sshfl [vmem:[%s10182_s21 + $0x3a7] sm:$0x1 pattern:$0x73625140] %v8652_v46  ;;  %7869 = vst [vmem:[%s10182_s21 + $0x376] sm:$0x1] %v7530_v1  ;;  %v8682_v39 = vrot.slane %v8654_v47, %v10171_v6  ;;  %v8683_v12 = vcombine.high %v8661_v5, %v8661_v5  ;;  %v8684_v17 = vcombine.high %v8668_v7, %v8668_v7 }
 0x2ce   : > { %9724 = vst.sshfl [vmem:[%s10182_s21 + $0x38f] sm:$0x1 pattern:$0x73625140] %v8653_v2  ;;  %7866 = vst [vmem:[%s10182_s21 + $0x35e] sm:$0x1] %v7531_v4  ;;  %v8687_v58 = vcombine.high %v7935_v3, %v7935_v3  ;;  %v8685_v18 = vcombine.high %v8675_v9, %v8675_v9  ;;  %v7547_v19 = vrot.slane %v7533_v10, %v10171_v6 }
 0x2cf   : > { %9726 = vst.sshfl [vmem:[%s10182_s21 + $0x3af] sm:$0x1 pattern:$0x73625140] %v8654_v47  ;;  %7870 = vst [vmem:[%s10182_s21 + $0x37e] sm:$0x1] %v7532_v8  ;;  %v7548_v36 = vcombine.high %v7540_v53, %v7540_v53  ;;  %v7556_v21 = vrot.slane %v7540_v53, %v10171_v6  ;;  %v8686_v24 = vcombine.high %v8682_v39, %v8682_v39 }
 0x2d0   : > { %9643 = vst.sshfl [vmem:[%s10182_s21 + $0x386] sm:$0x1 pattern:$0x73625140] %v7540_v53  ;;  %8978 = vst [vmem:[%s10182_s21 + $0x397] sm:$0x1] %v8683_v12  ;;  %v8694_v25 = vrot.slane %v7935_v3, %v10171_v6  ;;  %v8701_v26 = vrot.slane %v8687_v58, %v10171_v6  ;;  %v7582_v27 = vcombine.high %v6830_v11, %v6830_v11 }
 0x2d1   : > { %8982 = vst [vmem:[%s10182_s21 + $0x3b7] sm:$0x1] %v8684_v17  ;;  %8979 = vst [vmem:[%s10182_s21 + $0x39f] sm:$0x1] %v8685_v18  ;;  %v7549_v14 = vcombine.high %v7547_v19, %v7547_v19  ;;  %v7563_v28 = vrot.slane %v7547_v19, %v10171_v6  ;;  %v7570_v13 = vrot.slane %v7548_v36, %v10171_v6 }
 0x2d2   : > { %v7578_v29 = vcombine.high %v7556_v21, %v7556_v21  ;;  %9644 = vst.sshfl [vmem:[%s10182_s21 + $0x38e] sm:$0x1 pattern:$0x73625140] %v7548_v36  ;;  %8983 = vst [vmem:[%s10182_s21 + $0x3bf] sm:$0x1] %v8686_v24  ;;  %v8702_v20 = vcombine.high %v8694_v25, %v8694_v25  ;;  %v8703_v30 = vcombine.high %v8701_v26, %v8701_v26 }
 0x2d3   : > { %9645 = vst.sshfl [vmem:[%s10182_s21 + $0x3a6] sm:$0x1 pattern:$0x73625140] %v7547_v19  ;;  %v8710_v31 = vrot.slane %v8694_v25, %v10171_v6  ;;  %v8717_v32 = vrot.slane %v8701_v26, %v10171_v6  ;;  %v7577_v33 = vrot.slane %v7549_v14, %v10171_v6  ;;  %v7579_v60 = vcombine.high %v7563_v28, %v7563_v28 }
 0x2d4   : > { %9727 = vst.sshfl [vmem:[%s10182_s21 + $0x3c7] sm:$0x1 pattern:$0x73625140] %v8694_v25  ;;  %v7580_v15 = vcombine.high %v7570_v13, %v7570_v13  ;;  %7873 = vst [vmem:[%s10182_s21 + $0x396] sm:$0x1] %v7578_v29  ;;  %v7589_v34 = vrot.slane %v6830_v11, %v10171_v6  ;;  %v8724_v35 = vrot.slane %v8702_v20, %v10171_v6 }
 0x2d5   : > { %9729 = vst.sshfl [vmem:[%s10182_s21 + $0x3e7] sm:$0x1 pattern:$0x73625140] %v8701_v26  ;;  %v8731_v38 = vrot.slane %v8703_v30, %v10171_v6  ;;  %v8732_v41 = vcombine.high %v8710_v31, %v8710_v31  ;;  %v8733_v16 = vcombine.high %v8717_v32, %v8717_v32  ;;  %v7581_v42 = vcombine.high %v7577_v33, %v7577_v33 }
 0x2d6   : > { %9646 = vst.sshfl [vmem:[%s10182_s21 + $0x3ae] sm:$0x1 pattern:$0x73625140] %v7549_v14  ;;  %7874 = vst [vmem:[%s10182_s21 + $0x39e] sm:$0x1] %v7580_v15  ;;  %v7596_v23 = vrot.slane %v7582_v27, %v10171_v6  ;;  %v7597_v59 = vcombine.high %v7589_v34, %v7589_v34  ;;  %v7605_v43 = vrot.slane %v7589_v34, %v10171_v6 }
 0x2d7   : > { %9728 = vst.sshfl [vmem:[%s10182_s21 + $0x3cf] sm:$0x1 pattern:$0x73625140] %v8702_v20  ;;  %7877 = vst [vmem:[%s10182_s21 + $0x3b6] sm:$0x1] %v7579_v60  ;;  %v8734_v37 = vcombine.high %v8724_v35, %v8724_v35  ;;  %v8735_v44 = vcombine.high %v8731_v38, %v8731_v38 }
 0x2d8   : > { %9730 = vst.sshfl [vmem:[%s10182_s21 + $0x3ef] sm:$0x1 pattern:$0x73625140] %v8703_v30  ;;  %8986 = vst [vmem:[%s10182_s21 + $0x3d7] sm:$0x1] %v8732_v41  ;;  %v7598_v45 = vcombine.high %v7596_v23, %v7596_v23  ;;  %v7612_v48 = vrot.slane %v7596_v23, %v10171_v6  ;;  %v7619_v49 = vrot.slane %v7597_v59, %v10171_v6 }
 0x2d9   : > { %9647 = vst.sshfl [vmem:[%s10182_s21 + $0x3c6] sm:$0x1 pattern:$0x73625140] %v7589_v34  ;;  %8990 = vst [vmem:[%s10182_s21 + $0x3f7] sm:$0x1] %v8733_v16  ;;  %v7627_v50 = vcombine.high %v7605_v43, %v7605_v43 }
 0x2da   : > { %7878 = vst [vmem:[%s10182_s21 + $0x3be] sm:$0x1] %v7581_v42  ;;  %9648 = vst.sshfl [vmem:[%s10182_s21 + $0x3ce] sm:$0x1 pattern:$0x73625140] %v7597_v59  ;;  %v7626_v22 = vrot.slane %v7598_v45, %v10171_v6  ;;  %v7628_v51 = vcombine.high %v7612_v48, %v7612_v48  ;;  %v7629_v52 = vcombine.high %v7619_v49, %v7619_v49 }
 0x2db   : > { %9649 = vst.sshfl [vmem:[%s10182_s21 + $0x3e6] sm:$0x1 pattern:$0x73625140] %v7596_v23  ;;  %8987 = vst [vmem:[%s10182_s21 + $0x3df] sm:$0x1] %v8734_v37 }
 0x2dc   : > { %8991 = vst [vmem:[%s10182_s21 + $0x3ff] sm:$0x1] %v8735_v44  ;;  %7881 = vst [vmem:[%s10182_s21 + $0x3d6] sm:$0x1] %v7627_v50  ;;  %v7630_v54 = vcombine.high %v7626_v22, %v7626_v22 }
 0x2dd   : > { %9650 = vst.sshfl [vmem:[%s10182_s21 + $0x3ee] sm:$0x1 pattern:$0x73625140] %v7598_v45  ;;  %7882 = vst [vmem:[%s10182_s21 + $0x3de] sm:$0x1] %v7629_v52 }
 0x2de   : > { %7885 = vst [vmem:[%s10182_s21 + $0x3f6] sm:$0x1] %v7628_v51  ;;  %7886 = vst [vmem:[%s10182_s21 + $0x3fe] sm:$0x1] %v7630_v54 }
 0x2df   : > { %9863 = shalt.err (!%p9860_p3)
}
 0x2e0   : > { %s9864_s24 = scalar_lea.hbm %s12158_s2, 16384  ;;  %s9868_s30 = scalar_lea.hbm %s12218_s1, 65536 }
 0x2e1   : > { %p9865_p5 = scmp.ne.s32.totalorder %s12158_s2, %s9864_s24  ;;  %p9869_p2 = scmp.lt.u32.totalorder %s12158_s2, %s12218_s1 }
 0x2e2   : > { %p9870_p4 = scmp.lt.u32.totalorder %s9868_s30, %s9864_s24  ;;  %p9872_p8 = scmp.lt.u32.totalorder %s9864_s24, %s12158_s2 }
 0x2e3   : > { %p9866_p6 = pnand %p9865_p5, %p12225_p9 }
 0x2e4   : > { %p9871_p10 = por %p9870_p4, %p9869_p2 }
 0x2e5   : > { %p9867_p7 = pneg %p9866_p6 }
 0x2e6   : > { %p9873_p12 = por %p9872_p8, %p9871_p10 }
 0x2e8   : > { %p9874_p0 = pnand %p9873_p12, %p9867_p7 }
 0x2ea   : > { %9877 = shalt.err (!%p9874_p0)
}
 0x2eb   : > { %s9955_s10 = smov 128   ;;  %s9956_s9 = smov 256  }
 0x2ec   : > { %s9957_s18 = smov 8  }
 0x2ed   : > { %9738 = dma.vmem_to_hbm [thread:$0]  (%p12225_p9), %s12160_s14, 16384, %s12158_s2, %s8993_s26, %s9955_s10, %s9956_s9, %s9957_s18  }
 0x2ee PF: > { %p9749_p11 = scmp.ge.s32.totalorder %s9948_s13, 2  ;;  %s9022_s23 = sand.u32 1, %s9920_s6  }
 0x2ef   : > { %p12226_p13 = scmp.ne.s32.totalorder %s12223_s25, 0  ;;  %s9023_s4 = scalar_lea.sflag [#allocation4], %s9022_s23 }
 0x2f1   : > { %p9745_p1 = pnand %p9749_p11, %p12226_p13 }
 0x2f3   : > { %9915 = dma.done.wait (!%p9745_p1), %s9023_s4, 16384  }
 0x2f4   : > { %9917 = vsyncadd (!%p9745_p1), %s9023_s4, 4294950912  ;;  %s17_s13 = sadd.s32 1, %s9948_s13   ;;  %s12227_s6 = smov %s9924_s7 }
 0x2f5   : > { %p14_p3 = scmp.ge.s32.totalorder %s17_s13, 6   ;;  %s12228_s7 = smov %s9928_s8 }
 0x2f6   : > { %s12229_s8 = smov %s10046_s27  ;;  %s12230_s9 = smov %s9940_s11 }
 0x2f7   : > { %s12231_s10 = smov %s9944_s12  ;;  %s12232_s11 = smov %s12235_s16 }
 0x2f8   : > { %s12233_s12 = smov %s12239_s17  ;;  %16 = sbr.rel (!%p14_p3) target bundleno = 7 (0x7), region = 76 }
 0x2ff   :  { %9028 = vsyncpa [#allocation3], 1 }
 0x300   :  { %9030 = vsyncpa [#allocation3 + $0x1], 1 }
 0x301   :  { %9031 = vsyncpa [#allocation4], 1 }
 0x302   :  { %9033 = vsyncpa [#allocation4 + $0x1], 1 }

</bundles_post_ra>
